<compile_context>
chip_gen: v7x
topology: tpu7x:2x2x1
jax: 0.10.0
libtpu: 0.0.40
codegen_flags: <defaults>
</compile_context>

<pallas_src>
import functools
import math

import jax
import jax.numpy as jnp
from jax import lax
from jax.experimental import pallas as pl
from jax.experimental.pallas import tpu as pltpu


def _round_up(a, b):
    return (a + b - 1) // b * b


def _lstm_recurrence_kernel(gx_ref, whh_ref, h_out_ref, h_scr, c_scr, *, fused):
    """One grid step == T_BLK timesteps of the LSTM recurrence for one batch tile.

    gx_ref   : (T_BLK, 4, B_TILE, H) f32 — input-side gate preactivations
               (x0 @ w_ih^T + b_ih + b_hh), gate order (i, f, g, o).
    whh_ref  : bf16 recurrent weights.
               fused=True  -> (H, 4H)   (h @ whh gives all four gates at once)
               fused=False -> (4, H, H) (one aligned (H, H) block per gate)
    h_out_ref: (T_BLK, B_TILE, H) f32 hidden states (output projection applied
               outside the kernel).
    h_scr/c_scr: (B_TILE, H) f32 VMEM scratch carrying state across the
               sequential ("arbitrary") time-block grid axis.
    """
    # Reset state at the start of each batch tile's time sweep.
    @pl.when(pl.program_id(1) == 0)
    def _():
        h_scr[...] = jnp.zeros_like(h_scr)
        c_scr[...] = jnp.zeros_like(c_scr)

    t_blk = gx_ref.shape[0]
    hidden = gx_ref.shape[-1]

    # Hoist weight loads out of the unrolled time loop.
    if fused:
        w_all = whh_ref[...]                    # (H, 4H)
    else:
        w_i = whh_ref[0]
        w_f = whh_ref[1]
        w_g = whh_ref[2]
        w_o = whh_ref[3]

    def sigmoid(z):
        # 0.5*(1 + tanh(0.5*z)): a single EUP transcendental per element.
        return 0.5 * (1.0 + jnp.tanh(0.5 * z))

    def step(tt, carry):
        h, c = carry
        gx_t = gx_ref[tt]                        # (4, B_TILE, H) aligned slabs
        hb = h.astype(whh_ref.dtype)             # bf16 operand for the MXU

        if fused:
            pre_all = jnp.dot(hb, w_all, preferred_element_type=jnp.float32)
            pre_i = gx_t[0] + pre_all[:, 0 * hidden:1 * hidden]
            pre_f = gx_t[1] + pre_all[:, 1 * hidden:2 * hidden]
            pre_g = gx_t[2] + pre_all[:, 2 * hidden:3 * hidden]
            pre_o = gx_t[3] + pre_all[:, 3 * hidden:4 * hidden]
        else:
            pre_i = gx_t[0] + jnp.dot(hb, w_i, preferred_element_type=jnp.float32)
            pre_f = gx_t[1] + jnp.dot(hb, w_f, preferred_element_type=jnp.float32)
            pre_g = gx_t[2] + jnp.dot(hb, w_g, preferred_element_type=jnp.float32)
            pre_o = gx_t[3] + jnp.dot(hb, w_o, preferred_element_type=jnp.float32)

        gate_i = sigmoid(pre_i)
        gate_f = sigmoid(pre_f)
        gate_c = jnp.tanh(pre_g)
        gate_o = sigmoid(pre_o)

        c1 = gate_f * c + gate_i * gate_c
        h1 = gate_o * jnp.tanh(c1)

        h_out_ref[tt] = h1                       # lane-dense (B_TILE, H) store
        return (h1, c1)

    h_fin, c_fin = lax.fori_loop(0, t_blk, step, (h_scr[...], c_scr[...]),
                                 unroll=True)
    h_scr[...] = h_fin
    c_scr[...] = c_fin


def cpu_lstm_model_forward(x, params, *, t_blk=16, b_tile=None):
    """x: (nt, ngrid, nx) f32 -> out: (nt, ngrid, ny) f32."""
    nt, ngrid, nx = x.shape
    w_in_t = params["w_in_t"]     # (nx, H)
    b_in = params["b_in"]         # (1, H)
    w_ih_t = params["w_ih_t"]     # (H, 4H)
    b_g = params["b_g"]           # (1, 4H)  == b_ih + b_hh
    w_hh_t = params["w_hh_t"]     # (H, 4H) bf16 recurrent weights
    w_out_t = params["w_out_t"]   # (H, ny)
    b_out = params["b_out"]       # (1, ny)
    hidden = w_in_t.shape[1]
    ny = w_out_t.shape[1]

    # ---- non-recurrent work hoisted out of the sequential kernel (XLA) ----
    x2 = x.reshape(nt * ngrid, nx).astype(jnp.float32)
    x0 = jnp.maximum(
        jnp.dot(x2, w_in_t, preferred_element_type=jnp.float32) + b_in, 0.0)
    gx = jnp.dot(x0, w_ih_t, preferred_element_type=jnp.float32) + b_g
    # (nt, ngrid, 4, H) -> (nt, 4, ngrid, H): each gate gets its own aligned slab.
    gx = gx.reshape(nt, ngrid, 4, hidden).transpose(0, 2, 1, 3)

    # ---- recurrent-weight layout: fuse gate matmuls when slices stay lane-aligned
    fused = (hidden % 128 == 0)
    if fused:
        w_hh_kernel = w_hh_t                                           # (H, 4H)
        w_spec = pl.BlockSpec((hidden, 4 * hidden), lambda b, t: (0, 0))
    else:
        w_hh_kernel = w_hh_t.reshape(hidden, 4, hidden).transpose(1, 0, 2)  # (4,H,H)
        w_spec = pl.BlockSpec((4, hidden, hidden), lambda b, t: (0, 0, 0))

    # ---- tiling / padding ----
    t_blk = max(1, min(t_blk, nt))
    nt_pad = _round_up(nt, t_blk)
    if b_tile is None:
        b_tile = 256 if ngrid >= 256 else _round_up(ngrid, 8)
    b_tile = _round_up(b_tile, 8)
    ngrid_pad = _round_up(ngrid, b_tile)
    if nt_pad != nt or ngrid_pad != ngrid:
        gx = jnp.pad(gx, ((0, nt_pad - nt), (0, 0),
                          (0, ngrid_pad - ngrid), (0, 0)))

    n_b = ngrid_pad // b_tile
    n_t = nt_pad // t_blk

    # Explicit VMEM budget (double-buffered gx/out blocks + weights + scratch),
    # capped below v7x's 64 MiB physical VMEM.
    vmem_need = (2 * t_blk * 4 * b_tile * hidden * 4          # gx blocks
                 + 2 * 4 * hidden * hidden * 2                # bf16 weights
                 + 2 * t_blk * b_tile * hidden * 4            # out blocks
                 + 2 * b_tile * hidden * 4                    # h/c scratch
                 + (4 << 20))
    vmem_limit = int(min(max(vmem_need, 32 << 20), 64 << 20))

    grid_spec = pltpu.PrefetchScalarGridSpec(
        num_scalar_prefetch=0,
        grid=(n_b, n_t),
        in_specs=[
            pl.BlockSpec((t_blk, 4, b_tile, hidden), lambda b, t: (t, 0, b, 0)),
            w_spec,
        ],
        out_specs=pl.BlockSpec((t_blk, b_tile, hidden), lambda b, t: (t, b, 0)),
        scratch_shapes=[
            pltpu.VMEM((b_tile, hidden), jnp.float32),   # h carry
            pltpu.VMEM((b_tile, hidden), jnp.float32),   # c carry
        ],
    )

    h_all = pl.pallas_call(
        functools.partial(_lstm_recurrence_kernel, fused=fused),
        out_shape=jax.ShapeDtypeStruct((nt_pad, ngrid_pad, hidden), jnp.float32),
        grid_spec=grid_spec,
        compiler_params=pltpu.CompilerParams(
            dimension_semantics=("parallel", "arbitrary"),
            vmem_limit_bytes=vmem_limit,
        ),
    )(gx, w_hh_kernel)

    h_all = h_all[:nt, :ngrid]                                # (nt, ngrid, H)

    # ---- output projection hoisted out of the kernel (one big matmul) ----
    y = jnp.dot(h_all.reshape(nt * ngrid, hidden), w_out_t,
                preferred_element_type=jnp.float32) + b_out
    return y.reshape(nt, ngrid, ny)


def init_params(key, nx, ny, hidden):
    """Deterministic synthetic parameter init (uniform(-stdv, stdv))."""
    stdv = 1.0 / math.sqrt(hidden)
    ks = jax.random.split(key, 8)
    u = lambda k, shape: jax.random.uniform(k, shape, jnp.float32, -stdv, stdv)
    # torch shapes: linearIn.weight (H, nx), linearIn.bias (H,)
    #               w_ih (4H, H), w_hh (4H, H), b_ih (4H,), b_hh (4H,)
    #               linearOut.weight (ny, H), linearOut.bias (ny,)
    w_in = u(ks[0], (hidden, nx))
    b_in = u(ks[1], (hidden,))
    w_ih = u(ks[2], (4 * hidden, hidden))
    w_hh = u(ks[3], (4 * hidden, hidden))
    b_ih = u(ks[4], (4 * hidden,))
    b_hh = u(ks[5], (4 * hidden,))
    w_out = u(ks[6], (ny, hidden))
    b_out = u(ks[7], (ny,))
    return {
        "w_in_t": w_in.T,                         # (nx, H)
        "b_in": b_in[None, :],                    # (1, H)
        "w_ih_t": w_ih.T,                         # (H, 4H)
        "b_g": (b_ih + b_hh)[None, :],            # (1, 4H)
        "w_hh_t": w_hh.T.astype(jnp.bfloat16),    # (H, 4H) bf16 recurrent weights
        "w_out_t": w_out.T,                       # (H, ny)
        "b_out": b_out[None, :],                  # (1, ny)
    }


def reference_forward(x, params):
    """Plain-JAX reference mirroring the PyTorch loop (eval mode).

    Uses the same bf16 recurrent-weight precision as the kernel so the
    comparison isolates kernel correctness, not mixed-precision policy.
    """
    nt, ngrid, nx = x.shape
    hidden = params["w_in_t"].shape[1]
    w_hh_t = params["w_hh_t"]                    # (H, 4H) bf16

    x0 = jnp.maximum(jnp.einsum('tbn,nh->tbh', x, params["w_in_t"])
                     + params["b_in"], 0.0)
    gx = jnp.einsum('tbh,hg->tbg', x0, params["w_ih_t"]) + params["b_g"]

    def step(carry, gx_t):
        h, c = carry
        hb = h.astype(w_hh_t.dtype)
        pre = gx_t + jnp.dot(hb, w_hh_t, preferred_element_type=jnp.float32)
        gi = jax.nn.sigmoid(pre[:, 0 * hidden:1 * hidden])
        gf = jax.nn.sigmoid(pre[:, 1 * hidden:2 * hidden])
        gg = jnp.tanh(pre[:, 2 * hidden:3 * hidden])
        go = jax.nn.sigmoid(pre[:, 3 * hidden:4 * hidden])
        c1 = gf * c + gi * gg
        h1 = go * jnp.tanh(c1)
        y = jnp.dot(h1, params["w_out_t"]) + params["b_out"]
        return (h1, c1), y

    init = (jnp.zeros((ngrid, hidden), jnp.float32),
            jnp.zeros((ngrid, hidden), jnp.float32))
    _, ys = lax.scan(step, init, gx)
    return ys


def _run_case(key, nt, ngrid, nx, hidden, ny, t_blk, b_tile):
    kx, kp = jax.random.split(key)
    x = jax.random.normal(kx, (nt, ngrid, nx), dtype=jnp.float32)
    params = init_params(kp, nx, ny, hidden)
    out = jax.block_until_ready(
        cpu_lstm_model_forward(x, params, t_blk=t_blk, b_tile=b_tile))
    ref = jax.block_until_ready(reference_forward(x, params))
    assert out.shape == (nt, ngrid, ny)
    assert jnp.allclose(out, ref, atol=5e-4, rtol=5e-4), "mismatch vs reference"


if __name__ == "__main__":
    key = jax.random.PRNGKey(0)
    k1, k2 = jax.random.split(key)

    # Case 1: small hidden (non-fused per-gate path), exercises time padding
    # (nt=24 with t_blk=16) and a single batch tile.
    _run_case(k1, nt=24, ngrid=16, nx=4, hidden=32, ny=2, t_blk=16, b_tile=None)

    # Case 2: hidden=128 (fused single-matmul path, lane-aligned gate slices),
    # exercises batch tiling (ngrid=24 with b_tile=16 -> padded to 2 tiles)
    # and multiple time blocks.
    _run_case(k2, nt=20, ngrid=24, nx=6, hidden=128, ny=3, t_blk=8, b_tile=16)

    print("KERNEL_OK")
</pallas_src>

<mosaic_0001>
module attributes {stable_mosaic.version = 11 : i64} {
  func.func @_lstm_recurrence_kernel(%arg0: i32, %arg1: i32, %arg2: memref<16x4x16x32xf32, #tpu.memory_space<vmem>>, %arg3: memref<4x32x32xbf16, #tpu.memory_space<vmem>>, %arg4: memref<16x16x32xf32, #tpu.memory_space<vmem>>, %arg5: memref<16x32xf32, #tpu.memory_space<vmem>>, %arg6: memref<16x32xf32, #tpu.memory_space<vmem>>) attributes {dimension_semantics = [#tpu.dimension_semantics<parallel>, #tpu.dimension_semantics<arbitrary>], iteration_bounds = array<i64: 1, 2>, scalar_prefetch = 0 : i64, scratch_operands = 2 : i64, tpu.core_type = #tpu.core_type<tc>, window_params = [{transform_indices = @transform_0, window_bounds = array<i64: 16, 4, 16, 32>}, {pipeline_mode = #tpu.pipeline_mode<synchronous>, transform_indices = @transform_1, window_bounds = array<i64: 4, 32, 32>}, {transform_indices = @transform_2, window_bounds = array<i64: 16, 16, 32>}]} {
    %c0_i32 = arith.constant 0 : i32
    %0 = arith.cmpi eq, %arg1, %c0_i32 : i32
    %1 = arith.extui %0 : i1 to i32
    %c0_i32_0 = arith.constant 0 : i32
    %2 = arith.cmpi ne, %1, %c0_i32_0 : i32
    scf.if %2 {
      %cst_305 = arith.constant 0.000000e+00 : f32
      %831 = vector.broadcast %cst_305 : f32 to vector<16x32xf32>
      %c0_306 = arith.constant 0 : index
      %c0_307 = arith.constant 0 : index
      %832 = vector.load %arg5[%c0_306, %c0_307] : memref<16x32xf32, #tpu.memory_space<vmem>>, vector<16x32xf32>
      tpu.vector_store %arg5[%c0_306, %c0_307], %831 {strides = array<i32>} : memref<16x32xf32, #tpu.memory_space<vmem>>, vector<16x32xf32>,
      %cst_308 = arith.constant 0.000000e+00 : f32
      %833 = vector.broadcast %cst_308 : f32 to vector<16x32xf32>
      %c0_309 = arith.constant 0 : index
      %c0_310 = arith.constant 0 : index
      %834 = vector.load %arg6[%c0_309, %c0_310] : memref<16x32xf32, #tpu.memory_space<vmem>>, vector<16x32xf32>
      tpu.vector_store %arg6[%c0_309, %c0_310], %833 {strides = array<i32>} : memref<16x32xf32, #tpu.memory_space<vmem>>, vector<16x32xf32>,
    } else {
    }
    %c0 = arith.constant 0 : index
    %c0_1 = arith.constant 0 : index
    %c0_2 = arith.constant 0 : index
    %3 = vector.load %arg3[%c0, %c0_1, %c0_2] : memref<4x32x32xbf16, #tpu.memory_space<vmem>>, vector<1x32x32xbf16>
    %4 = vector.shape_cast %3 : vector<1x32x32xbf16> to vector<32x32xbf16>
    %c1 = arith.constant 1 : index
    %c0_3 = arith.constant 0 : index
    %c0_4 = arith.constant 0 : index
    %5 = vector.load %arg3[%c1, %c0_3, %c0_4] : memref<4x32x32xbf16, #tpu.memory_space<vmem>>, vector<1x32x32xbf16>
    %6 = vector.shape_cast %5 : vector<1x32x32xbf16> to vector<32x32xbf16>
    %c2 = arith.constant 2 : index
    %c0_5 = arith.constant 0 : index
    %c0_6 = arith.constant 0 : index
    %7 = vector.load %arg3[%c2, %c0_5, %c0_6] : memref<4x32x32xbf16, #tpu.memory_space<vmem>>, vector<1x32x32xbf16>
    %8 = vector.shape_cast %7 : vector<1x32x32xbf16> to vector<32x32xbf16>
    %c3 = arith.constant 3 : index
    %c0_7 = arith.constant 0 : index
    %c0_8 = arith.constant 0 : index
    %9 = vector.load %arg3[%c3, %c0_7, %c0_8] : memref<4x32x32xbf16, #tpu.memory_space<vmem>>, vector<1x32x32xbf16>
    %10 = vector.shape_cast %9 : vector<1x32x32xbf16> to vector<32x32xbf16>
    %c0_9 = arith.constant 0 : index
    %c0_10 = arith.constant 0 : index
    %11 = vector.load %arg5[%c0_9, %c0_10] : memref<16x32xf32, #tpu.memory_space<vmem>>, vector<16x32xf32>
    %c0_11 = arith.constant 0 : index
    %c0_12 = arith.constant 0 : index
    %12 = vector.load %arg6[%c0_11, %c0_12] : memref<16x32xf32, #tpu.memory_space<vmem>>, vector<16x32xf32>
    %c0_i32_13 = arith.constant 0 : i32
    %13 = arith.index_cast %c0_i32_13 : i32 to index
    %c0_14 = arith.constant 0 : index
    %c0_15 = arith.constant 0 : index
    %c0_16 = arith.constant 0 : index
    %14 = vector.load %arg2[%13, %c0_14, %c0_15, %c0_16] : memref<16x4x16x32xf32, #tpu.memory_space<vmem>>, vector<1x4x16x32xf32>
    %15 = vector.shape_cast %14 : vector<1x4x16x32xf32> to vector<4x16x32xf32>
    %16 = arith.truncf %11 : vector<16x32xf32> to vector<16x32xbf16>
    %17 = vector.extract_strided_slice %15 {offsets = [0, 0, 0], sizes = [1, 16, 32], strides = [1, 1, 1]} : vector<4x16x32xf32> to vector<1x16x32xf32>
    %18 = vector.shape_cast %17 : vector<1x16x32xf32> to vector<16x32xf32>
    %cst = arith.constant dense<0.000000e+00> : vector<16x32xf32>
    %19 = tpu.matmul %16, %4, %cst {dimension_numbers = #tpu.dot_dimension_numbers<[1], [0], [0], [1], [0, 0, 1, 1], [], []>} : vector<16x32xbf16>, vector<32x32xbf16>, vector<16x32xf32> -> vector<16x32xf32>
    %20 = arith.addf %18, %19 : vector<16x32xf32>
    %21 = vector.extract_strided_slice %15 {offsets = [1, 0, 0], sizes = [1, 16, 32], strides = [1, 1, 1]} : vector<4x16x32xf32> to vector<1x16x32xf32>
    %22 = vector.shape_cast %21 : vector<1x16x32xf32> to vector<16x32xf32>
    %cst_17 = arith.constant dense<0.000000e+00> : vector<16x32xf32>
    %23 = tpu.matmul %16, %6, %cst_17 {dimension_numbers = #tpu.dot_dimension_numbers<[1], [0], [0], [1], [0, 0, 1, 1], [], []>} : vector<16x32xbf16>, vector<32x32xbf16>, vector<16x32xf32> -> vector<16x32xf32>
    %24 = arith.addf %22, %23 : vector<16x32xf32>
    %25 = vector.extract_strided_slice %15 {offsets = [2, 0, 0], sizes = [1, 16, 32], strides = [1, 1, 1]} : vector<4x16x32xf32> to vector<1x16x32xf32>
    %26 = vector.shape_cast %25 : vector<1x16x32xf32> to vector<16x32xf32>
    %cst_18 = arith.constant dense<0.000000e+00> : vector<16x32xf32>
    %27 = tpu.matmul %16, %8, %cst_18 {dimension_numbers = #tpu.dot_dimension_numbers<[1], [0], [0], [1], [0, 0, 1, 1], [], []>} : vector<16x32xbf16>, vector<32x32xbf16>, vector<16x32xf32> -> vector<16x32xf32>
    %28 = arith.addf %26, %27 : vector<16x32xf32>
    %29 = vector.extract_strided_slice %15 {offsets = [3, 0, 0], sizes = [1, 16, 32], strides = [1, 1, 1]} : vector<4x16x32xf32> to vector<1x16x32xf32>
    %30 = vector.shape_cast %29 : vector<1x16x32xf32> to vector<16x32xf32>
    %cst_19 = arith.constant dense<0.000000e+00> : vector<16x32xf32>
    %31 = tpu.matmul %16, %10, %cst_19 {dimension_numbers = #tpu.dot_dimension_numbers<[1], [0], [0], [1], [0, 0, 1, 1], [], []>} : vector<16x32xbf16>, vector<32x32xbf16>, vector<16x32xf32> -> vector<16x32xf32>
    %32 = arith.addf %30, %31 : vector<16x32xf32>
    %cst_20 = arith.constant 5.000000e-01 : f32
    %33 = vector.broadcast %cst_20 : f32 to vector<16x32xf32>
    %34 = arith.mulf %33, %20 : vector<16x32xf32>
    %35 = math.tanh %34 : vector<16x32xf32>
    %cst_21 = arith.constant 1.000000e+00 : f32
    %36 = vector.broadcast %cst_21 : f32 to vector<16x32xf32>
    %37 = arith.addf %36, %35 : vector<16x32xf32>
    %cst_22 = arith.constant 5.000000e-01 : f32
    %38 = vector.broadcast %cst_22 : f32 to vector<16x32xf32>
    %39 = arith.mulf %38, %37 : vector<16x32xf32>
    %cst_23 = arith.constant 5.000000e-01 : f32
    %40 = vector.broadcast %cst_23 : f32 to vector<16x32xf32>
    %41 = arith.mulf %40, %24 : vector<16x32xf32>
    %42 = math.tanh %41 : vector<16x32xf32>
    %cst_24 = arith.constant 1.000000e+00 : f32
    %43 = vector.broadcast %cst_24 : f32 to vector<16x32xf32>
    %44 = arith.addf %43, %42 : vector<16x32xf32>
    %cst_25 = arith.constant 5.000000e-01 : f32
    %45 = vector.broadcast %cst_25 : f32 to vector<16x32xf32>
    %46 = arith.mulf %45, %44 : vector<16x32xf32>
    %47 = math.tanh %28 : vector<16x32xf32>
    %cst_26 = arith.constant 5.000000e-01 : f32
    %48 = vector.broadcast %cst_26 : f32 to vector<16x32xf32>
    %49 = arith.mulf %48, %32 : vector<16x32xf32>
    %50 = math.tanh %49 : vector<16x32xf32>
    %cst_27 = arith.constant 1.000000e+00 : f32
    %51 = vector.broadcast %cst_27 : f32 to vector<16x32xf32>
    %52 = arith.addf %51, %50 : vector<16x32xf32>
    %cst_28 = arith.constant 5.000000e-01 : f32
    %53 = vector.broadcast %cst_28 : f32 to vector<16x32xf32>
    %54 = arith.mulf %53, %52 : vector<16x32xf32>
    %55 = arith.mulf %46, %12 : vector<16x32xf32>
    %56 = arith.mulf %39, %47 : vector<16x32xf32>
    %57 = arith.addf %55, %56 : vector<16x32xf32>
    %58 = math.tanh %57 : vector<16x32xf32>
    %59 = arith.mulf %54, %58 : vector<16x32xf32>
    %60 = arith.index_cast %c0_i32_13 : i32 to index
    %c0_29 = arith.constant 0 : index
    %c0_30 = arith.constant 0 : index
    %61 = vector.load %arg4[%60, %c0_29, %c0_30] : memref<16x16x32xf32, #tpu.memory_space<vmem>>, vector<1x16x32xf32>
    %62 = vector.shape_cast %61 : vector<1x16x32xf32> to vector<16x32xf32>
    %63 = vector.shape_cast %59 : vector<16x32xf32> to vector<1x16x32xf32>
    tpu.vector_store %arg4[%60, %c0_29, %c0_30], %63 {strides = array<i32>} : memref<16x16x32xf32, #tpu.memory_space<vmem>>, vector<1x16x32xf32>,
    %c1_i32 = arith.constant 1 : i32
    %64 = arith.index_cast %c1_i32 : i32 to index
    %c0_31 = arith.constant 0 : index
    %c0_32 = arith.constant 0 : index
    %c0_33 = arith.constant 0 : index
    %65 = vector.load %arg2[%64, %c0_31, %c0_32, %c0_33] : memref<16x4x16x32xf32, #tpu.memory_space<vmem>>, vector<1x4x16x32xf32>
    %66 = vector.shape_cast %65 : vector<1x4x16x32xf32> to vector<4x16x32xf32>
    %67 = arith.truncf %59 : vector<16x32xf32> to vector<16x32xbf16>
    %68 = vector.extract_strided_slice %66 {offsets = [0, 0, 0], sizes = [1, 16, 32], strides = [1, 1, 1]} : vector<4x16x32xf32> to vector<1x16x32xf32>
    %69 = vector.shape_cast %68 : vector<1x16x32xf32> to vector<16x32xf32>
    %cst_34 = arith.constant dense<0.000000e+00> : vector<16x32xf32>
    %70 = tpu.matmul %67, %4, %cst_34 {dimension_numbers = #tpu.dot_dimension_numbers<[1], [0], [0], [1], [0, 0, 1, 1], [], []>} : vector<16x32xbf16>, vector<32x32xbf16>, vector<16x32xf32> -> vector<16x32xf32>
    %71 = arith.addf %69, %70 : vector<16x32xf32>
    %72 = vector.extract_strided_slice %66 {offsets = [1, 0, 0], sizes = [1, 16, 32], strides = [1, 1, 1]} : vector<4x16x32xf32> to vector<1x16x32xf32>
    %73 = vector.shape_cast %72 : vector<1x16x32xf32> to vector<16x32xf32>
    %cst_35 = arith.constant dense<0.000000e+00> : vector<16x32xf32>
    %74 = tpu.matmul %67, %6, %cst_35 {dimension_numbers = #tpu.dot_dimension_numbers<[1], [0], [0], [1], [0, 0, 1, 1], [], []>} : vector<16x32xbf16>, vector<32x32xbf16>, vector<16x32xf32> -> vector<16x32xf32>
    %75 = arith.addf %73, %74 : vector<16x32xf32>
    %76 = vector.extract_strided_slice %66 {offsets = [2, 0, 0], sizes = [1, 16, 32], strides = [1, 1, 1]} : vector<4x16x32xf32> to vector<1x16x32xf32>
    %77 = vector.shape_cast %76 : vector<1x16x32xf32> to vector<16x32xf32>
    %cst_36 = arith.constant dense<0.000000e+00> : vector<16x32xf32>
    %78 = tpu.matmul %67, %8, %cst_36 {dimension_numbers = #tpu.dot_dimension_numbers<[1], [0], [0], [1], [0, 0, 1, 1], [], []>} : vector<16x32xbf16>, vector<32x32xbf16>, vector<16x32xf32> -> vector<16x32xf32>
    %79 = arith.addf %77, %78 : vector<16x32xf32>
    %80 = vector.extract_strided_slice %66 {offsets = [3, 0, 0], sizes = [1, 16, 32], strides = [1, 1, 1]} : vector<4x16x32xf32> to vector<1x16x32xf32>
    %81 = vector.shape_cast %80 : vector<1x16x32xf32> to vector<16x32xf32>
    %cst_37 = arith.constant dense<0.000000e+00> : vector<16x32xf32>
    %82 = tpu.matmul %67, %10, %cst_37 {dimension_numbers = #tpu.dot_dimension_numbers<[1], [0], [0], [1], [0, 0, 1, 1], [], []>} : vector<16x32xbf16>, vector<32x32xbf16>, vector<16x32xf32> -> vector<16x32xf32>
    %83 = arith.addf %81, %82 : vector<16x32xf32>
    %cst_38 = arith.constant 5.000000e-01 : f32
    %84 = vector.broadcast %cst_38 : f32 to vector<16x32xf32>
    %85 = arith.mulf %84, %71 : vector<16x32xf32>
    %86 = math.tanh %85 : vector<16x32xf32>
    %cst_39 = arith.constant 1.000000e+00 : f32
    %87 = vector.broadcast %cst_39 : f32 to vector<16x32xf32>
    %88 = arith.addf %87, %86 : vector<16x32xf32>
    %cst_40 = arith.constant 5.000000e-01 : f32
    %89 = vector.broadcast %cst_40 : f32 to vector<16x32xf32>
    %90 = arith.mulf %89, %88 : vector<16x32xf32>
    %cst_41 = arith.constant 5.000000e-01 : f32
    %91 = vector.broadcast %cst_41 : f32 to vector<16x32xf32>
    %92 = arith.mulf %91, %75 : vector<16x32xf32>
    %93 = math.tanh %92 : vector<16x32xf32>
    %cst_42 = arith.constant 1.000000e+00 : f32
    %94 = vector.broadcast %cst_42 : f32 to vector<16x32xf32>
    %95 = arith.addf %94, %93 : vector<16x32xf32>
    %cst_43 = arith.constant 5.000000e-01 : f32
    %96 = vector.broadcast %cst_43 : f32 to vector<16x32xf32>
    %97 = arith.mulf %96, %95 : vector<16x32xf32>
    %98 = math.tanh %79 : vector<16x32xf32>
    %cst_44 = arith.constant 5.000000e-01 : f32
    %99 = vector.broadcast %cst_44 : f32 to vector<16x32xf32>
    %100 = arith.mulf %99, %83 : vector<16x32xf32>
    %101 = math.tanh %100 : vector<16x32xf32>
    %cst_45 = arith.constant 1.000000e+00 : f32
    %102 = vector.broadcast %cst_45 : f32 to vector<16x32xf32>
    %103 = arith.addf %102, %101 : vector<16x32xf32>
    %cst_46 = arith.constant 5.000000e-01 : f32
    %104 = vector.broadcast %cst_46 : f32 to vector<16x32xf32>
    %105 = arith.mulf %104, %103 : vector<16x32xf32>
    %106 = arith.mulf %97, %57 : vector<16x32xf32>
    %107 = arith.mulf %90, %98 : vector<16x32xf32>
    %108 = arith.addf %106, %107 : vector<16x32xf32>
    %109 = math.tanh %108 : vector<16x32xf32>
    %110 = arith.mulf %105, %109 : vector<16x32xf32>
    %111 = arith.index_cast %c1_i32 : i32 to index
    %c0_47 = arith.constant 0 : index
    %c0_48 = arith.constant 0 : index
    %112 = vector.load %arg4[%111, %c0_47, %c0_48] : memref<16x16x32xf32, #tpu.memory_space<vmem>>, vector<1x16x32xf32>
    %113 = vector.shape_cast %112 : vector<1x16x32xf32> to vector<16x32xf32>
    %114 = vector.shape_cast %110 : vector<16x32xf32> to vector<1x16x32xf32>
    tpu.vector_store %arg4[%111, %c0_47, %c0_48], %114 {strides = array<i32>} : memref<16x16x32xf32, #tpu.memory_space<vmem>>, vector<1x16x32xf32>,
    %c2_i32 = arith.constant 2 : i32
    %115 = arith.index_cast %c2_i32 : i32 to index
    %c0_49 = arith.constant 0 : index
    %c0_50 = arith.constant 0 : index
    %c0_51 = arith.constant 0 : index
    %116 = vector.load %arg2[%115, %c0_49, %c0_50, %c0_51] : memref<16x4x16x32xf32, #tpu.memory_space<vmem>>, vector<1x4x16x32xf32>
    %117 = vector.shape_cast %116 : vector<1x4x16x32xf32> to vector<4x16x32xf32>
    %118 = arith.truncf %110 : vector<16x32xf32> to vector<16x32xbf16>
    %119 = vector.extract_strided_slice %117 {offsets = [0, 0, 0], sizes = [1, 16, 32], strides = [1, 1, 1]} : vector<4x16x32xf32> to vector<1x16x32xf32>
    %120 = vector.shape_cast %119 : vector<1x16x32xf32> to vector<16x32xf32>
    %cst_52 = arith.constant dense<0.000000e+00> : vector<16x32xf32>
    %121 = tpu.matmul %118, %4, %cst_52 {dimension_numbers = #tpu.dot_dimension_numbers<[1], [0], [0], [1], [0, 0, 1, 1], [], []>} : vector<16x32xbf16>, vector<32x32xbf16>, vector<16x32xf32> -> vector<16x32xf32>
    %122 = arith.addf %120, %121 : vector<16x32xf32>
    %123 = vector.extract_strided_slice %117 {offsets = [1, 0, 0], sizes = [1, 16, 32], strides = [1, 1, 1]} : vector<4x16x32xf32> to vector<1x16x32xf32>
    %124 = vector.shape_cast %123 : vector<1x16x32xf32> to vector<16x32xf32>
    %cst_53 = arith.constant dense<0.000000e+00> : vector<16x32xf32>
    %125 = tpu.matmul %118, %6, %cst_53 {dimension_numbers = #tpu.dot_dimension_numbers<[1], [0], [0], [1], [0, 0, 1, 1], [], []>} : vector<16x32xbf16>, vector<32x32xbf16>, vector<16x32xf32> -> vector<16x32xf32>
    %126 = arith.addf %124, %125 : vector<16x32xf32>
    %127 = vector.extract_strided_slice %117 {offsets = [2, 0, 0], sizes = [1, 16, 32], strides = [1, 1, 1]} : vector<4x16x32xf32> to vector<1x16x32xf32>
    %128 = vector.shape_cast %127 : vector<1x16x32xf32> to vector<16x32xf32>
    %cst_54 = arith.constant dense<0.000000e+00> : vector<16x32xf32>
    %129 = tpu.matmul %118, %8, %cst_54 {dimension_numbers = #tpu.dot_dimension_numbers<[1], [0], [0], [1], [0, 0, 1, 1], [], []>} : vector<16x32xbf16>, vector<32x32xbf16>, vector<16x32xf32> -> vector<16x32xf32>
    %130 = arith.addf %128, %129 : vector<16x32xf32>
    %131 = vector.extract_strided_slice %117 {offsets = [3, 0, 0], sizes = [1, 16, 32], strides = [1, 1, 1]} : vector<4x16x32xf32> to vector<1x16x32xf32>
    %132 = vector.shape_cast %131 : vector<1x16x32xf32> to vector<16x32xf32>
    %cst_55 = arith.constant dense<0.000000e+00> : vector<16x32xf32>
    %133 = tpu.matmul %118, %10, %cst_55 {dimension_numbers = #tpu.dot_dimension_numbers<[1], [0], [0], [1], [0, 0, 1, 1], [], []>} : vector<16x32xbf16>, vector<32x32xbf16>, vector<16x32xf32> -> vector<16x32xf32>
    %134 = arith.addf %132, %133 : vector<16x32xf32>
    %cst_56 = arith.constant 5.000000e-01 : f32
    %135 = vector.broadcast %cst_56 : f32 to vector<16x32xf32>
    %136 = arith.mulf %135, %122 : vector<16x32xf32>
    %137 = math.tanh %136 : vector<16x32xf32>
    %cst_57 = arith.constant 1.000000e+00 : f32
    %138 = vector.broadcast %cst_57 : f32 to vector<16x32xf32>
    %139 = arith.addf %138, %137 : vector<16x32xf32>
    %cst_58 = arith.constant 5.000000e-01 : f32
    %140 = vector.broadcast %cst_58 : f32 to vector<16x32xf32>
    %141 = arith.mulf %140, %139 : vector<16x32xf32>
    %cst_59 = arith.constant 5.000000e-01 : f32
    %142 = vector.broadcast %cst_59 : f32 to vector<16x32xf32>
    %143 = arith.mulf %142, %126 : vector<16x32xf32>
    %144 = math.tanh %143 : vector<16x32xf32>
    %cst_60 = arith.constant 1.000000e+00 : f32
    %145 = vector.broadcast %cst_60 : f32 to vector<16x32xf32>
    %146 = arith.addf %145, %144 : vector<16x32xf32>
    %cst_61 = arith.constant 5.000000e-01 : f32
    %147 = vector.broadcast %cst_61 : f32 to vector<16x32xf32>
    %148 = arith.mulf %147, %146 : vector<16x32xf32>
    %149 = math.tanh %130 : vector<16x32xf32>
    %cst_62 = arith.constant 5.000000e-01 : f32
    %150 = vector.broadcast %cst_62 : f32 to vector<16x32xf32>
    %151 = arith.mulf %150, %134 : vector<16x32xf32>
    %152 = math.tanh %151 : vector<16x32xf32>
    %cst_63 = arith.constant 1.000000e+00 : f32
    %153 = vector.broadcast %cst_63 : f32 to vector<16x32xf32>
    %154 = arith.addf %153, %152 : vector<16x32xf32>
    %cst_64 = arith.constant 5.000000e-01 : f32
    %155 = vector.broadcast %cst_64 : f32 to vector<16x32xf32>
    %156 = arith.mulf %155, %154 : vector<16x32xf32>
    %157 = arith.mulf %148, %108 : vector<16x32xf32>
    %158 = arith.mulf %141, %149 : vector<16x32xf32>
    %159 = arith.addf %157, %158 : vector<16x32xf32>
    %160 = math.tanh %159 : vector<16x32xf32>
    %161 = arith.mulf %156, %160 : vector<16x32xf32>
    %162 = arith.index_cast %c2_i32 : i32 to index
    %c0_65 = arith.constant 0 : index
    %c0_66 = arith.constant 0 : index
    %163 = vector.load %arg4[%162, %c0_65, %c0_66] : memref<16x16x32xf32, #tpu.memory_space<vmem>>, vector<1x16x32xf32>
    %164 = vector.shape_cast %163 : vector<1x16x32xf32> to vector<16x32xf32>
    %165 = vector.shape_cast %161 : vector<16x32xf32> to vector<1x16x32xf32>
    tpu.vector_store %arg4[%162, %c0_65, %c0_66], %165 {strides = array<i32>} : memref<16x16x32xf32, #tpu.memory_space<vmem>>, vector<1x16x32xf32>,
    %c3_i32 = arith.constant 3 : i32
    %166 = arith.index_cast %c3_i32 : i32 to index
    %c0_67 = arith.constant 0 : index
    %c0_68 = arith.constant 0 : index
    %c0_69 = arith.constant 0 : index
    %167 = vector.load %arg2[%166, %c0_67, %c0_68, %c0_69] : memref<16x4x16x32xf32, #tpu.memory_space<vmem>>, vector<1x4x16x32xf32>
    %168 = vector.shape_cast %167 : vector<1x4x16x32xf32> to vector<4x16x32xf32>
    %169 = arith.truncf %161 : vector<16x32xf32> to vector<16x32xbf16>
    %170 = vector.extract_strided_slice %168 {offsets = [0, 0, 0], sizes = [1, 16, 32], strides = [1, 1, 1]} : vector<4x16x32xf32> to vector<1x16x32xf32>
    %171 = vector.shape_cast %170 : vector<1x16x32xf32> to vector<16x32xf32>
    %cst_70 = arith.constant dense<0.000000e+00> : vector<16x32xf32>
    %172 = tpu.matmul %169, %4, %cst_70 {dimension_numbers = #tpu.dot_dimension_numbers<[1], [0], [0], [1], [0, 0, 1, 1], [], []>} : vector<16x32xbf16>, vector<32x32xbf16>, vector<16x32xf32> -> vector<16x32xf32>
    %173 = arith.addf %171, %172 : vector<16x32xf32>
    %174 = vector.extract_strided_slice %168 {offsets = [1, 0, 0], sizes = [1, 16, 32], strides = [1, 1, 1]} : vector<4x16x32xf32> to vector<1x16x32xf32>
    %175 = vector.shape_cast %174 : vector<1x16x32xf32> to vector<16x32xf32>
    %cst_71 = arith.constant dense<0.000000e+00> : vector<16x32xf32>
    %176 = tpu.matmul %169, %6, %cst_71 {dimension_numbers = #tpu.dot_dimension_numbers<[1], [0], [0], [1], [0, 0, 1, 1], [], []>} : vector<16x32xbf16>, vector<32x32xbf16>, vector<16x32xf32> -> vector<16x32xf32>
    %177 = arith.addf %175, %176 : vector<16x32xf32>
    %178 = vector.extract_strided_slice %168 {offsets = [2, 0, 0], sizes = [1, 16, 32], strides = [1, 1, 1]} : vector<4x16x32xf32> to vector<1x16x32xf32>
    %179 = vector.shape_cast %178 : vector<1x16x32xf32> to vector<16x32xf32>
    %cst_72 = arith.constant dense<0.000000e+00> : vector<16x32xf32>
    %180 = tpu.matmul %169, %8, %cst_72 {dimension_numbers = #tpu.dot_dimension_numbers<[1], [0], [0], [1], [0, 0, 1, 1], [], []>} : vector<16x32xbf16>, vector<32x32xbf16>, vector<16x32xf32> -> vector<16x32xf32>
    %181 = arith.addf %179, %180 : vector<16x32xf32>
    %182 = vector.extract_strided_slice %168 {offsets = [3, 0, 0], sizes = [1, 16, 32], strides = [1, 1, 1]} : vector<4x16x32xf32> to vector<1x16x32xf32>
    %183 = vector.shape_cast %182 : vector<1x16x32xf32> to vector<16x32xf32>
    %cst_73 = arith.constant dense<0.000000e+00> : vector<16x32xf32>
    %184 = tpu.matmul %169, %10, %cst_73 {dimension_numbers = #tpu.dot_dimension_numbers<[1], [0], [0], [1], [0, 0, 1, 1], [], []>} : vector<16x32xbf16>, vector<32x32xbf16>, vector<16x32xf32> -> vector<16x32xf32>
    %185 = arith.addf %183, %184 : vector<16x32xf32>
    %cst_74 = arith.constant 5.000000e-01 : f32
    %186 = vector.broadcast %cst_74 : f32 to vector<16x32xf32>
    %187 = arith.mulf %186, %173 : vector<16x32xf32>
    %188 = math.tanh %187 : vector<16x32xf32>
    %cst_75 = arith.constant 1.000000e+00 : f32
    %189 = vector.broadcast %cst_75 : f32 to vector<16x32xf32>
    %190 = arith.addf %189, %188 : vector<16x32xf32>
    %cst_76 = arith.constant 5.000000e-01 : f32
    %191 = vector.broadcast %cst_76 : f32 to vector<16x32xf32>
    %192 = arith.mulf %191, %190 : vector<16x32xf32>
    %cst_77 = arith.constant 5.000000e-01 : f32
    %193 = vector.broadcast %cst_77 : f32 to vector<16x32xf32>
    %194 = arith.mulf %193, %177 : vector<16x32xf32>
    %195 = math.tanh %194 : vector<16x32xf32>
    %cst_78 = arith.constant 1.000000e+00 : f32
    %196 = vector.broadcast %cst_78 : f32 to vector<16x32xf32>
    %197 = arith.addf %196, %195 : vector<16x32xf32>
    %cst_79 = arith.constant 5.000000e-01 : f32
    %198 = vector.broadcast %cst_79 : f32 to vector<16x32xf32>
    %199 = arith.mulf %198, %197 : vector<16x32xf32>
    %200 = math.tanh %181 : vector<16x32xf32>
    %cst_80 = arith.constant 5.000000e-01 : f32
    %201 = vector.broadcast %cst_80 : f32 to vector<16x32xf32>
    %202 = arith.mulf %201, %185 : vector<16x32xf32>
    %203 = math.tanh %202 : vector<16x32xf32>
    %cst_81 = arith.constant 1.000000e+00 : f32
    %204 = vector.broadcast %cst_81 : f32 to vector<16x32xf32>
    %205 = arith.addf %204, %203 : vector<16x32xf32>
    %cst_82 = arith.constant 5.000000e-01 : f32
    %206 = vector.broadcast %cst_82 : f32 to vector<16x32xf32>
    %207 = arith.mulf %206, %205 : vector<16x32xf32>
    %208 = arith.mulf %199, %159 : vector<16x32xf32>
    %209 = arith.mulf %192, %200 : vector<16x32xf32>
    %210 = arith.addf %208, %209 : vector<16x32xf32>
    %211 = math.tanh %210 : vector<16x32xf32>
    %212 = arith.mulf %207, %211 : vector<16x32xf32>
    %213 = arith.index_cast %c3_i32 : i32 to index
    %c0_83 = arith.constant 0 : index
    %c0_84 = arith.constant 0 : index
    %214 = vector.load %arg4[%213, %c0_83, %c0_84] : memref<16x16x32xf32, #tpu.memory_space<vmem>>, vector<1x16x32xf32>
    %215 = vector.shape_cast %214 : vector<1x16x32xf32> to vector<16x32xf32>
    %216 = vector.shape_cast %212 : vector<16x32xf32> to vector<1x16x32xf32>
    tpu.vector_store %arg4[%213, %c0_83, %c0_84], %216 {strides = array<i32>} : memref<16x16x32xf32, #tpu.memory_space<vmem>>, vector<1x16x32xf32>,
    %c4_i32 = arith.constant 4 : i32
    %217 = arith.index_cast %c4_i32 : i32 to index
    %c0_85 = arith.constant 0 : index
    %c0_86 = arith.constant 0 : index
    %c0_87 = arith.constant 0 : index
    %218 = vector.load %arg2[%217, %c0_85, %c0_86, %c0_87] : memref<16x4x16x32xf32, #tpu.memory_space<vmem>>, vector<1x4x16x32xf32>
    %219 = vector.shape_cast %218 : vector<1x4x16x32xf32> to vector<4x16x32xf32>
    %220 = arith.truncf %212 : vector<16x32xf32> to vector<16x32xbf16>
    %221 = vector.extract_strided_slice %219 {offsets = [0, 0, 0], sizes = [1, 16, 32], strides = [1, 1, 1]} : vector<4x16x32xf32> to vector<1x16x32xf32>
    %222 = vector.shape_cast %221 : vector<1x16x32xf32> to vector<16x32xf32>
    %cst_88 = arith.constant dense<0.000000e+00> : vector<16x32xf32>
    %223 = tpu.matmul %220, %4, %cst_88 {dimension_numbers = #tpu.dot_dimension_numbers<[1], [0], [0], [1], [0, 0, 1, 1], [], []>} : vector<16x32xbf16>, vector<32x32xbf16>, vector<16x32xf32> -> vector<16x32xf32>
    %224 = arith.addf %222, %223 : vector<16x32xf32>
    %225 = vector.extract_strided_slice %219 {offsets = [1, 0, 0], sizes = [1, 16, 32], strides = [1, 1, 1]} : vector<4x16x32xf32> to vector<1x16x32xf32>
    %226 = vector.shape_cast %225 : vector<1x16x32xf32> to vector<16x32xf32>
    %cst_89 = arith.constant dense<0.000000e+00> : vector<16x32xf32>
    %227 = tpu.matmul %220, %6, %cst_89 {dimension_numbers = #tpu.dot_dimension_numbers<[1], [0], [0], [1], [0, 0, 1, 1], [], []>} : vector<16x32xbf16>, vector<32x32xbf16>, vector<16x32xf32> -> vector<16x32xf32>
    %228 = arith.addf %226, %227 : vector<16x32xf32>
    %229 = vector.extract_strided_slice %219 {offsets = [2, 0, 0], sizes = [1, 16, 32], strides = [1, 1, 1]} : vector<4x16x32xf32> to vector<1x16x32xf32>
    %230 = vector.shape_cast %229 : vector<1x16x32xf32> to vector<16x32xf32>
    %cst_90 = arith.constant dense<0.000000e+00> : vector<16x32xf32>
    %231 = tpu.matmul %220, %8, %cst_90 {dimension_numbers = #tpu.dot_dimension_numbers<[1], [0], [0], [1], [0, 0, 1, 1], [], []>} : vector<16x32xbf16>, vector<32x32xbf16>, vector<16x32xf32> -> vector<16x32xf32>
    %232 = arith.addf %230, %231 : vector<16x32xf32>
    %233 = vector.extract_strided_slice %219 {offsets = [3, 0, 0], sizes = [1, 16, 32], strides = [1, 1, 1]} : vector<4x16x32xf32> to vector<1x16x32xf32>
    %234 = vector.shape_cast %233 : vector<1x16x32xf32> to vector<16x32xf32>
    %cst_91 = arith.constant dense<0.000000e+00> : vector<16x32xf32>
    %235 = tpu.matmul %220, %10, %cst_91 {dimension_numbers = #tpu.dot_dimension_numbers<[1], [0], [0], [1], [0, 0, 1, 1], [], []>} : vector<16x32xbf16>, vector<32x32xbf16>, vector<16x32xf32> -> vector<16x32xf32>
    %236 = arith.addf %234, %235 : vector<16x32xf32>
    %cst_92 = arith.constant 5.000000e-01 : f32
    %237 = vector.broadcast %cst_92 : f32 to vector<16x32xf32>
    %238 = arith.mulf %237, %224 : vector<16x32xf32>
    %239 = math.tanh %238 : vector<16x32xf32>
    %cst_93 = arith.constant 1.000000e+00 : f32
    %240 = vector.broadcast %cst_93 : f32 to vector<16x32xf32>
    %241 = arith.addf %240, %239 : vector<16x32xf32>
    %cst_94 = arith.constant 5.000000e-01 : f32
    %242 = vector.broadcast %cst_94 : f32 to vector<16x32xf32>
    %243 = arith.mulf %242, %241 : vector<16x32xf32>
    %cst_95 = arith.constant 5.000000e-01 : f32
    %244 = vector.broadcast %cst_95 : f32 to vector<16x32xf32>
    %245 = arith.mulf %244, %228 : vector<16x32xf32>
    %246 = math.tanh %245 : vector<16x32xf32>
    %cst_96 = arith.constant 1.000000e+00 : f32
    %247 = vector.broadcast %cst_96 : f32 to vector<16x32xf32>
    %248 = arith.addf %247, %246 : vector<16x32xf32>
    %cst_97 = arith.constant 5.000000e-01 : f32
    %249 = vector.broadcast %cst_97 : f32 to vector<16x32xf32>
    %250 = arith.mulf %249, %248 : vector<16x32xf32>
    %251 = math.tanh %232 : vector<16x32xf32>
    %cst_98 = arith.constant 5.000000e-01 : f32
    %252 = vector.broadcast %cst_98 : f32 to vector<16x32xf32>
    %253 = arith.mulf %252, %236 : vector<16x32xf32>
    %254 = math.tanh %253 : vector<16x32xf32>
    %cst_99 = arith.constant 1.000000e+00 : f32
    %255 = vector.broadcast %cst_99 : f32 to vector<16x32xf32>
    %256 = arith.addf %255, %254 : vector<16x32xf32>
    %cst_100 = arith.constant 5.000000e-01 : f32
    %257 = vector.broadcast %cst_100 : f32 to vector<16x32xf32>
    %258 = arith.mulf %257, %256 : vector<16x32xf32>
    %259 = arith.mulf %250, %210 : vector<16x32xf32>
    %260 = arith.mulf %243, %251 : vector<16x32xf32>
    %261 = arith.addf %259, %260 : vector<16x32xf32>
    %262 = math.tanh %261 : vector<16x32xf32>
    %263 = arith.mulf %258, %262 : vector<16x32xf32>
    %264 = arith.index_cast %c4_i32 : i32 to index
    %c0_101 = arith.constant 0 : index
    %c0_102 = arith.constant 0 : index
    %265 = vector.load %arg4[%264, %c0_101, %c0_102] : memref<16x16x32xf32, #tpu.memory_space<vmem>>, vector<1x16x32xf32>
    %266 = vector.shape_cast %265 : vector<1x16x32xf32> to vector<16x32xf32>
    %267 = vector.shape_cast %263 : vector<16x32xf32> to vector<1x16x32xf32>
    tpu.vector_store %arg4[%264, %c0_101, %c0_102], %267 {strides = array<i32>} : memref<16x16x32xf32, #tpu.memory_space<vmem>>, vector<1x16x32xf32>,
    %c5_i32 = arith.constant 5 : i32
    %268 = arith.index_cast %c5_i32 : i32 to index
    %c0_103 = arith.constant 0 : index
    %c0_104 = arith.constant 0 : index
    %c0_105 = arith.constant 0 : index
    %269 = vector.load %arg2[%268, %c0_103, %c0_104, %c0_105] : memref<16x4x16x32xf32, #tpu.memory_space<vmem>>, vector<1x4x16x32xf32>
    %270 = vector.shape_cast %269 : vector<1x4x16x32xf32> to vector<4x16x32xf32>
    %271 = arith.truncf %263 : vector<16x32xf32> to vector<16x32xbf16>
    %272 = vector.extract_strided_slice %270 {offsets = [0, 0, 0], sizes = [1, 16, 32], strides = [1, 1, 1]} : vector<4x16x32xf32> to vector<1x16x32xf32>
    %273 = vector.shape_cast %272 : vector<1x16x32xf32> to vector<16x32xf32>
    %cst_106 = arith.constant dense<0.000000e+00> : vector<16x32xf32>
    %274 = tpu.matmul %271, %4, %cst_106 {dimension_numbers = #tpu.dot_dimension_numbers<[1], [0], [0], [1], [0, 0, 1, 1], [], []>} : vector<16x32xbf16>, vector<32x32xbf16>, vector<16x32xf32> -> vector<16x32xf32>
    %275 = arith.addf %273, %274 : vector<16x32xf32>
    %276 = vector.extract_strided_slice %270 {offsets = [1, 0, 0], sizes = [1, 16, 32], strides = [1, 1, 1]} : vector<4x16x32xf32> to vector<1x16x32xf32>
    %277 = vector.shape_cast %276 : vector<1x16x32xf32> to vector<16x32xf32>
    %cst_107 = arith.constant dense<0.000000e+00> : vector<16x32xf32>
    %278 = tpu.matmul %271, %6, %cst_107 {dimension_numbers = #tpu.dot_dimension_numbers<[1], [0], [0], [1], [0, 0, 1, 1], [], []>} : vector<16x32xbf16>, vector<32x32xbf16>, vector<16x32xf32> -> vector<16x32xf32>
    %279 = arith.addf %277, %278 : vector<16x32xf32>
    %280 = vector.extract_strided_slice %270 {offsets = [2, 0, 0], sizes = [1, 16, 32], strides = [1, 1, 1]} : vector<4x16x32xf32> to vector<1x16x32xf32>
    %281 = vector.shape_cast %280 : vector<1x16x32xf32> to vector<16x32xf32>
    %cst_108 = arith.constant dense<0.000000e+00> : vector<16x32xf32>
    %282 = tpu.matmul %271, %8, %cst_108 {dimension_numbers = #tpu.dot_dimension_numbers<[1], [0], [0], [1], [0, 0, 1, 1], [], []>} : vector<16x32xbf16>, vector<32x32xbf16>, vector<16x32xf32> -> vector<16x32xf32>
    %283 = arith.addf %281, %282 : vector<16x32xf32>
    %284 = vector.extract_strided_slice %270 {offsets = [3, 0, 0], sizes = [1, 16, 32], strides = [1, 1, 1]} : vector<4x16x32xf32> to vector<1x16x32xf32>
    %285 = vector.shape_cast %284 : vector<1x16x32xf32> to vector<16x32xf32>
    %cst_109 = arith.constant dense<0.000000e+00> : vector<16x32xf32>
    %286 = tpu.matmul %271, %10, %cst_109 {dimension_numbers = #tpu.dot_dimension_numbers<[1], [0], [0], [1], [0, 0, 1, 1], [], []>} : vector<16x32xbf16>, vector<32x32xbf16>, vector<16x32xf32> -> vector<16x32xf32>
    %287 = arith.addf %285, %286 : vector<16x32xf32>
    %cst_110 = arith.constant 5.000000e-01 : f32
    %288 = vector.broadcast %cst_110 : f32 to vector<16x32xf32>
    %289 = arith.mulf %288, %275 : vector<16x32xf32>
    %290 = math.tanh %289 : vector<16x32xf32>
    %cst_111 = arith.constant 1.000000e+00 : f32
    %291 = vector.broadcast %cst_111 : f32 to vector<16x32xf32>
    %292 = arith.addf %291, %290 : vector<16x32xf32>
    %cst_112 = arith.constant 5.000000e-01 : f32
    %293 = vector.broadcast %cst_112 : f32 to vector<16x32xf32>
    %294 = arith.mulf %293, %292 : vector<16x32xf32>
    %cst_113 = arith.constant 5.000000e-01 : f32
    %295 = vector.broadcast %cst_113 : f32 to vector<16x32xf32>
    %296 = arith.mulf %295, %279 : vector<16x32xf32>
    %297 = math.tanh %296 : vector<16x32xf32>
    %cst_114 = arith.constant 1.000000e+00 : f32
    %298 = vector.broadcast %cst_114 : f32 to vector<16x32xf32>
    %299 = arith.addf %298, %297 : vector<16x32xf32>
    %cst_115 = arith.constant 5.000000e-01 : f32
    %300 = vector.broadcast %cst_115 : f32 to vector<16x32xf32>
    %301 = arith.mulf %300, %299 : vector<16x32xf32>
    %302 = math.tanh %283 : vector<16x32xf32>
    %cst_116 = arith.constant 5.000000e-01 : f32
    %303 = vector.broadcast %cst_116 : f32 to vector<16x32xf32>
    %304 = arith.mulf %303, %287 : vector<16x32xf32>
    %305 = math.tanh %304 : vector<16x32xf32>
    %cst_117 = arith.constant 1.000000e+00 : f32
    %306 = vector.broadcast %cst_117 : f32 to vector<16x32xf32>
    %307 = arith.addf %306, %305 : vector<16x32xf32>
    %cst_118 = arith.constant 5.000000e-01 : f32
    %308 = vector.broadcast %cst_118 : f32 to vector<16x32xf32>
    %309 = arith.mulf %308, %307 : vector<16x32xf32>
    %310 = arith.mulf %301, %261 : vector<16x32xf32>
    %311 = arith.mulf %294, %302 : vector<16x32xf32>
    %312 = arith.addf %310, %311 : vector<16x32xf32>
    %313 = math.tanh %312 : vector<16x32xf32>
    %314 = arith.mulf %309, %313 : vector<16x32xf32>
    %315 = arith.index_cast %c5_i32 : i32 to index
    %c0_119 = arith.constant 0 : index
    %c0_120 = arith.constant 0 : index
    %316 = vector.load %arg4[%315, %c0_119, %c0_120] : memref<16x16x32xf32, #tpu.memory_space<vmem>>, vector<1x16x32xf32>
    %317 = vector.shape_cast %316 : vector<1x16x32xf32> to vector<16x32xf32>
    %318 = vector.shape_cast %314 : vector<16x32xf32> to vector<1x16x32xf32>
    tpu.vector_store %arg4[%315, %c0_119, %c0_120], %318 {strides = array<i32>} : memref<16x16x32xf32, #tpu.memory_space<vmem>>, vector<1x16x32xf32>,
    %c6_i32 = arith.constant 6 : i32
    %319 = arith.index_cast %c6_i32 : i32 to index
    %c0_121 = arith.constant 0 : index
    %c0_122 = arith.constant 0 : index
    %c0_123 = arith.constant 0 : index
    %320 = vector.load %arg2[%319, %c0_121, %c0_122, %c0_123] : memref<16x4x16x32xf32, #tpu.memory_space<vmem>>, vector<1x4x16x32xf32>
    %321 = vector.shape_cast %320 : vector<1x4x16x32xf32> to vector<4x16x32xf32>
    %322 = arith.truncf %314 : vector<16x32xf32> to vector<16x32xbf16>
    %323 = vector.extract_strided_slice %321 {offsets = [0, 0, 0], sizes = [1, 16, 32], strides = [1, 1, 1]} : vector<4x16x32xf32> to vector<1x16x32xf32>
    %324 = vector.shape_cast %323 : vector<1x16x32xf32> to vector<16x32xf32>
    %cst_124 = arith.constant dense<0.000000e+00> : vector<16x32xf32>
    %325 = tpu.matmul %322, %4, %cst_124 {dimension_numbers = #tpu.dot_dimension_numbers<[1], [0], [0], [1], [0, 0, 1, 1], [], []>} : vector<16x32xbf16>, vector<32x32xbf16>, vector<16x32xf32> -> vector<16x32xf32>
    %326 = arith.addf %324, %325 : vector<16x32xf32>
    %327 = vector.extract_strided_slice %321 {offsets = [1, 0, 0], sizes = [1, 16, 32], strides = [1, 1, 1]} : vector<4x16x32xf32> to vector<1x16x32xf32>
    %328 = vector.shape_cast %327 : vector<1x16x32xf32> to vector<16x32xf32>
    %cst_125 = arith.constant dense<0.000000e+00> : vector<16x32xf32>
    %329 = tpu.matmul %322, %6, %cst_125 {dimension_numbers = #tpu.dot_dimension_numbers<[1], [0], [0], [1], [0, 0, 1, 1], [], []>} : vector<16x32xbf16>, vector<32x32xbf16>, vector<16x32xf32> -> vector<16x32xf32>
    %330 = arith.addf %328, %329 : vector<16x32xf32>
    %331 = vector.extract_strided_slice %321 {offsets = [2, 0, 0], sizes = [1, 16, 32], strides = [1, 1, 1]} : vector<4x16x32xf32> to vector<1x16x32xf32>
    %332 = vector.shape_cast %331 : vector<1x16x32xf32> to vector<16x32xf32>
    %cst_126 = arith.constant dense<0.000000e+00> : vector<16x32xf32>
    %333 = tpu.matmul %322, %8, %cst_126 {dimension_numbers = #tpu.dot_dimension_numbers<[1], [0], [0], [1], [0, 0, 1, 1], [], []>} : vector<16x32xbf16>, vector<32x32xbf16>, vector<16x32xf32> -> vector<16x32xf32>
    %334 = arith.addf %332, %333 : vector<16x32xf32>
    %335 = vector.extract_strided_slice %321 {offsets = [3, 0, 0], sizes = [1, 16, 32], strides = [1, 1, 1]} : vector<4x16x32xf32> to vector<1x16x32xf32>
    %336 = vector.shape_cast %335 : vector<1x16x32xf32> to vector<16x32xf32>
    %cst_127 = arith.constant dense<0.000000e+00> : vector<16x32xf32>
    %337 = tpu.matmul %322, %10, %cst_127 {dimension_numbers = #tpu.dot_dimension_numbers<[1], [0], [0], [1], [0, 0, 1, 1], [], []>} : vector<16x32xbf16>, vector<32x32xbf16>, vector<16x32xf32> -> vector<16x32xf32>
    %338 = arith.addf %336, %337 : vector<16x32xf32>
    %cst_128 = arith.constant 5.000000e-01 : f32
    %339 = vector.broadcast %cst_128 : f32 to vector<16x32xf32>
    %340 = arith.mulf %339, %326 : vector<16x32xf32>
    %341 = math.tanh %340 : vector<16x32xf32>
    %cst_129 = arith.constant 1.000000e+00 : f32
    %342 = vector.broadcast %cst_129 : f32 to vector<16x32xf32>
    %343 = arith.addf %342, %341 : vector<16x32xf32>
    %cst_130 = arith.constant 5.000000e-01 : f32
    %344 = vector.broadcast %cst_130 : f32 to vector<16x32xf32>
    %345 = arith.mulf %344, %343 : vector<16x32xf32>
    %cst_131 = arith.constant 5.000000e-01 : f32
    %346 = vector.broadcast %cst_131 : f32 to vector<16x32xf32>
    %347 = arith.mulf %346, %330 : vector<16x32xf32>
    %348 = math.tanh %347 : vector<16x32xf32>
    %cst_132 = arith.constant 1.000000e+00 : f32
    %349 = vector.broadcast %cst_132 : f32 to vector<16x32xf32>
    %350 = arith.addf %349, %348 : vector<16x32xf32>
    %cst_133 = arith.constant 5.000000e-01 : f32
    %351 = vector.broadcast %cst_133 : f32 to vector<16x32xf32>
    %352 = arith.mulf %351, %350 : vector<16x32xf32>
    %353 = math.tanh %334 : vector<16x32xf32>
    %cst_134 = arith.constant 5.000000e-01 : f32
    %354 = vector.broadcast %cst_134 : f32 to vector<16x32xf32>
    %355 = arith.mulf %354, %338 : vector<16x32xf32>
    %356 = math.tanh %355 : vector<16x32xf32>
    %cst_135 = arith.constant 1.000000e+00 : f32
    %357 = vector.broadcast %cst_135 : f32 to vector<16x32xf32>
    %358 = arith.addf %357, %356 : vector<16x32xf32>
    %cst_136 = arith.constant 5.000000e-01 : f32
    %359 = vector.broadcast %cst_136 : f32 to vector<16x32xf32>
    %360 = arith.mulf %359, %358 : vector<16x32xf32>
    %361 = arith.mulf %352, %312 : vector<16x32xf32>
    %362 = arith.mulf %345, %353 : vector<16x32xf32>
    %363 = arith.addf %361, %362 : vector<16x32xf32>
    %364 = math.tanh %363 : vector<16x32xf32>
    %365 = arith.mulf %360, %364 : vector<16x32xf32>
    %366 = arith.index_cast %c6_i32 : i32 to index
    %c0_137 = arith.constant 0 : index
    %c0_138 = arith.constant 0 : index
    %367 = vector.load %arg4[%366, %c0_137, %c0_138] : memref<16x16x32xf32, #tpu.memory_space<vmem>>, vector<1x16x32xf32>
    %368 = vector.shape_cast %367 : vector<1x16x32xf32> to vector<16x32xf32>
    %369 = vector.shape_cast %365 : vector<16x32xf32> to vector<1x16x32xf32>
    tpu.vector_store %arg4[%366, %c0_137, %c0_138], %369 {strides = array<i32>} : memref<16x16x32xf32, #tpu.memory_space<vmem>>, vector<1x16x32xf32>,
    %c7_i32 = arith.constant 7 : i32
    %370 = arith.index_cast %c7_i32 : i32 to index
    %c0_139 = arith.constant 0 : index
    %c0_140 = arith.constant 0 : index
    %c0_141 = arith.constant 0 : index
    %371 = vector.load %arg2[%370, %c0_139, %c0_140, %c0_141] : memref<16x4x16x32xf32, #tpu.memory_space<vmem>>, vector<1x4x16x32xf32>
    %372 = vector.shape_cast %371 : vector<1x4x16x32xf32> to vector<4x16x32xf32>
    %373 = arith.truncf %365 : vector<16x32xf32> to vector<16x32xbf16>
    %374 = vector.extract_strided_slice %372 {offsets = [0, 0, 0], sizes = [1, 16, 32], strides = [1, 1, 1]} : vector<4x16x32xf32> to vector<1x16x32xf32>
    %375 = vector.shape_cast %374 : vector<1x16x32xf32> to vector<16x32xf32>
    %cst_142 = arith.constant dense<0.000000e+00> : vector<16x32xf32>
    %376 = tpu.matmul %373, %4, %cst_142 {dimension_numbers = #tpu.dot_dimension_numbers<[1], [0], [0], [1], [0, 0, 1, 1], [], []>} : vector<16x32xbf16>, vector<32x32xbf16>, vector<16x32xf32> -> vector<16x32xf32>
    %377 = arith.addf %375, %376 : vector<16x32xf32>
    %378 = vector.extract_strided_slice %372 {offsets = [1, 0, 0], sizes = [1, 16, 32], strides = [1, 1, 1]} : vector<4x16x32xf32> to vector<1x16x32xf32>
    %379 = vector.shape_cast %378 : vector<1x16x32xf32> to vector<16x32xf32>
    %cst_143 = arith.constant dense<0.000000e+00> : vector<16x32xf32>
    %380 = tpu.matmul %373, %6, %cst_143 {dimension_numbers = #tpu.dot_dimension_numbers<[1], [0], [0], [1], [0, 0, 1, 1], [], []>} : vector<16x32xbf16>, vector<32x32xbf16>, vector<16x32xf32> -> vector<16x32xf32>
    %381 = arith.addf %379, %380 : vector<16x32xf32>
    %382 = vector.extract_strided_slice %372 {offsets = [2, 0, 0], sizes = [1, 16, 32], strides = [1, 1, 1]} : vector<4x16x32xf32> to vector<1x16x32xf32>
    %383 = vector.shape_cast %382 : vector<1x16x32xf32> to vector<16x32xf32>
    %cst_144 = arith.constant dense<0.000000e+00> : vector<16x32xf32>
    %384 = tpu.matmul %373, %8, %cst_144 {dimension_numbers = #tpu.dot_dimension_numbers<[1], [0], [0], [1], [0, 0, 1, 1], [], []>} : vector<16x32xbf16>, vector<32x32xbf16>, vector<16x32xf32> -> vector<16x32xf32>
    %385 = arith.addf %383, %384 : vector<16x32xf32>
    %386 = vector.extract_strided_slice %372 {offsets = [3, 0, 0], sizes = [1, 16, 32], strides = [1, 1, 1]} : vector<4x16x32xf32> to vector<1x16x32xf32>
    %387 = vector.shape_cast %386 : vector<1x16x32xf32> to vector<16x32xf32>
    %cst_145 = arith.constant dense<0.000000e+00> : vector<16x32xf32>
    %388 = tpu.matmul %373, %10, %cst_145 {dimension_numbers = #tpu.dot_dimension_numbers<[1], [0], [0], [1], [0, 0, 1, 1], [], []>} : vector<16x32xbf16>, vector<32x32xbf16>, vector<16x32xf32> -> vector<16x32xf32>
    %389 = arith.addf %387, %388 : vector<16x32xf32>
    %cst_146 = arith.constant 5.000000e-01 : f32
    %390 = vector.broadcast %cst_146 : f32 to vector<16x32xf32>
    %391 = arith.mulf %390, %377 : vector<16x32xf32>
    %392 = math.tanh %391 : vector<16x32xf32>
    %cst_147 = arith.constant 1.000000e+00 : f32
    %393 = vector.broadcast %cst_147 : f32 to vector<16x32xf32>
    %394 = arith.addf %393, %392 : vector<16x32xf32>
    %cst_148 = arith.constant 5.000000e-01 : f32
    %395 = vector.broadcast %cst_148 : f32 to vector<16x32xf32>
    %396 = arith.mulf %395, %394 : vector<16x32xf32>
    %cst_149 = arith.constant 5.000000e-01 : f32
    %397 = vector.broadcast %cst_149 : f32 to vector<16x32xf32>
    %398 = arith.mulf %397, %381 : vector<16x32xf32>
    %399 = math.tanh %398 : vector<16x32xf32>
    %cst_150 = arith.constant 1.000000e+00 : f32
    %400 = vector.broadcast %cst_150 : f32 to vector<16x32xf32>
    %401 = arith.addf %400, %399 : vector<16x32xf32>
    %cst_151 = arith.constant 5.000000e-01 : f32
    %402 = vector.broadcast %cst_151 : f32 to vector<16x32xf32>
    %403 = arith.mulf %402, %401 : vector<16x32xf32>
    %404 = math.tanh %385 : vector<16x32xf32>
    %cst_152 = arith.constant 5.000000e-01 : f32
    %405 = vector.broadcast %cst_152 : f32 to vector<16x32xf32>
    %406 = arith.mulf %405, %389 : vector<16x32xf32>
    %407 = math.tanh %406 : vector<16x32xf32>
    %cst_153 = arith.constant 1.000000e+00 : f32
    %408 = vector.broadcast %cst_153 : f32 to vector<16x32xf32>
    %409 = arith.addf %408, %407 : vector<16x32xf32>
    %cst_154 = arith.constant 5.000000e-01 : f32
    %410 = vector.broadcast %cst_154 : f32 to vector<16x32xf32>
    %411 = arith.mulf %410, %409 : vector<16x32xf32>
    %412 = arith.mulf %403, %363 : vector<16x32xf32>
    %413 = arith.mulf %396, %404 : vector<16x32xf32>
    %414 = arith.addf %412, %413 : vector<16x32xf32>
    %415 = math.tanh %414 : vector<16x32xf32>
    %416 = arith.mulf %411, %415 : vector<16x32xf32>
    %417 = arith.index_cast %c7_i32 : i32 to index
    %c0_155 = arith.constant 0 : index
    %c0_156 = arith.constant 0 : index
    %418 = vector.load %arg4[%417, %c0_155, %c0_156] : memref<16x16x32xf32, #tpu.memory_space<vmem>>, vector<1x16x32xf32>
    %419 = vector.shape_cast %418 : vector<1x16x32xf32> to vector<16x32xf32>
    %420 = vector.shape_cast %416 : vector<16x32xf32> to vector<1x16x32xf32>
    tpu.vector_store %arg4[%417, %c0_155, %c0_156], %420 {strides = array<i32>} : memref<16x16x32xf32, #tpu.memory_space<vmem>>, vector<1x16x32xf32>,
    %c8_i32 = arith.constant 8 : i32
    %421 = arith.index_cast %c8_i32 : i32 to index
    %c0_157 = arith.constant 0 : index
    %c0_158 = arith.constant 0 : index
    %c0_159 = arith.constant 0 : index
    %422 = vector.load %arg2[%421, %c0_157, %c0_158, %c0_159] : memref<16x4x16x32xf32, #tpu.memory_space<vmem>>, vector<1x4x16x32xf32>
    %423 = vector.shape_cast %422 : vector<1x4x16x32xf32> to vector<4x16x32xf32>
    %424 = arith.truncf %416 : vector<16x32xf32> to vector<16x32xbf16>
    %425 = vector.extract_strided_slice %423 {offsets = [0, 0, 0], sizes = [1, 16, 32], strides = [1, 1, 1]} : vector<4x16x32xf32> to vector<1x16x32xf32>
    %426 = vector.shape_cast %425 : vector<1x16x32xf32> to vector<16x32xf32>
    %cst_160 = arith.constant dense<0.000000e+00> : vector<16x32xf32>
    %427 = tpu.matmul %424, %4, %cst_160 {dimension_numbers = #tpu.dot_dimension_numbers<[1], [0], [0], [1], [0, 0, 1, 1], [], []>} : vector<16x32xbf16>, vector<32x32xbf16>, vector<16x32xf32> -> vector<16x32xf32>
    %428 = arith.addf %426, %427 : vector<16x32xf32>
    %429 = vector.extract_strided_slice %423 {offsets = [1, 0, 0], sizes = [1, 16, 32], strides = [1, 1, 1]} : vector<4x16x32xf32> to vector<1x16x32xf32>
    %430 = vector.shape_cast %429 : vector<1x16x32xf32> to vector<16x32xf32>
    %cst_161 = arith.constant dense<0.000000e+00> : vector<16x32xf32>
    %431 = tpu.matmul %424, %6, %cst_161 {dimension_numbers = #tpu.dot_dimension_numbers<[1], [0], [0], [1], [0, 0, 1, 1], [], []>} : vector<16x32xbf16>, vector<32x32xbf16>, vector<16x32xf32> -> vector<16x32xf32>
    %432 = arith.addf %430, %431 : vector<16x32xf32>
    %433 = vector.extract_strided_slice %423 {offsets = [2, 0, 0], sizes = [1, 16, 32], strides = [1, 1, 1]} : vector<4x16x32xf32> to vector<1x16x32xf32>
    %434 = vector.shape_cast %433 : vector<1x16x32xf32> to vector<16x32xf32>
    %cst_162 = arith.constant dense<0.000000e+00> : vector<16x32xf32>
    %435 = tpu.matmul %424, %8, %cst_162 {dimension_numbers = #tpu.dot_dimension_numbers<[1], [0], [0], [1], [0, 0, 1, 1], [], []>} : vector<16x32xbf16>, vector<32x32xbf16>, vector<16x32xf32> -> vector<16x32xf32>
    %436 = arith.addf %434, %435 : vector<16x32xf32>
    %437 = vector.extract_strided_slice %423 {offsets = [3, 0, 0], sizes = [1, 16, 32], strides = [1, 1, 1]} : vector<4x16x32xf32> to vector<1x16x32xf32>
    %438 = vector.shape_cast %437 : vector<1x16x32xf32> to vector<16x32xf32>
    %cst_163 = arith.constant dense<0.000000e+00> : vector<16x32xf32>
    %439 = tpu.matmul %424, %10, %cst_163 {dimension_numbers = #tpu.dot_dimension_numbers<[1], [0], [0], [1], [0, 0, 1, 1], [], []>} : vector<16x32xbf16>, vector<32x32xbf16>, vector<16x32xf32> -> vector<16x32xf32>
    %440 = arith.addf %438, %439 : vector<16x32xf32>
    %cst_164 = arith.constant 5.000000e-01 : f32
    %441 = vector.broadcast %cst_164 : f32 to vector<16x32xf32>
    %442 = arith.mulf %441, %428 : vector<16x32xf32>
    %443 = math.tanh %442 : vector<16x32xf32>
    %cst_165 = arith.constant 1.000000e+00 : f32
    %444 = vector.broadcast %cst_165 : f32 to vector<16x32xf32>
    %445 = arith.addf %444, %443 : vector<16x32xf32>
    %cst_166 = arith.constant 5.000000e-01 : f32
    %446 = vector.broadcast %cst_166 : f32 to vector<16x32xf32>
    %447 = arith.mulf %446, %445 : vector<16x32xf32>
    %cst_167 = arith.constant 5.000000e-01 : f32
    %448 = vector.broadcast %cst_167 : f32 to vector<16x32xf32>
    %449 = arith.mulf %448, %432 : vector<16x32xf32>
    %450 = math.tanh %449 : vector<16x32xf32>
    %cst_168 = arith.constant 1.000000e+00 : f32
    %451 = vector.broadcast %cst_168 : f32 to vector<16x32xf32>
    %452 = arith.addf %451, %450 : vector<16x32xf32>
    %cst_169 = arith.constant 5.000000e-01 : f32
    %453 = vector.broadcast %cst_169 : f32 to vector<16x32xf32>
    %454 = arith.mulf %453, %452 : vector<16x32xf32>
    %455 = math.tanh %436 : vector<16x32xf32>
    %cst_170 = arith.constant 5.000000e-01 : f32
    %456 = vector.broadcast %cst_170 : f32 to vector<16x32xf32>
    %457 = arith.mulf %456, %440 : vector<16x32xf32>
    %458 = math.tanh %457 : vector<16x32xf32>
    %cst_171 = arith.constant 1.000000e+00 : f32
    %459 = vector.broadcast %cst_171 : f32 to vector<16x32xf32>
    %460 = arith.addf %459, %458 : vector<16x32xf32>
    %cst_172 = arith.constant 5.000000e-01 : f32
    %461 = vector.broadcast %cst_172 : f32 to vector<16x32xf32>
    %462 = arith.mulf %461, %460 : vector<16x32xf32>
    %463 = arith.mulf %454, %414 : vector<16x32xf32>
    %464 = arith.mulf %447, %455 : vector<16x32xf32>
    %465 = arith.addf %463, %464 : vector<16x32xf32>
    %466 = math.tanh %465 : vector<16x32xf32>
    %467 = arith.mulf %462, %466 : vector<16x32xf32>
    %468 = arith.index_cast %c8_i32 : i32 to index
    %c0_173 = arith.constant 0 : index
    %c0_174 = arith.constant 0 : index
    %469 = vector.load %arg4[%468, %c0_173, %c0_174] : memref<16x16x32xf32, #tpu.memory_space<vmem>>, vector<1x16x32xf32>
    %470 = vector.shape_cast %469 : vector<1x16x32xf32> to vector<16x32xf32>
    %471 = vector.shape_cast %467 : vector<16x32xf32> to vector<1x16x32xf32>
    tpu.vector_store %arg4[%468, %c0_173, %c0_174], %471 {strides = array<i32>} : memref<16x16x32xf32, #tpu.memory_space<vmem>>, vector<1x16x32xf32>,
    %c9_i32 = arith.constant 9 : i32
    %472 = arith.index_cast %c9_i32 : i32 to index
    %c0_175 = arith.constant 0 : index
    %c0_176 = arith.constant 0 : index
    %c0_177 = arith.constant 0 : index
    %473 = vector.load %arg2[%472, %c0_175, %c0_176, %c0_177] : memref<16x4x16x32xf32, #tpu.memory_space<vmem>>, vector<1x4x16x32xf32>
    %474 = vector.shape_cast %473 : vector<1x4x16x32xf32> to vector<4x16x32xf32>
    %475 = arith.truncf %467 : vector<16x32xf32> to vector<16x32xbf16>
    %476 = vector.extract_strided_slice %474 {offsets = [0, 0, 0], sizes = [1, 16, 32], strides = [1, 1, 1]} : vector<4x16x32xf32> to vector<1x16x32xf32>
    %477 = vector.shape_cast %476 : vector<1x16x32xf32> to vector<16x32xf32>
    %cst_178 = arith.constant dense<0.000000e+00> : vector<16x32xf32>
    %478 = tpu.matmul %475, %4, %cst_178 {dimension_numbers = #tpu.dot_dimension_numbers<[1], [0], [0], [1], [0, 0, 1, 1], [], []>} : vector<16x32xbf16>, vector<32x32xbf16>, vector<16x32xf32> -> vector<16x32xf32>
    %479 = arith.addf %477, %478 : vector<16x32xf32>
    %480 = vector.extract_strided_slice %474 {offsets = [1, 0, 0], sizes = [1, 16, 32], strides = [1, 1, 1]} : vector<4x16x32xf32> to vector<1x16x32xf32>
    %481 = vector.shape_cast %480 : vector<1x16x32xf32> to vector<16x32xf32>
    %cst_179 = arith.constant dense<0.000000e+00> : vector<16x32xf32>
    %482 = tpu.matmul %475, %6, %cst_179 {dimension_numbers = #tpu.dot_dimension_numbers<[1], [0], [0], [1], [0, 0, 1, 1], [], []>} : vector<16x32xbf16>, vector<32x32xbf16>, vector<16x32xf32> -> vector<16x32xf32>
    %483 = arith.addf %481, %482 : vector<16x32xf32>
    %484 = vector.extract_strided_slice %474 {offsets = [2, 0, 0], sizes = [1, 16, 32], strides = [1, 1, 1]} : vector<4x16x32xf32> to vector<1x16x32xf32>
    %485 = vector.shape_cast %484 : vector<1x16x32xf32> to vector<16x32xf32>
    %cst_180 = arith.constant dense<0.000000e+00> : vector<16x32xf32>
    %486 = tpu.matmul %475, %8, %cst_180 {dimension_numbers = #tpu.dot_dimension_numbers<[1], [0], [0], [1], [0, 0, 1, 1], [], []>} : vector<16x32xbf16>, vector<32x32xbf16>, vector<16x32xf32> -> vector<16x32xf32>
    %487 = arith.addf %485, %486 : vector<16x32xf32>
    %488 = vector.extract_strided_slice %474 {offsets = [3, 0, 0], sizes = [1, 16, 32], strides = [1, 1, 1]} : vector<4x16x32xf32> to vector<1x16x32xf32>
    %489 = vector.shape_cast %488 : vector<1x16x32xf32> to vector<16x32xf32>
    %cst_181 = arith.constant dense<0.000000e+00> : vector<16x32xf32>
    %490 = tpu.matmul %475, %10, %cst_181 {dimension_numbers = #tpu.dot_dimension_numbers<[1], [0], [0], [1], [0, 0, 1, 1], [], []>} : vector<16x32xbf16>, vector<32x32xbf16>, vector<16x32xf32> -> vector<16x32xf32>
    %491 = arith.addf %489, %490 : vector<16x32xf32>
    %cst_182 = arith.constant 5.000000e-01 : f32
    %492 = vector.broadcast %cst_182 : f32 to vector<16x32xf32>
    %493 = arith.mulf %492, %479 : vector<16x32xf32>
    %494 = math.tanh %493 : vector<16x32xf32>
    %cst_183 = arith.constant 1.000000e+00 : f32
    %495 = vector.broadcast %cst_183 : f32 to vector<16x32xf32>
    %496 = arith.addf %495, %494 : vector<16x32xf32>
    %cst_184 = arith.constant 5.000000e-01 : f32
    %497 = vector.broadcast %cst_184 : f32 to vector<16x32xf32>
    %498 = arith.mulf %497, %496 : vector<16x32xf32>
    %cst_185 = arith.constant 5.000000e-01 : f32
    %499 = vector.broadcast %cst_185 : f32 to vector<16x32xf32>
    %500 = arith.mulf %499, %483 : vector<16x32xf32>
    %501 = math.tanh %500 : vector<16x32xf32>
    %cst_186 = arith.constant 1.000000e+00 : f32
    %502 = vector.broadcast %cst_186 : f32 to vector<16x32xf32>
    %503 = arith.addf %502, %501 : vector<16x32xf32>
    %cst_187 = arith.constant 5.000000e-01 : f32
    %504 = vector.broadcast %cst_187 : f32 to vector<16x32xf32>
    %505 = arith.mulf %504, %503 : vector<16x32xf32>
    %506 = math.tanh %487 : vector<16x32xf32>
    %cst_188 = arith.constant 5.000000e-01 : f32
    %507 = vector.broadcast %cst_188 : f32 to vector<16x32xf32>
    %508 = arith.mulf %507, %491 : vector<16x32xf32>
    %509 = math.tanh %508 : vector<16x32xf32>
    %cst_189 = arith.constant 1.000000e+00 : f32
    %510 = vector.broadcast %cst_189 : f32 to vector<16x32xf32>
    %511 = arith.addf %510, %509 : vector<16x32xf32>
    %cst_190 = arith.constant 5.000000e-01 : f32
    %512 = vector.broadcast %cst_190 : f32 to vector<16x32xf32>
    %513 = arith.mulf %512, %511 : vector<16x32xf32>
    %514 = arith.mulf %505, %465 : vector<16x32xf32>
    %515 = arith.mulf %498, %506 : vector<16x32xf32>
    %516 = arith.addf %514, %515 : vector<16x32xf32>
    %517 = math.tanh %516 : vector<16x32xf32>
    %518 = arith.mulf %513, %517 : vector<16x32xf32>
    %519 = arith.index_cast %c9_i32 : i32 to index
    %c0_191 = arith.constant 0 : index
    %c0_192 = arith.constant 0 : index
    %520 = vector.load %arg4[%519, %c0_191, %c0_192] : memref<16x16x32xf32, #tpu.memory_space<vmem>>, vector<1x16x32xf32>
    %521 = vector.shape_cast %520 : vector<1x16x32xf32> to vector<16x32xf32>
    %522 = vector.shape_cast %518 : vector<16x32xf32> to vector<1x16x32xf32>
    tpu.vector_store %arg4[%519, %c0_191, %c0_192], %522 {strides = array<i32>} : memref<16x16x32xf32, #tpu.memory_space<vmem>>, vector<1x16x32xf32>,
    %c10_i32 = arith.constant 10 : i32
    %523 = arith.index_cast %c10_i32 : i32 to index
    %c0_193 = arith.constant 0 : index
    %c0_194 = arith.constant 0 : index
    %c0_195 = arith.constant 0 : index
    %524 = vector.load %arg2[%523, %c0_193, %c0_194, %c0_195] : memref<16x4x16x32xf32, #tpu.memory_space<vmem>>, vector<1x4x16x32xf32>
    %525 = vector.shape_cast %524 : vector<1x4x16x32xf32> to vector<4x16x32xf32>
    %526 = arith.truncf %518 : vector<16x32xf32> to vector<16x32xbf16>
    %527 = vector.extract_strided_slice %525 {offsets = [0, 0, 0], sizes = [1, 16, 32], strides = [1, 1, 1]} : vector<4x16x32xf32> to vector<1x16x32xf32>
    %528 = vector.shape_cast %527 : vector<1x16x32xf32> to vector<16x32xf32>
    %cst_196 = arith.constant dense<0.000000e+00> : vector<16x32xf32>
    %529 = tpu.matmul %526, %4, %cst_196 {dimension_numbers = #tpu.dot_dimension_numbers<[1], [0], [0], [1], [0, 0, 1, 1], [], []>} : vector<16x32xbf16>, vector<32x32xbf16>, vector<16x32xf32> -> vector<16x32xf32>
    %530 = arith.addf %528, %529 : vector<16x32xf32>
    %531 = vector.extract_strided_slice %525 {offsets = [1, 0, 0], sizes = [1, 16, 32], strides = [1, 1, 1]} : vector<4x16x32xf32> to vector<1x16x32xf32>
    %532 = vector.shape_cast %531 : vector<1x16x32xf32> to vector<16x32xf32>
    %cst_197 = arith.constant dense<0.000000e+00> : vector<16x32xf32>
    %533 = tpu.matmul %526, %6, %cst_197 {dimension_numbers = #tpu.dot_dimension_numbers<[1], [0], [0], [1], [0, 0, 1, 1], [], []>} : vector<16x32xbf16>, vector<32x32xbf16>, vector<16x32xf32> -> vector<16x32xf32>
    %534 = arith.addf %532, %533 : vector<16x32xf32>
    %535 = vector.extract_strided_slice %525 {offsets = [2, 0, 0], sizes = [1, 16, 32], strides = [1, 1, 1]} : vector<4x16x32xf32> to vector<1x16x32xf32>
    %536 = vector.shape_cast %535 : vector<1x16x32xf32> to vector<16x32xf32>
    %cst_198 = arith.constant dense<0.000000e+00> : vector<16x32xf32>
    %537 = tpu.matmul %526, %8, %cst_198 {dimension_numbers = #tpu.dot_dimension_numbers<[1], [0], [0], [1], [0, 0, 1, 1], [], []>} : vector<16x32xbf16>, vector<32x32xbf16>, vector<16x32xf32> -> vector<16x32xf32>
    %538 = arith.addf %536, %537 : vector<16x32xf32>
    %539 = vector.extract_strided_slice %525 {offsets = [3, 0, 0], sizes = [1, 16, 32], strides = [1, 1, 1]} : vector<4x16x32xf32> to vector<1x16x32xf32>
    %540 = vector.shape_cast %539 : vector<1x16x32xf32> to vector<16x32xf32>
    %cst_199 = arith.constant dense<0.000000e+00> : vector<16x32xf32>
    %541 = tpu.matmul %526, %10, %cst_199 {dimension_numbers = #tpu.dot_dimension_numbers<[1], [0], [0], [1], [0, 0, 1, 1], [], []>} : vector<16x32xbf16>, vector<32x32xbf16>, vector<16x32xf32> -> vector<16x32xf32>
    %542 = arith.addf %540, %541 : vector<16x32xf32>
    %cst_200 = arith.constant 5.000000e-01 : f32
    %543 = vector.broadcast %cst_200 : f32 to vector<16x32xf32>
    %544 = arith.mulf %543, %530 : vector<16x32xf32>
    %545 = math.tanh %544 : vector<16x32xf32>
    %cst_201 = arith.constant 1.000000e+00 : f32
    %546 = vector.broadcast %cst_201 : f32 to vector<16x32xf32>
    %547 = arith.addf %546, %545 : vector<16x32xf32>
    %cst_202 = arith.constant 5.000000e-01 : f32
    %548 = vector.broadcast %cst_202 : f32 to vector<16x32xf32>
    %549 = arith.mulf %548, %547 : vector<16x32xf32>
    %cst_203 = arith.constant 5.000000e-01 : f32
    %550 = vector.broadcast %cst_203 : f32 to vector<16x32xf32>
    %551 = arith.mulf %550, %534 : vector<16x32xf32>
    %552 = math.tanh %551 : vector<16x32xf32>
    %cst_204 = arith.constant 1.000000e+00 : f32
    %553 = vector.broadcast %cst_204 : f32 to vector<16x32xf32>
    %554 = arith.addf %553, %552 : vector<16x32xf32>
    %cst_205 = arith.constant 5.000000e-01 : f32
    %555 = vector.broadcast %cst_205 : f32 to vector<16x32xf32>
    %556 = arith.mulf %555, %554 : vector<16x32xf32>
    %557 = math.tanh %538 : vector<16x32xf32>
    %cst_206 = arith.constant 5.000000e-01 : f32
    %558 = vector.broadcast %cst_206 : f32 to vector<16x32xf32>
    %559 = arith.mulf %558, %542 : vector<16x32xf32>
    %560 = math.tanh %559 : vector<16x32xf32>
    %cst_207 = arith.constant 1.000000e+00 : f32
    %561 = vector.broadcast %cst_207 : f32 to vector<16x32xf32>
    %562 = arith.addf %561, %560 : vector<16x32xf32>
    %cst_208 = arith.constant 5.000000e-01 : f32
    %563 = vector.broadcast %cst_208 : f32 to vector<16x32xf32>
    %564 = arith.mulf %563, %562 : vector<16x32xf32>
    %565 = arith.mulf %556, %516 : vector<16x32xf32>
    %566 = arith.mulf %549, %557 : vector<16x32xf32>
    %567 = arith.addf %565, %566 : vector<16x32xf32>
    %568 = math.tanh %567 : vector<16x32xf32>
    %569 = arith.mulf %564, %568 : vector<16x32xf32>
    %570 = arith.index_cast %c10_i32 : i32 to index
    %c0_209 = arith.constant 0 : index
    %c0_210 = arith.constant 0 : index
    %571 = vector.load %arg4[%570, %c0_209, %c0_210] : memref<16x16x32xf32, #tpu.memory_space<vmem>>, vector<1x16x32xf32>
    %572 = vector.shape_cast %571 : vector<1x16x32xf32> to vector<16x32xf32>
    %573 = vector.shape_cast %569 : vector<16x32xf32> to vector<1x16x32xf32>
    tpu.vector_store %arg4[%570, %c0_209, %c0_210], %573 {strides = array<i32>} : memref<16x16x32xf32, #tpu.memory_space<vmem>>, vector<1x16x32xf32>,
    %c11_i32 = arith.constant 11 : i32
    %574 = arith.index_cast %c11_i32 : i32 to index
    %c0_211 = arith.constant 0 : index
    %c0_212 = arith.constant 0 : index
    %c0_213 = arith.constant 0 : index
    %575 = vector.load %arg2[%574, %c0_211, %c0_212, %c0_213] : memref<16x4x16x32xf32, #tpu.memory_space<vmem>>, vector<1x4x16x32xf32>
    %576 = vector.shape_cast %575 : vector<1x4x16x32xf32> to vector<4x16x32xf32>
    %577 = arith.truncf %569 : vector<16x32xf32> to vector<16x32xbf16>
    %578 = vector.extract_strided_slice %576 {offsets = [0, 0, 0], sizes = [1, 16, 32], strides = [1, 1, 1]} : vector<4x16x32xf32> to vector<1x16x32xf32>
    %579 = vector.shape_cast %578 : vector<1x16x32xf32> to vector<16x32xf32>
    %cst_214 = arith.constant dense<0.000000e+00> : vector<16x32xf32>
    %580 = tpu.matmul %577, %4, %cst_214 {dimension_numbers = #tpu.dot_dimension_numbers<[1], [0], [0], [1], [0, 0, 1, 1], [], []>} : vector<16x32xbf16>, vector<32x32xbf16>, vector<16x32xf32> -> vector<16x32xf32>
    %581 = arith.addf %579, %580 : vector<16x32xf32>
    %582 = vector.extract_strided_slice %576 {offsets = [1, 0, 0], sizes = [1, 16, 32], strides = [1, 1, 1]} : vector<4x16x32xf32> to vector<1x16x32xf32>
    %583 = vector.shape_cast %582 : vector<1x16x32xf32> to vector<16x32xf32>
    %cst_215 = arith.constant dense<0.000000e+00> : vector<16x32xf32>
    %584 = tpu.matmul %577, %6, %cst_215 {dimension_numbers = #tpu.dot_dimension_numbers<[1], [0], [0], [1], [0, 0, 1, 1], [], []>} : vector<16x32xbf16>, vector<32x32xbf16>, vector<16x32xf32> -> vector<16x32xf32>
    %585 = arith.addf %583, %584 : vector<16x32xf32>
    %586 = vector.extract_strided_slice %576 {offsets = [2, 0, 0], sizes = [1, 16, 32], strides = [1, 1, 1]} : vector<4x16x32xf32> to vector<1x16x32xf32>
    %587 = vector.shape_cast %586 : vector<1x16x32xf32> to vector<16x32xf32>
    %cst_216 = arith.constant dense<0.000000e+00> : vector<16x32xf32>
    %588 = tpu.matmul %577, %8, %cst_216 {dimension_numbers = #tpu.dot_dimension_numbers<[1], [0], [0], [1], [0, 0, 1, 1], [], []>} : vector<16x32xbf16>, vector<32x32xbf16>, vector<16x32xf32> -> vector<16x32xf32>
    %589 = arith.addf %587, %588 : vector<16x32xf32>
    %590 = vector.extract_strided_slice %576 {offsets = [3, 0, 0], sizes = [1, 16, 32], strides = [1, 1, 1]} : vector<4x16x32xf32> to vector<1x16x32xf32>
    %591 = vector.shape_cast %590 : vector<1x16x32xf32> to vector<16x32xf32>
    %cst_217 = arith.constant dense<0.000000e+00> : vector<16x32xf32>
    %592 = tpu.matmul %577, %10, %cst_217 {dimension_numbers = #tpu.dot_dimension_numbers<[1], [0], [0], [1], [0, 0, 1, 1], [], []>} : vector<16x32xbf16>, vector<32x32xbf16>, vector<16x32xf32> -> vector<16x32xf32>
    %593 = arith.addf %591, %592 : vector<16x32xf32>
    %cst_218 = arith.constant 5.000000e-01 : f32
    %594 = vector.broadcast %cst_218 : f32 to vector<16x32xf32>
    %595 = arith.mulf %594, %581 : vector<16x32xf32>
    %596 = math.tanh %595 : vector<16x32xf32>
    %cst_219 = arith.constant 1.000000e+00 : f32
    %597 = vector.broadcast %cst_219 : f32 to vector<16x32xf32>
    %598 = arith.addf %597, %596 : vector<16x32xf32>
    %cst_220 = arith.constant 5.000000e-01 : f32
    %599 = vector.broadcast %cst_220 : f32 to vector<16x32xf32>
    %600 = arith.mulf %599, %598 : vector<16x32xf32>
    %cst_221 = arith.constant 5.000000e-01 : f32
    %601 = vector.broadcast %cst_221 : f32 to vector<16x32xf32>
    %602 = arith.mulf %601, %585 : vector<16x32xf32>
    %603 = math.tanh %602 : vector<16x32xf32>
    %cst_222 = arith.constant 1.000000e+00 : f32
    %604 = vector.broadcast %cst_222 : f32 to vector<16x32xf32>
    %605 = arith.addf %604, %603 : vector<16x32xf32>
    %cst_223 = arith.constant 5.000000e-01 : f32
    %606 = vector.broadcast %cst_223 : f32 to vector<16x32xf32>
    %607 = arith.mulf %606, %605 : vector<16x32xf32>
    %608 = math.tanh %589 : vector<16x32xf32>
    %cst_224 = arith.constant 5.000000e-01 : f32
    %609 = vector.broadcast %cst_224 : f32 to vector<16x32xf32>
    %610 = arith.mulf %609, %593 : vector<16x32xf32>
    %611 = math.tanh %610 : vector<16x32xf32>
    %cst_225 = arith.constant 1.000000e+00 : f32
    %612 = vector.broadcast %cst_225 : f32 to vector<16x32xf32>
    %613 = arith.addf %612, %611 : vector<16x32xf32>
    %cst_226 = arith.constant 5.000000e-01 : f32
    %614 = vector.broadcast %cst_226 : f32 to vector<16x32xf32>
    %615 = arith.mulf %614, %613 : vector<16x32xf32>
    %616 = arith.mulf %607, %567 : vector<16x32xf32>
    %617 = arith.mulf %600, %608 : vector<16x32xf32>
    %618 = arith.addf %616, %617 : vector<16x32xf32>
    %619 = math.tanh %618 : vector<16x32xf32>
    %620 = arith.mulf %615, %619 : vector<16x32xf32>
    %621 = arith.index_cast %c11_i32 : i32 to index
    %c0_227 = arith.constant 0 : index
    %c0_228 = arith.constant 0 : index
    %622 = vector.load %arg4[%621, %c0_227, %c0_228] : memref<16x16x32xf32, #tpu.memory_space<vmem>>, vector<1x16x32xf32>
    %623 = vector.shape_cast %622 : vector<1x16x32xf32> to vector<16x32xf32>
    %624 = vector.shape_cast %620 : vector<16x32xf32> to vector<1x16x32xf32>
    tpu.vector_store %arg4[%621, %c0_227, %c0_228], %624 {strides = array<i32>} : memref<16x16x32xf32, #tpu.memory_space<vmem>>, vector<1x16x32xf32>,
    %c12_i32 = arith.constant 12 : i32
    %625 = arith.index_cast %c12_i32 : i32 to index
    %c0_229 = arith.constant 0 : index
    %c0_230 = arith.constant 0 : index
    %c0_231 = arith.constant 0 : index
    %626 = vector.load %arg2[%625, %c0_229, %c0_230, %c0_231] : memref<16x4x16x32xf32, #tpu.memory_space<vmem>>, vector<1x4x16x32xf32>
    %627 = vector.shape_cast %626 : vector<1x4x16x32xf32> to vector<4x16x32xf32>
    %628 = arith.truncf %620 : vector<16x32xf32> to vector<16x32xbf16>
    %629 = vector.extract_strided_slice %627 {offsets = [0, 0, 0], sizes = [1, 16, 32], strides = [1, 1, 1]} : vector<4x16x32xf32> to vector<1x16x32xf32>
    %630 = vector.shape_cast %629 : vector<1x16x32xf32> to vector<16x32xf32>
    %cst_232 = arith.constant dense<0.000000e+00> : vector<16x32xf32>
    %631 = tpu.matmul %628, %4, %cst_232 {dimension_numbers = #tpu.dot_dimension_numbers<[1], [0], [0], [1], [0, 0, 1, 1], [], []>} : vector<16x32xbf16>, vector<32x32xbf16>, vector<16x32xf32> -> vector<16x32xf32>
    %632 = arith.addf %630, %631 : vector<16x32xf32>
    %633 = vector.extract_strided_slice %627 {offsets = [1, 0, 0], sizes = [1, 16, 32], strides = [1, 1, 1]} : vector<4x16x32xf32> to vector<1x16x32xf32>
    %634 = vector.shape_cast %633 : vector<1x16x32xf32> to vector<16x32xf32>
    %cst_233 = arith.constant dense<0.000000e+00> : vector<16x32xf32>
    %635 = tpu.matmul %628, %6, %cst_233 {dimension_numbers = #tpu.dot_dimension_numbers<[1], [0], [0], [1], [0, 0, 1, 1], [], []>} : vector<16x32xbf16>, vector<32x32xbf16>, vector<16x32xf32> -> vector<16x32xf32>
    %636 = arith.addf %634, %635 : vector<16x32xf32>
    %637 = vector.extract_strided_slice %627 {offsets = [2, 0, 0], sizes = [1, 16, 32], strides = [1, 1, 1]} : vector<4x16x32xf32> to vector<1x16x32xf32>
    %638 = vector.shape_cast %637 : vector<1x16x32xf32> to vector<16x32xf32>
    %cst_234 = arith.constant dense<0.000000e+00> : vector<16x32xf32>
    %639 = tpu.matmul %628, %8, %cst_234 {dimension_numbers = #tpu.dot_dimension_numbers<[1], [0], [0], [1], [0, 0, 1, 1], [], []>} : vector<16x32xbf16>, vector<32x32xbf16>, vector<16x32xf32> -> vector<16x32xf32>
    %640 = arith.addf %638, %639 : vector<16x32xf32>
    %641 = vector.extract_strided_slice %627 {offsets = [3, 0, 0], sizes = [1, 16, 32], strides = [1, 1, 1]} : vector<4x16x32xf32> to vector<1x16x32xf32>
    %642 = vector.shape_cast %641 : vector<1x16x32xf32> to vector<16x32xf32>
    %cst_235 = arith.constant dense<0.000000e+00> : vector<16x32xf32>
    %643 = tpu.matmul %628, %10, %cst_235 {dimension_numbers = #tpu.dot_dimension_numbers<[1], [0], [0], [1], [0, 0, 1, 1], [], []>} : vector<16x32xbf16>, vector<32x32xbf16>, vector<16x32xf32> -> vector<16x32xf32>
    %644 = arith.addf %642, %643 : vector<16x32xf32>
    %cst_236 = arith.constant 5.000000e-01 : f32
    %645 = vector.broadcast %cst_236 : f32 to vector<16x32xf32>
    %646 = arith.mulf %645, %632 : vector<16x32xf32>
    %647 = math.tanh %646 : vector<16x32xf32>
    %cst_237 = arith.constant 1.000000e+00 : f32
    %648 = vector.broadcast %cst_237 : f32 to vector<16x32xf32>
    %649 = arith.addf %648, %647 : vector<16x32xf32>
    %cst_238 = arith.constant 5.000000e-01 : f32
    %650 = vector.broadcast %cst_238 : f32 to vector<16x32xf32>
    %651 = arith.mulf %650, %649 : vector<16x32xf32>
    %cst_239 = arith.constant 5.000000e-01 : f32
    %652 = vector.broadcast %cst_239 : f32 to vector<16x32xf32>
    %653 = arith.mulf %652, %636 : vector<16x32xf32>
    %654 = math.tanh %653 : vector<16x32xf32>
    %cst_240 = arith.constant 1.000000e+00 : f32
    %655 = vector.broadcast %cst_240 : f32 to vector<16x32xf32>
    %656 = arith.addf %655, %654 : vector<16x32xf32>
    %cst_241 = arith.constant 5.000000e-01 : f32
    %657 = vector.broadcast %cst_241 : f32 to vector<16x32xf32>
    %658 = arith.mulf %657, %656 : vector<16x32xf32>
    %659 = math.tanh %640 : vector<16x32xf32>
    %cst_242 = arith.constant 5.000000e-01 : f32
    %660 = vector.broadcast %cst_242 : f32 to vector<16x32xf32>
    %661 = arith.mulf %660, %644 : vector<16x32xf32>
    %662 = math.tanh %661 : vector<16x32xf32>
    %cst_243 = arith.constant 1.000000e+00 : f32
    %663 = vector.broadcast %cst_243 : f32 to vector<16x32xf32>
    %664 = arith.addf %663, %662 : vector<16x32xf32>
    %cst_244 = arith.constant 5.000000e-01 : f32
    %665 = vector.broadcast %cst_244 : f32 to vector<16x32xf32>
    %666 = arith.mulf %665, %664 : vector<16x32xf32>
    %667 = arith.mulf %658, %618 : vector<16x32xf32>
    %668 = arith.mulf %651, %659 : vector<16x32xf32>
    %669 = arith.addf %667, %668 : vector<16x32xf32>
    %670 = math.tanh %669 : vector<16x32xf32>
    %671 = arith.mulf %666, %670 : vector<16x32xf32>
    %672 = arith.index_cast %c12_i32 : i32 to index
    %c0_245 = arith.constant 0 : index
    %c0_246 = arith.constant 0 : index
    %673 = vector.load %arg4[%672, %c0_245, %c0_246] : memref<16x16x32xf32, #tpu.memory_space<vmem>>, vector<1x16x32xf32>
    %674 = vector.shape_cast %673 : vector<1x16x32xf32> to vector<16x32xf32>
    %675 = vector.shape_cast %671 : vector<16x32xf32> to vector<1x16x32xf32>
    tpu.vector_store %arg4[%672, %c0_245, %c0_246], %675 {strides = array<i32>} : memref<16x16x32xf32, #tpu.memory_space<vmem>>, vector<1x16x32xf32>,
    %c13_i32 = arith.constant 13 : i32
    %676 = arith.index_cast %c13_i32 : i32 to index
    %c0_247 = arith.constant 0 : index
    %c0_248 = arith.constant 0 : index
    %c0_249 = arith.constant 0 : index
    %677 = vector.load %arg2[%676, %c0_247, %c0_248, %c0_249] : memref<16x4x16x32xf32, #tpu.memory_space<vmem>>, vector<1x4x16x32xf32>
    %678 = vector.shape_cast %677 : vector<1x4x16x32xf32> to vector<4x16x32xf32>
    %679 = arith.truncf %671 : vector<16x32xf32> to vector<16x32xbf16>
    %680 = vector.extract_strided_slice %678 {offsets = [0, 0, 0], sizes = [1, 16, 32], strides = [1, 1, 1]} : vector<4x16x32xf32> to vector<1x16x32xf32>
    %681 = vector.shape_cast %680 : vector<1x16x32xf32> to vector<16x32xf32>
    %cst_250 = arith.constant dense<0.000000e+00> : vector<16x32xf32>
    %682 = tpu.matmul %679, %4, %cst_250 {dimension_numbers = #tpu.dot_dimension_numbers<[1], [0], [0], [1], [0, 0, 1, 1], [], []>} : vector<16x32xbf16>, vector<32x32xbf16>, vector<16x32xf32> -> vector<16x32xf32>
    %683 = arith.addf %681, %682 : vector<16x32xf32>
    %684 = vector.extract_strided_slice %678 {offsets = [1, 0, 0], sizes = [1, 16, 32], strides = [1, 1, 1]} : vector<4x16x32xf32> to vector<1x16x32xf32>
    %685 = vector.shape_cast %684 : vector<1x16x32xf32> to vector<16x32xf32>
    %cst_251 = arith.constant dense<0.000000e+00> : vector<16x32xf32>
    %686 = tpu.matmul %679, %6, %cst_251 {dimension_numbers = #tpu.dot_dimension_numbers<[1], [0], [0], [1], [0, 0, 1, 1], [], []>} : vector<16x32xbf16>, vector<32x32xbf16>, vector<16x32xf32> -> vector<16x32xf32>
    %687 = arith.addf %685, %686 : vector<16x32xf32>
    %688 = vector.extract_strided_slice %678 {offsets = [2, 0, 0], sizes = [1, 16, 32], strides = [1, 1, 1]} : vector<4x16x32xf32> to vector<1x16x32xf32>
    %689 = vector.shape_cast %688 : vector<1x16x32xf32> to vector<16x32xf32>
    %cst_252 = arith.constant dense<0.000000e+00> : vector<16x32xf32>
    %690 = tpu.matmul %679, %8, %cst_252 {dimension_numbers = #tpu.dot_dimension_numbers<[1], [0], [0], [1], [0, 0, 1, 1], [], []>} : vector<16x32xbf16>, vector<32x32xbf16>, vector<16x32xf32> -> vector<16x32xf32>
    %691 = arith.addf %689, %690 : vector<16x32xf32>
    %692 = vector.extract_strided_slice %678 {offsets = [3, 0, 0], sizes = [1, 16, 32], strides = [1, 1, 1]} : vector<4x16x32xf32> to vector<1x16x32xf32>
    %693 = vector.shape_cast %692 : vector<1x16x32xf32> to vector<16x32xf32>
    %cst_253 = arith.constant dense<0.000000e+00> : vector<16x32xf32>
    %694 = tpu.matmul %679, %10, %cst_253 {dimension_numbers = #tpu.dot_dimension_numbers<[1], [0], [0], [1], [0, 0, 1, 1], [], []>} : vector<16x32xbf16>, vector<32x32xbf16>, vector<16x32xf32> -> vector<16x32xf32>
    %695 = arith.addf %693, %694 : vector<16x32xf32>
    %cst_254 = arith.constant 5.000000e-01 : f32
    %696 = vector.broadcast %cst_254 : f32 to vector<16x32xf32>
    %697 = arith.mulf %696, %683 : vector<16x32xf32>
    %698 = math.tanh %697 : vector<16x32xf32>
    %cst_255 = arith.constant 1.000000e+00 : f32
    %699 = vector.broadcast %cst_255 : f32 to vector<16x32xf32>
    %700 = arith.addf %699, %698 : vector<16x32xf32>
    %cst_256 = arith.constant 5.000000e-01 : f32
    %701 = vector.broadcast %cst_256 : f32 to vector<16x32xf32>
    %702 = arith.mulf %701, %700 : vector<16x32xf32>
    %cst_257 = arith.constant 5.000000e-01 : f32
    %703 = vector.broadcast %cst_257 : f32 to vector<16x32xf32>
    %704 = arith.mulf %703, %687 : vector<16x32xf32>
    %705 = math.tanh %704 : vector<16x32xf32>
    %cst_258 = arith.constant 1.000000e+00 : f32
    %706 = vector.broadcast %cst_258 : f32 to vector<16x32xf32>
    %707 = arith.addf %706, %705 : vector<16x32xf32>
    %cst_259 = arith.constant 5.000000e-01 : f32
    %708 = vector.broadcast %cst_259 : f32 to vector<16x32xf32>
    %709 = arith.mulf %708, %707 : vector<16x32xf32>
    %710 = math.tanh %691 : vector<16x32xf32>
    %cst_260 = arith.constant 5.000000e-01 : f32
    %711 = vector.broadcast %cst_260 : f32 to vector<16x32xf32>
    %712 = arith.mulf %711, %695 : vector<16x32xf32>
    %713 = math.tanh %712 : vector<16x32xf32>
    %cst_261 = arith.constant 1.000000e+00 : f32
    %714 = vector.broadcast %cst_261 : f32 to vector<16x32xf32>
    %715 = arith.addf %714, %713 : vector<16x32xf32>
    %cst_262 = arith.constant 5.000000e-01 : f32
    %716 = vector.broadcast %cst_262 : f32 to vector<16x32xf32>
    %717 = arith.mulf %716, %715 : vector<16x32xf32>
    %718 = arith.mulf %709, %669 : vector<16x32xf32>
    %719 = arith.mulf %702, %710 : vector<16x32xf32>
    %720 = arith.addf %718, %719 : vector<16x32xf32>
    %721 = math.tanh %720 : vector<16x32xf32>
    %722 = arith.mulf %717, %721 : vector<16x32xf32>
    %723 = arith.index_cast %c13_i32 : i32 to index
    %c0_263 = arith.constant 0 : index
    %c0_264 = arith.constant 0 : index
    %724 = vector.load %arg4[%723, %c0_263, %c0_264] : memref<16x16x32xf32, #tpu.memory_space<vmem>>, vector<1x16x32xf32>
    %725 = vector.shape_cast %724 : vector<1x16x32xf32> to vector<16x32xf32>
    %726 = vector.shape_cast %722 : vector<16x32xf32> to vector<1x16x32xf32>
    tpu.vector_store %arg4[%723, %c0_263, %c0_264], %726 {strides = array<i32>} : memref<16x16x32xf32, #tpu.memory_space<vmem>>, vector<1x16x32xf32>,
    %c14_i32 = arith.constant 14 : i32
    %727 = arith.index_cast %c14_i32 : i32 to index
    %c0_265 = arith.constant 0 : index
    %c0_266 = arith.constant 0 : index
    %c0_267 = arith.constant 0 : index
    %728 = vector.load %arg2[%727, %c0_265, %c0_266, %c0_267] : memref<16x4x16x32xf32, #tpu.memory_space<vmem>>, vector<1x4x16x32xf32>
    %729 = vector.shape_cast %728 : vector<1x4x16x32xf32> to vector<4x16x32xf32>
    %730 = arith.truncf %722 : vector<16x32xf32> to vector<16x32xbf16>
    %731 = vector.extract_strided_slice %729 {offsets = [0, 0, 0], sizes = [1, 16, 32], strides = [1, 1, 1]} : vector<4x16x32xf32> to vector<1x16x32xf32>
    %732 = vector.shape_cast %731 : vector<1x16x32xf32> to vector<16x32xf32>
    %cst_268 = arith.constant dense<0.000000e+00> : vector<16x32xf32>
    %733 = tpu.matmul %730, %4, %cst_268 {dimension_numbers = #tpu.dot_dimension_numbers<[1], [0], [0], [1], [0, 0, 1, 1], [], []>} : vector<16x32xbf16>, vector<32x32xbf16>, vector<16x32xf32> -> vector<16x32xf32>
    %734 = arith.addf %732, %733 : vector<16x32xf32>
    %735 = vector.extract_strided_slice %729 {offsets = [1, 0, 0], sizes = [1, 16, 32], strides = [1, 1, 1]} : vector<4x16x32xf32> to vector<1x16x32xf32>
    %736 = vector.shape_cast %735 : vector<1x16x32xf32> to vector<16x32xf32>
    %cst_269 = arith.constant dense<0.000000e+00> : vector<16x32xf32>
    %737 = tpu.matmul %730, %6, %cst_269 {dimension_numbers = #tpu.dot_dimension_numbers<[1], [0], [0], [1], [0, 0, 1, 1], [], []>} : vector<16x32xbf16>, vector<32x32xbf16>, vector<16x32xf32> -> vector<16x32xf32>
    %738 = arith.addf %736, %737 : vector<16x32xf32>
    %739 = vector.extract_strided_slice %729 {offsets = [2, 0, 0], sizes = [1, 16, 32], strides = [1, 1, 1]} : vector<4x16x32xf32> to vector<1x16x32xf32>
    %740 = vector.shape_cast %739 : vector<1x16x32xf32> to vector<16x32xf32>
    %cst_270 = arith.constant dense<0.000000e+00> : vector<16x32xf32>
    %741 = tpu.matmul %730, %8, %cst_270 {dimension_numbers = #tpu.dot_dimension_numbers<[1], [0], [0], [1], [0, 0, 1, 1], [], []>} : vector<16x32xbf16>, vector<32x32xbf16>, vector<16x32xf32> -> vector<16x32xf32>
    %742 = arith.addf %740, %741 : vector<16x32xf32>
    %743 = vector.extract_strided_slice %729 {offsets = [3, 0, 0], sizes = [1, 16, 32], strides = [1, 1, 1]} : vector<4x16x32xf32> to vector<1x16x32xf32>
    %744 = vector.shape_cast %743 : vector<1x16x32xf32> to vector<16x32xf32>
    %cst_271 = arith.constant dense<0.000000e+00> : vector<16x32xf32>
    %745 = tpu.matmul %730, %10, %cst_271 {dimension_numbers = #tpu.dot_dimension_numbers<[1], [0], [0], [1], [0, 0, 1, 1], [], []>} : vector<16x32xbf16>, vector<32x32xbf16>, vector<16x32xf32> -> vector<16x32xf32>
    %746 = arith.addf %744, %745 : vector<16x32xf32>
    %cst_272 = arith.constant 5.000000e-01 : f32
    %747 = vector.broadcast %cst_272 : f32 to vector<16x32xf32>
    %748 = arith.mulf %747, %734 : vector<16x32xf32>
    %749 = math.tanh %748 : vector<16x32xf32>
    %cst_273 = arith.constant 1.000000e+00 : f32
    %750 = vector.broadcast %cst_273 : f32 to vector<16x32xf32>
    %751 = arith.addf %750, %749 : vector<16x32xf32>
    %cst_274 = arith.constant 5.000000e-01 : f32
    %752 = vector.broadcast %cst_274 : f32 to vector<16x32xf32>
    %753 = arith.mulf %752, %751 : vector<16x32xf32>
    %cst_275 = arith.constant 5.000000e-01 : f32
    %754 = vector.broadcast %cst_275 : f32 to vector<16x32xf32>
    %755 = arith.mulf %754, %738 : vector<16x32xf32>
    %756 = math.tanh %755 : vector<16x32xf32>
    %cst_276 = arith.constant 1.000000e+00 : f32
    %757 = vector.broadcast %cst_276 : f32 to vector<16x32xf32>
    %758 = arith.addf %757, %756 : vector<16x32xf32>
    %cst_277 = arith.constant 5.000000e-01 : f32
    %759 = vector.broadcast %cst_277 : f32 to vector<16x32xf32>
    %760 = arith.mulf %759, %758 : vector<16x32xf32>
    %761 = math.tanh %742 : vector<16x32xf32>
    %cst_278 = arith.constant 5.000000e-01 : f32
    %762 = vector.broadcast %cst_278 : f32 to vector<16x32xf32>
    %763 = arith.mulf %762, %746 : vector<16x32xf32>
    %764 = math.tanh %763 : vector<16x32xf32>
    %cst_279 = arith.constant 1.000000e+00 : f32
    %765 = vector.broadcast %cst_279 : f32 to vector<16x32xf32>
    %766 = arith.addf %765, %764 : vector<16x32xf32>
    %cst_280 = arith.constant 5.000000e-01 : f32
    %767 = vector.broadcast %cst_280 : f32 to vector<16x32xf32>
    %768 = arith.mulf %767, %766 : vector<16x32xf32>
    %769 = arith.mulf %760, %720 : vector<16x32xf32>
    %770 = arith.mulf %753, %761 : vector<16x32xf32>
    %771 = arith.addf %769, %770 : vector<16x32xf32>
    %772 = math.tanh %771 : vector<16x32xf32>
    %773 = arith.mulf %768, %772 : vector<16x32xf32>
    %774 = arith.index_cast %c14_i32 : i32 to index
    %c0_281 = arith.constant 0 : index
    %c0_282 = arith.constant 0 : index
    %775 = vector.load %arg4[%774, %c0_281, %c0_282] : memref<16x16x32xf32, #tpu.memory_space<vmem>>, vector<1x16x32xf32>
    %776 = vector.shape_cast %775 : vector<1x16x32xf32> to vector<16x32xf32>
    %777 = vector.shape_cast %773 : vector<16x32xf32> to vector<1x16x32xf32>
    tpu.vector_store %arg4[%774, %c0_281, %c0_282], %777 {strides = array<i32>} : memref<16x16x32xf32, #tpu.memory_space<vmem>>, vector<1x16x32xf32>,
    %c15_i32 = arith.constant 15 : i32
    %778 = arith.index_cast %c15_i32 : i32 to index
    %c0_283 = arith.constant 0 : index
    %c0_284 = arith.constant 0 : index
    %c0_285 = arith.constant 0 : index
    %779 = vector.load %arg2[%778, %c0_283, %c0_284, %c0_285] : memref<16x4x16x32xf32, #tpu.memory_space<vmem>>, vector<1x4x16x32xf32>
    %780 = vector.shape_cast %779 : vector<1x4x16x32xf32> to vector<4x16x32xf32>
    %781 = arith.truncf %773 : vector<16x32xf32> to vector<16x32xbf16>
    %782 = vector.extract_strided_slice %780 {offsets = [0, 0, 0], sizes = [1, 16, 32], strides = [1, 1, 1]} : vector<4x16x32xf32> to vector<1x16x32xf32>
    %783 = vector.shape_cast %782 : vector<1x16x32xf32> to vector<16x32xf32>
    %cst_286 = arith.constant dense<0.000000e+00> : vector<16x32xf32>
    %784 = tpu.matmul %781, %4, %cst_286 {dimension_numbers = #tpu.dot_dimension_numbers<[1], [0], [0], [1], [0, 0, 1, 1], [], []>} : vector<16x32xbf16>, vector<32x32xbf16>, vector<16x32xf32> -> vector<16x32xf32>
    %785 = arith.addf %783, %784 : vector<16x32xf32>
    %786 = vector.extract_strided_slice %780 {offsets = [1, 0, 0], sizes = [1, 16, 32], strides = [1, 1, 1]} : vector<4x16x32xf32> to vector<1x16x32xf32>
    %787 = vector.shape_cast %786 : vector<1x16x32xf32> to vector<16x32xf32>
    %cst_287 = arith.constant dense<0.000000e+00> : vector<16x32xf32>
    %788 = tpu.matmul %781, %6, %cst_287 {dimension_numbers = #tpu.dot_dimension_numbers<[1], [0], [0], [1], [0, 0, 1, 1], [], []>} : vector<16x32xbf16>, vector<32x32xbf16>, vector<16x32xf32> -> vector<16x32xf32>
    %789 = arith.addf %787, %788 : vector<16x32xf32>
    %790 = vector.extract_strided_slice %780 {offsets = [2, 0, 0], sizes = [1, 16, 32], strides = [1, 1, 1]} : vector<4x16x32xf32> to vector<1x16x32xf32>
    %791 = vector.shape_cast %790 : vector<1x16x32xf32> to vector<16x32xf32>
    %cst_288 = arith.constant dense<0.000000e+00> : vector<16x32xf32>
    %792 = tpu.matmul %781, %8, %cst_288 {dimension_numbers = #tpu.dot_dimension_numbers<[1], [0], [0], [1], [0, 0, 1, 1], [], []>} : vector<16x32xbf16>, vector<32x32xbf16>, vector<16x32xf32> -> vector<16x32xf32>
    %793 = arith.addf %791, %792 : vector<16x32xf32>
    %794 = vector.extract_strided_slice %780 {offsets = [3, 0, 0], sizes = [1, 16, 32], strides = [1, 1, 1]} : vector<4x16x32xf32> to vector<1x16x32xf32>
    %795 = vector.shape_cast %794 : vector<1x16x32xf32> to vector<16x32xf32>
    %cst_289 = arith.constant dense<0.000000e+00> : vector<16x32xf32>
    %796 = tpu.matmul %781, %10, %cst_289 {dimension_numbers = #tpu.dot_dimension_numbers<[1], [0], [0], [1], [0, 0, 1, 1], [], []>} : vector<16x32xbf16>, vector<32x32xbf16>, vector<16x32xf32> -> vector<16x32xf32>
    %797 = arith.addf %795, %796 : vector<16x32xf32>
    %cst_290 = arith.constant 5.000000e-01 : f32
    %798 = vector.broadcast %cst_290 : f32 to vector<16x32xf32>
    %799 = arith.mulf %798, %785 : vector<16x32xf32>
    %800 = math.tanh %799 : vector<16x32xf32>
    %cst_291 = arith.constant 1.000000e+00 : f32
    %801 = vector.broadcast %cst_291 : f32 to vector<16x32xf32>
    %802 = arith.addf %801, %800 : vector<16x32xf32>
    %cst_292 = arith.constant 5.000000e-01 : f32
    %803 = vector.broadcast %cst_292 : f32 to vector<16x32xf32>
    %804 = arith.mulf %803, %802 : vector<16x32xf32>
    %cst_293 = arith.constant 5.000000e-01 : f32
    %805 = vector.broadcast %cst_293 : f32 to vector<16x32xf32>
    %806 = arith.mulf %805, %789 : vector<16x32xf32>
    %807 = math.tanh %806 : vector<16x32xf32>
    %cst_294 = arith.constant 1.000000e+00 : f32
    %808 = vector.broadcast %cst_294 : f32 to vector<16x32xf32>
    %809 = arith.addf %808, %807 : vector<16x32xf32>
    %cst_295 = arith.constant 5.000000e-01 : f32
    %810 = vector.broadcast %cst_295 : f32 to vector<16x32xf32>
    %811 = arith.mulf %810, %809 : vector<16x32xf32>
    %812 = math.tanh %793 : vector<16x32xf32>
    %cst_296 = arith.constant 5.000000e-01 : f32
    %813 = vector.broadcast %cst_296 : f32 to vector<16x32xf32>
    %814 = arith.mulf %813, %797 : vector<16x32xf32>
    %815 = math.tanh %814 : vector<16x32xf32>
    %cst_297 = arith.constant 1.000000e+00 : f32
    %816 = vector.broadcast %cst_297 : f32 to vector<16x32xf32>
    %817 = arith.addf %816, %815 : vector<16x32xf32>
    %cst_298 = arith.constant 5.000000e-01 : f32
    %818 = vector.broadcast %cst_298 : f32 to vector<16x32xf32>
    %819 = arith.mulf %818, %817 : vector<16x32xf32>
    %820 = arith.mulf %811, %771 : vector<16x32xf32>
    %821 = arith.mulf %804, %812 : vector<16x32xf32>
    %822 = arith.addf %820, %821 : vector<16x32xf32>
    %823 = math.tanh %822 : vector<16x32xf32>
    %824 = arith.mulf %819, %823 : vector<16x32xf32>
    %825 = arith.index_cast %c15_i32 : i32 to index
    %c0_299 = arith.constant 0 : index
    %c0_300 = arith.constant 0 : index
    %826 = vector.load %arg4[%825, %c0_299, %c0_300] : memref<16x16x32xf32, #tpu.memory_space<vmem>>, vector<1x16x32xf32>
    %827 = vector.shape_cast %826 : vector<1x16x32xf32> to vector<16x32xf32>
    %828 = vector.shape_cast %824 : vector<16x32xf32> to vector<1x16x32xf32>
    tpu.vector_store %arg4[%825, %c0_299, %c0_300], %828 {strides = array<i32>} : memref<16x16x32xf32, #tpu.memory_space<vmem>>, vector<1x16x32xf32>,
    %c16_i32 = arith.constant 16 : i32
    %c0_301 = arith.constant 0 : index
    %c0_302 = arith.constant 0 : index
    %829 = vector.load %arg5[%c0_301, %c0_302] : memref<16x32xf32, #tpu.memory_space<vmem>>, vector<16x32xf32>
    tpu.vector_store %arg5[%c0_301, %c0_302], %824 {strides = array<i32>} : memref<16x32xf32, #tpu.memory_space<vmem>>, vector<16x32xf32>,
    %c0_303 = arith.constant 0 : index
    %c0_304 = arith.constant 0 : index
    %830 = vector.load %arg6[%c0_303, %c0_304] : memref<16x32xf32, #tpu.memory_space<vmem>>, vector<16x32xf32>
    tpu.vector_store %arg6[%c0_303, %c0_304], %822 {strides = array<i32>} : memref<16x32xf32, #tpu.memory_space<vmem>>, vector<16x32xf32>,
    return
  }
  func.func @transform_0(%arg0: i32, %arg1: i32) -> (i32, i32, i32, i32) {
    %c0_i32 = arith.constant 0 : i32
    %c0_i32_0 = arith.constant 0 : i32
    %c0_i32_1 = arith.constant 0 : i32
    return %arg1, %c0_i32, %arg0, %c0_i32_0 : i32, i32, i32, i32
  }
  func.func @transform_1(%arg0: i32, %arg1: i32) -> (i32, i32, i32) {
    %c0_i32 = arith.constant 0 : i32
    %c0_i32_0 = arith.constant 0 : i32
    %c0_i32_1 = arith.constant 0 : i32
    %c0_i32_2 = arith.constant 0 : i32
    return %c0_i32, %c0_i32_0, %c0_i32_1 : i32, i32, i32
  }
  func.func @transform_2(%arg0: i32, %arg1: i32) -> (i32, i32, i32) {
    %c0_i32 = arith.constant 0 : i32
    %c0_i32_0 = arith.constant 0 : i32
    return %arg1, %arg0, %c0_i32 : i32, i32, i32
  }
}

</mosaic_0001>

<bundles_post_ra>
// kernel: tpu_custom_call.1
= control target key start
LH: loop header
LB: loop body
LE: loop exit
PB: predicated region body
PF: predicated region fallthrough
CT: control target
= control target key end

     0   :  { %7 = vsyncpa [#allocation5], 0  ;;  %s6569_s0 = inlined_call_operand.hbm [shape: f32[32,4,16,32], index: 0, kind: input, shape index: {}]   ;;  %s6570_s1 = inlined_call_operand.hbm [shape: bf16[4,32,32], index: 1, kind: input, shape index: {}]   ;;  %s6571_s2 = inlined_call_operand.hbm [shape: f32[32,16,32], index: 2, kind: output, shape index: {}]  }
   0x1   :  { %9 = vsyncpa [#allocation5 + $0x1], 0 }
   0x2   :  { %10 = vsyncpa [#allocation8], 0 }
   0x3   :  { %11 = vsyncpa [#allocation6], 0 }
   0x4   :  { %13 = vsyncpa [#allocation6 + $0x1], 0  ;;  %s5535_s9 = smov 0   ;;  %s5537_s10 = smov 0  }
   0x5   :  { %s5539_s11 = smov 0   ;;  %s5541_s12 = smov 0  }
   0x6   :  { %s5543_s13 = smov 0   ;;  %s5545_s14 = smov 0  }
   0x7 LB: > { %s3982_s15 = sadd.s32 4294967295, %s5506_s14   ;;  %s3983_s16 = sadd.s32 4294967294, %s5506_s14   ;;  %s5506_s14 = sphi %s5545_s14, %s19_s14   ;;  %s5502_s13 = sphi %s5543_s13, %s6595_s13   ;;  %s5498_s12 = sphi %s5541_s12, %s6594_s12   ;;  %s5494_s11 = sphi %s5539_s11, %s6593_s11   ;;  %s5490_s10 = sphi %s5537_s10, %s6592_s10   ;;  %s5486_s9 = sphi %s5535_s9, %s6591_s9  }
   0x8   : > { %p53_p0 = scmp.ne.s32.totalorder %s5490_s10, %s5486_s9  ;;  %p5569_p1 = scmp.eq.s32.totalorder %s3982_s15, 0 }
   0x9   : > { %p5573_p2 = scmp.eq.s32.totalorder %s3982_s15, 1  ;;  %p106_p3 = scmp.eq.s32.totalorder %s3983_s16, 1 }
   0xa   : > { %s6576_s17 = scalar_select %p5569_p1, 1, 0 }
   0xb   : > { %s6577_s18 = scalar_select %p5573_p2, 1, 0 }
   0xc   : > { %p5579_p4 = por %p5569_p1, %p53_p0  ;;  %p3984_p5 = scmp.ge.s32.totalorder %s5506_s14, 1 }
   0xd   : > { %p5584_p6 = por %p106_p3, %p53_p0  ;;  %p113_p7 = scmp.lt.s32.totalorder %s5506_s14, 3 }
   0xe   : > { %s6578_s19 = scalar_select %p5579_p4, 1, 0 }
   0xf   : > { %s6579_s20 = scalar_select %p5584_p6, 1, 0 }
  0x10   : > { %p5589_p8 = pnand %p3984_p5, %p113_p7  ;;  %s5508_s22 = smov [#allocation7]  }
  0x11   : > { %s125_s23 = sshll.u32 %s5508_s22, 4  ;;  %s28_s25 = sadd.s32 1, %s5502_s13  ;;  %s126_s23 = int_to_ptr.vmem [resolvable:$true] %s125_s23 }
  0x12   : > { %s6580_s21 = scalar_select %p5589_p8, 1, 0 }
  0x13   : > { %p4940_p9 = pneg %p5589_p8  ;;  %s5362_s28 = scalar_lea.hbm %s6570_s1, 1024 }
  0x14   : > { %p5363_p12 = scmp.ne.s32.totalorder %s6570_s1, %s5362_s28  ;;  %p5369_p5 = scmp.lt.u32.totalorder %s5362_s28, %s6570_s1 }
  0x15   : > { %p5598_p11 = pnand %p4940_p9, %p5569_p1 }
  0x17   : > { %p5364_p13 = pneg %p5598_p11 }
  0x19   : > { %p5365_p0 = pnand %p5364_p13, %p5363_p12 }
  0x1b   : > { %p5366_p3 = pneg %p5365_p0 }
  0x1d   : > { %p5371_p7 = pnand %p5369_p5, %p5366_p3 }
  0x1f   : > { %5374 = shalt.err (!%p5371_p7)
}
  0x20   : > { %s5375_s5 = scalar_lea.vmem %s126_s23, 1024  ;;  %p5383_p1 = scmp.lt.s32.totalorder %s126_s23, %s126_s23 }
  0x21   : > { %p5376_p9 = scmp.ne.s32.totalorder %s126_s23, %s5375_s5  ;;  %p5384_p4 = scmp.lt.s32.totalorder %s5375_s5, %s5375_s5 }
  0x23   : > { %p5378_p10 = pnand %p5376_p9, %p5364_p13  ;;  %p5385_p8 = por %p5384_p4, %p5383_p1 }
  0x25   : > { %p5379_p6 = pneg %p5378_p10 }
  0x27   : > { %p5386_p2 = pnand %p5385_p8, %p5379_p6 }
  0x29   : > { %5389 = shalt.err (!%p5386_p2)
}
  0x2a   : > { %s5509_s6 = smov 64   ;;  %s5510_s7 = smov 4  }
  0x2b   : > { %4943 = dma.hbm_to_vmem [thread:$0]  (!%p5598_p11), %s6570_s1, 1024, %s126_s23, [#allocation8], %s5509_s6, %s5509_s6, %s5510_s7  }
  0x2c   : > { %p29_p1 = scmp.ge.s32.totalorder %s28_s25, 2  ;;  %s40_s16 = sadd.s32 1, %s5494_s11 }
  0x2d   : > { %p47_p2 = scmp.ne.s32.totalorder %s5494_s11, %s5490_s10  ;;  %p48_p4 = scmp.eq.s32.totalorder %s5506_s14, 0 }
  0x2e   : > { %s6597_s25 = smov (%p29_p1, %s28_s25), 0  ;;  %p6583_p8 = scmp.ne.s32.totalorder %s6577_s18, 0 }
  0x2f   : > { %p5625_p6 = por %p48_p4, %p47_p2  ;;  %s35_s24 = ssub.s32 %s5502_s13, %s6597_s25 }
  0x30   : > { %p5631_p10 = por %p6583_p8, %p47_p2  ;;  %p4953_p12 = scmp.lt.s32.totalorder %s5506_s14, 2 }
  0x31   : > { %p38_p11 = scmp.eq.s32.totalorder %s35_s24, 0  ;;  %s139_s23 = sand.u32 1, %s5494_s11  }
  0x32   : > { %s3987_s27 = sshll.u32 %s139_s23, 10  ;;  %s4225_s29 = sshll.u32 %s5502_s13, 14 }
  0x33   : > { %s5640_s28 = scalar_select %p38_p11, %s5494_s11, %s40_s16  }
  0x34   : > { %s5646_s4 = scalar_lea.hbm %s6569_s0, %s4225_s29  ;;  %s143_s18 = scalar_lea.vmem [#allocation4], %s3987_s27 }
  0x35   : > { %s153_s5 = sshll.u32 %s143_s18, 4  ;;  %p5652_p13 = pnand %p4953_p12, %p5625_p6  ;;  %s5648_s5 = int_to_ptr.vmem [resolvable:$true] %s153_s5 }
  0x36   : > { %s5656_s7 = scalar_lea.sflag [#allocation5], %s139_s23  ;;  %s5390_s8 = scalar_lea.hbm %s5646_s4, 16384 }
  0x37   : > { %p5391_p0 = scmp.ne.s32.totalorder %s5646_s4, %s5390_s8  ;;  %p5392_p3 = pneg %p5652_p13 }
  0x38   : > { %s5395_s22 = scalar_lea.hbm %s6569_s0, 32768  ;;  %p5396_p9 = scmp.lt.u32.totalorder %s5646_s4, %s6569_s0 }
  0x39   : > { %p5393_p5 = pnand %p5392_p3, %p5391_p0  ;;  %p5397_p1 = scmp.lt.u32.totalorder %s5395_s22, %s5390_s8 }
  0x3a   : > { %p5399_p4 = scmp.lt.u32.totalorder %s5390_s8, %s5646_s4 }
  0x3b   : > { %p5394_p7 = pneg %p5393_p5  ;;  %p5398_p2 = por %p5397_p1, %p5396_p9 }
  0x3d   : > { %p5400_p6 = por %p5399_p4, %p5398_p2 }
  0x3f   : > { %p5401_p8 = pnand %p5400_p6, %p5394_p7 }
  0x41   : > { %5404 = shalt.err (!%p5401_p8)
}
  0x42   : > { %s5405_s23 = scalar_lea.vmem %s5648_s5, 16384  ;;  %s5511_s29 = smov [#allocation4]  }
  0x43   : > { %p5406_p12 = scmp.ne.s32.totalorder %s5648_s5, %s5405_s23  ;;  %s5410_s30 = sshll.u32 %s5511_s29, 4  ;;  %s5411_s30 = int_to_ptr.vmem [resolvable:$false] %s5410_s30 }
  0x44   : > { %s5412_s3 = scalar_lea.vmem %s5411_s30, 32768  ;;  %p5413_p5 = scmp.lt.s32.totalorder %s5648_s5, %s5411_s30 }
  0x45   : > { %p5408_p11 = pnand %p5406_p12, %p5392_p3  ;;  %p5414_p9 = scmp.lt.s32.totalorder %s5412_s3, %s5405_s23 }
  0x47   : > { %p5409_p0 = pneg %p5408_p11  ;;  %p5415_p1 = por %p5414_p9, %p5413_p5 }
  0x49   : > { %p5416_p2 = pnand %p5415_p1, %p5409_p0 }
  0x4b   : > { %5419 = shalt.err (!%p5416_p2)
}
  0x4c   : > { %s5512_s18 = smov 128   ;;  %s5513_s8 = smov 8  }
  0x4d   : > { %4947 = dma.hbm_to_vmem [thread:$0]  (!%p5652_p13), %s5646_s4, 16384, %s5648_s5, %s5656_s7, %s5512_s18, %s5512_s18, %s5513_s8  }
  0x4e   : > { %p6586_p3 = scmp.ne.s32.totalorder %s6580_s21, 0 }
  0x4f   : > { %s5687_s15 = sand.u32 (!%p6586_p3), 1, %s5490_s10   ;;  %p6587_p7 = scmp.ne.s32.totalorder (!%p6586_p3), %s6578_s19, 0 }
  0x50   : > { %165 = sbr.rel (%p6586_p3) target bundleno = 4186 (0x105a), region = 28  ;;  %s3992_s16 = sshll.u32 (!%p6586_p3), %s5687_s15, 10 }
  0x51   : > { %s168_s22 = scalar_lea.sflag (!%p6586_p3), [#allocation5], %s5687_s15  ;;  %s5691_s24 = scalar_lea.vmem (!%p6586_p3), [#allocation4], %s3992_s16 }
  0x57   : > { %5473 = dma.done.wait (%p6587_p7), %s168_s22, 16384  }
  0x58   : > { %5475 = vsyncadd (%p6587_p7), %s168_s22, 4294950912  ;;  %p6588_p13 = scmp.ne.s32.totalorder %s6576_s17, 0 }
  0x5a   : > { %5477 = dma.done.wait (%p6588_p13), [#allocation8], 1024  }
  0x5b   : > { %5479 = vsyncadd (%p6588_p13), [#allocation8], 4294966272  ;;  %s3994_s21 = sshll.u32 %s5687_s15, 8  ;;  %p3995_p4 = scmp.ne.s32.totalorder %s5498_s12, 0 }
  0x5c   : > { %s5702_s4 = scalar_lea.vmem [#allocation9], %s3994_s21  ;;  %vm205_vm0 = vcmask (!%p3995_p4), 261120   ;;  %v5514_v0 = vmov (!%p3995_p4), 0.0  }
  0x5d   : > { %204 = sbr.rel (%p3995_p4) target bundleno = 100 (0x64), region = 40  ;;  %206 = vst.msk [vmem:[#allocation2] sm:$0xff] (!%p3995_p4), %vm205_vm0, %v5514_v0  ;;  %207 = vst.msk [vmem:[#allocation2 + $0x8] sm:$0xff] (!%p3995_p4), %vm205_vm0, %v5514_v0 }
  0x5e   : > { %208 = vst.msk [vmem:[#allocation3] sm:$0xff] (!%p3995_p4), %vm205_vm0, %v5514_v0  ;;  %209 = vst.msk [vmem:[#allocation3 + $0x8] sm:$0xff] (!%p3995_p4), %vm205_vm0, %v5514_v0 }
  0x64 PF: > { %v5705_v1 = vld [vmem:[#allocation7] sm:$0xff]   ;;  %v5515_v2 = vmov 0.0   ;;  %v5709_v3 = vld [vmem:[#allocation7 + $0x10] sm:$0xff]   ;;  %v5712_v4 = vld [vmem:[#allocation7 + $0x8] sm:$0xff]   ;;  %vm5516_vm1 = vmmov 0   ;;  %vm254_vm2 = vcmask 261120  }
  0x65   : > { %4420 = vmatprep.subr.bf16.mxu0 %v5515_v2  ;;  %4428 = vmatprep.subr.bf16.mxu1 %v5515_v2  ;;  %v5718_v5 = vld [vmem:[#allocation7 + $0x18] sm:$0xff]   ;;  %v229_v6 = vld [vmem:[#allocation2] sm:$0xff]  ;;  %v230_v7 = vld [vmem:[#allocation2 + $0x8] sm:$0xff]  ;;  %s4227_s17 = sshll.u32 %s5498_s12, 12  ;;  %s3885_s19 = sshll.u32 %s5702_s4, 4  ;;  %s6517_s19 = int_to_ptr.vmem [resolvable:$true] %s3885_s19 }
  0x66   : > { %4421 = vmatpush3.bf16.msra.mxu0 %v5705_v1  ;;  %4424 = vmatprep.mubr.msk.bf16.mxu0 %vm5516_vm1, %v5515_v2  ;;  %v241_v8 = vpack.c.bf16 %v230_v7, %v229_v6  ;;  %v5724_v9 = vld [vmem:[#allocation7 + $0x20] sm:$0xff]   ;;  %v5729_v10 = vld [vmem:[#allocation7 + $0x30] sm:$0xff]   ;;  %v5734_v11 = vld [vmem:[#allocation7 + $0x28] sm:$0xff]   ;;  %s6515_s7 = scalar_lea.hbm %s6571_s2, %s4227_s17  ;;  %s3869_s12 = scalar_lea.sflag [#allocation6], %s5687_s15 }
  0x67   : > { %4429 = vmatpush3.bf16.msra.mxu1 %v5709_v3  ;;  %4422 = vmatprep.subr.bf16.mxu0 %v5515_v2  ;;  %v5740_v12 = vld [vmem:[#allocation7 + $0x38] sm:$0xff]   ;;  %v233_v13 = vld [vmem:[%s5691_s24] sm:$0xff]  ;;  %v235_v14 = vld [vmem:[%s5691_s24 + $0x10] sm:$0xff]  ;;  %s5420_s27 = scalar_lea.vmem %s6517_s19, 4096  ;;  %s5517_s23 = smov [#allocation9]  }
  0x68   : > { %4430 = vmatprep.subr.bf16.mxu1 %v5515_v2  ;;  %4432 = vmatprep.mubr.msk.bf16.mxu1 %vm5516_vm1, %v5515_v2  ;;  %v234_v16 = vld [vmem:[%s5691_s24 + $0x8] sm:$0xff]  ;;  %v236_v20 = vld [vmem:[%s5691_s24 + $0x18] sm:$0xff]  ;;  %v237_v33 = vld [vmem:[%s5691_s24 + $0x20] sm:$0xff]  ;;  %p5421_p6 = scmp.ne.s32.totalorder %s6517_s19, %s5420_s27  ;;  %s5424_s29 = sshll.u32 %s5517_s23, 4  ;;  %s5425_s29 = int_to_ptr.vmem [resolvable:$false] %s5424_s29 }
  0x69   : > { %v238_v35 = vld [vmem:[%s5691_s24 + $0x28] sm:$0xff]  ;;  %v239_v36 = vld [vmem:[%s5691_s24 + $0x30] sm:$0xff]  ;;  %v240_v41 = vld [vmem:[%s5691_s24 + $0x38] sm:$0xff]  ;;  %s5426_s30 = scalar_lea.vmem %s5425_s29, 8192  ;;  %p5427_p11 = scmp.lt.s32.totalorder %s6517_s19, %s5425_s29 }
  0x6a   : > { %4423 = vmatpush3.bf16.msra.mxu0 %v5712_v4  ;;  %v231_v57 = vld [vmem:[#allocation3] sm:$0xff]  ;;  %v232_v0 = vld [vmem:[#allocation3 + $0x8] sm:$0xff]  ;;  %p5422_p8 = pnand %p5421_p6, %p5631_p10  ;;  %p5428_p0 = scmp.lt.s32.totalorder %s5426_s30, %s5420_s27 }
  0x6b   : > { %4431 = vmatpush3.bf16.msra.mxu1 %v5718_v5  ;;  %4436 = vmatprep.subr.bf16.mxu0 %v5515_v2 }
  0x6c   : > { %4444 = vmatprep.subr.bf16.mxu1 %v5515_v2  ;;  %p5423_p12 = pneg %p5422_p8  ;;  %p5429_p5 = por %p5428_p0, %p5427_p11 }
  0x6d   : > { %4425 = vmatmul.mubr.msk.bf16.vlgmr.msra.gmra.mrb[0].mxu0 %vm254_vm2, %v241_v8 }
  0x6e   : > { %4433 = vmatmul.mubr.msk.bf16.vlgmr.msra.gmra.mrb[0].mxu1 %vm254_vm2, %v241_v8  ;;  %4437 = vmatpush3.bf16.msra.mxu0 %v5724_v9  ;;  %p5430_p9 = pnand %p5429_p5, %p5423_p12 }
  0x6f   : > { %4438 = vmatprep.subr.bf16.mxu0 %v5515_v2  ;;  %4440 = vmatprep.mubr.msk.bf16.mxu0 %vm5516_vm1, %v5515_v2 }
  0x70   : > { %4445 = vmatpush3.bf16.msra.mxu1 %v5729_v10  ;;  %4448 = vmatprep.mubr.msk.bf16.mxu1 %vm5516_vm1, %v5515_v2 }
  0x71   : > { %4446 = vmatprep.subr.bf16.mxu1 %v5515_v2 }
  0x72   : > { %4439 = vmatpush3.bf16.msra.mxu0 %v5734_v11 }
  0x73   : > { %4452 = vmatprep.subr.bf16.mxu0 %v5515_v2 }
  0x74   : > { %4447 = vmatpush3.bf16.msra.mxu1 %v5740_v12 }
  0x75   : > { %4441 = vmatmul.mubr.msk.bf16.vlgmr.msra.gmra.mrb[4].mxu0 %vm254_vm2, %v241_v8  ;;  %4460 = vmatprep.subr.bf16.mxu1 %v5515_v2 }
  0x76   : > { %4453 = vmatpush3.bf16.msra.mxu0 %v5705_v1  ;;  %4456 = vmatprep.mubr.msk.bf16.mxu0 %vm5516_vm1, %v5515_v2 }
  0x77   : > { %4449 = vmatmul.mubr.msk.bf16.vlgmr.msra.gmra.mrb[4].mxu1 %vm254_vm2, %v241_v8  ;;  %4454 = vmatprep.subr.bf16.mxu0 %v5515_v2 }
  0x78   : > { %4461 = vmatpush3.bf16.msra.mxu1 %v5709_v3  ;;  %4464 = vmatprep.mubr.msk.bf16.mxu1 %vm5516_vm1, %v5515_v2 }
  0x79   : > { %4462 = vmatprep.subr.bf16.mxu1 %v5515_v2 }
  0x7a   : > { %4455 = vmatpush3.bf16.msra.mxu0 %v5712_v4 }
  0x7b   : > { %4468 = vmatprep.subr.bf16.mxu0 %v5515_v2 }
  0x7c   : > { %4463 = vmatpush3.bf16.msra.mxu1 %v5718_v5 }
  0x7d   : > { %4476 = vmatprep.subr.bf16.mxu1 %v5515_v2 }
 0x140   : > { %v292_v15 = vpop.f32.mrb[0].mxu0 }
 0x141   : > { %v299_v17 = vadd.f32 %v292_v15, %v233_v13  ;;  %v347_v18 = vpop.f32.mrb[0].mxu1  ;;  %v4426_v19 = vpop.f32.mrb[1].mxu0 }
 0x142   : > { %v354_v21 = vadd.f32 %v347_v18, %v235_v14  ;;  %v4434_v22 = vpop.f32.mrb[1].mxu1  ;;  %v295_v23 = vpop.f32.mrb[2].mxu0 }
 0x143   : > { %v466_v24 = vmul.f32 0.5, %v299_v17  ;;  %v300_v25 = vadd.f32 %v295_v23, %v234_v16  ;;  %v350_v26 = vpop.f32.mrb[2].mxu1  ;;  %v4427_v27 = vpop.f32.mrb[3].mxu0 }
 0x144   : > { %v474_v28 = vmul.f32 0.5, %v354_v21  ;;  %v355_v29 = vadd.f32 %v350_v26, %v236_v20  ;;  %v4435_v30 = vpop.f32.mrb[3].mxu1 }
 0x145   : > { %5022 = vtanh.f32 %v466_v24  ;;  %v467_v31 = vmul.f32 0.5, %v300_v25  ;;  %v4010_v30 = vld [vmem:[%s5691_s24 + $0x50] sm:$0xff] }
 0x146   : > { %5024 = vtanh.f32 %v474_v28  ;;  %v475_v32 = vmul.f32 0.5, %v355_v29  ;;  %v4008_v29 = vld [vmem:[%s5691_s24 + $0x40] sm:$0xff] }
 0x147   : > { %5026 = vtanh.f32 %v467_v31 }
 0x148   : > { %5028 = vtanh.f32 %v475_v32  ;;  %v402_v34 = vpop.f32.mrb[4].mxu0 }
 0x149   : > { %v409_v37 = vadd.f32 %v402_v34, %v237_v33  ;;  %v4442_v38 = vpop.f32.mrb[5].mxu0  ;;  %v4009_v33 = vld [vmem:[%s5691_s24 + $0x48] sm:$0xff]  ;;  %v4011_v34 = vld [vmem:[%s5691_s24 + $0x58] sm:$0xff] }
 0x14a   : > { %v405_v39 = vpop.f32.mrb[6].mxu0  ;;  %v457_v40 = vpop.f32.mrb[4].mxu1 }
 0x14b   : > { %5030 = vtanh.f32 %v409_v37  ;;  %v410_v42 = vadd.f32 %v405_v39, %v238_v35  ;;  %v4443_v43 = vpop.f32.mrb[7].mxu0  ;;  %v464_v44 = vadd.f32 %v457_v40, %v239_v36  ;;  %v4450_v45 = vpop.f32.mrb[5].mxu1 }
 0x14c   : > { %v460_v46 = vpop.f32.mrb[6].mxu1 }
 0x14d   : > { %5032 = vtanh.f32 %v410_v42  ;;  %v484_v47 = vmul.f32 0.5, %v464_v44  ;;  %v465_v48 = vadd.f32 %v460_v46, %v240_v41  ;;  %v4451_v49 = vpop.f32.mrb[7].mxu1 }
 0x14e   : > { %v4012_v49 = vld [vmem:[%s5691_s24 + $0x60] sm:$0xff] }
 0x14f   : > { %v5023_v50 = vpop.eup %5022  ;;  %5034 = vtanh.f32 %v484_v47  ;;  %v485_v53 = vmul.f32 0.5, %v465_v48 }
 0x150   : > { %v5025_v51 = vpop.eup %5024  ;;  %v470_v52 = vadd.f32 1.0, %v5023_v50  ;;  %v4014_v50 = vld [vmem:[%s5691_s24 + $0x70] sm:$0xff] }
 0x151   : > { %v5027_v54 = vpop.eup %5026  ;;  %v478_v55 = vadd.f32 1.0, %v5025_v51  ;;  %5036 = vtanh.f32 %v485_v53  ;;  %v4013_v53 = vld [vmem:[%s5691_s24 + $0x68] sm:$0xff] }
 0x152   : > { %v5029_v56 = vpop.eup %5028  ;;  %v471_v58 = vadd.f32 1.0, %v5027_v54  ;;  %v472_v61 = vmul.f32 0.5, %v470_v52 }
 0x153   : > { %v480_v59 = vmul.f32 0.5, %v478_v55  ;;  %v479_v60 = vadd.f32 1.0, %v5029_v56 }
 0x154   : > { %v473_v7 = vmul.f32 0.5, %v471_v58 }
 0x155   : > { %v5031_v62 = vpop.eup %5030  ;;  %v492_v63 = vmul.f32 %v480_v59, %v231_v57  ;;  %v481_v6 = vmul.f32 0.5, %v479_v60  ;;  %v4015_v59 = vld [vmem:[%s5691_s24 + $0x78] sm:$0xff] }
 0x156   : > { %v494_v8 = vmul.f32 %v5031_v62, %v472_v61 }
 0x157   : > { %v5033_v13 = vpop.eup %5032  ;;  %v493_v14 = vmul.f32 %v481_v6, %v232_v0 }
 0x158   : > { %v5771_v15 = vadd.f32 %v494_v8, %v492_v63  ;;  %v495_v16 = vmul.f32 %v5033_v13, %v473_v7 }
 0x159   : > { %v5035_v17 = vpop.eup %5034 }
 0x15a   : > { %5038 = vtanh.f32 %v5771_v15  ;;  %v5774_v18 = vadd.f32 %v495_v16, %v493_v14  ;;  %v488_v19 = vadd.f32 1.0, %v5035_v17 }
 0x15b   : > { %v5037_v20 = vpop.eup %5036 }
 0x15c   : > { %5040 = vtanh.f32 %v5774_v18  ;;  %v490_v21 = vmul.f32 0.5, %v488_v19  ;;  %v489_v22 = vadd.f32 1.0, %v5037_v20 }
 0x15e   : > { %v491_v25 = vmul.f32 0.5, %v489_v22 }
 0x164   : > { %v5039_v23 = vpop.eup %5038 }
 0x165   : > { %v500_v24 = vmul.f32 %v5039_v23, %v490_v21 }
 0x166   : > { %v5041_v26 = vpop.eup %5040 }
 0x167   : > { %502 = vst.msk [vmem:[%s5702_s4] sm:$0xff] %vm254_vm2, %v500_v24  ;;  %v501_v27 = vmul.f32 %v5041_v26, %v491_v25 }
 0x169   : > { %503 = vst.msk [vmem:[%s5702_s4 + $0x8] sm:$0xff] %vm254_vm2, %v501_v27  ;;  %v513_v28 = vpack.c.bf16 %v501_v27, %v500_v24 }
 0x16b   : > { %4457 = vmatmul.mubr.msk.bf16.vlgmr.msra.gmra.mrb[8].mxu0 %vm254_vm2, %v513_v28  ;;  %4465 = vmatmul.mubr.msk.bf16.vlgmr.msra.gmra.mrb[8].mxu1 %vm254_vm2, %v513_v28 }
 0x16c   : > { %4469 = vmatpush3.bf16.msra.mxu0 %v5724_v9  ;;  %4477 = vmatpush3.bf16.msra.mxu1 %v5729_v10 }
 0x16d   : > { %4470 = vmatprep.subr.bf16.mxu0 %v5515_v2  ;;  %4478 = vmatprep.subr.bf16.mxu1 %v5515_v2 }
 0x16e   : > { %4472 = vmatprep.mubr.msk.bf16.mxu0 %vm5516_vm1, %v5515_v2  ;;  %4480 = vmatprep.mubr.msk.bf16.mxu1 %vm5516_vm1, %v5515_v2 }
 0x170   : > { %4471 = vmatpush3.bf16.msra.mxu0 %v5734_v11  ;;  %4479 = vmatpush3.bf16.msra.mxu1 %v5740_v12 }
 0x171   : > { %4484 = vmatprep.subr.bf16.mxu0 %v5515_v2  ;;  %4492 = vmatprep.subr.bf16.mxu1 %v5515_v2 }
 0x173   : > { %4473 = vmatmul.mubr.msk.bf16.vlgmr.msra.gmra.mrb[12].mxu0 %vm254_vm2, %v513_v28  ;;  %4481 = vmatmul.mubr.msk.bf16.vlgmr.msra.gmra.mrb[12].mxu1 %vm254_vm2, %v513_v28 }
 0x174   : > { %4485 = vmatpush3.bf16.msra.mxu0 %v5705_v1  ;;  %4493 = vmatpush3.bf16.msra.mxu1 %v5709_v3 }
 0x175   : > { %4486 = vmatprep.subr.bf16.mxu0 %v5515_v2  ;;  %4494 = vmatprep.subr.bf16.mxu1 %v5515_v2 }
 0x176   : > { %4488 = vmatprep.mubr.msk.bf16.mxu0 %vm5516_vm1, %v5515_v2  ;;  %4496 = vmatprep.mubr.msk.bf16.mxu1 %vm5516_vm1, %v5515_v2 }
 0x178   : > { %4487 = vmatpush3.bf16.msra.mxu0 %v5712_v4  ;;  %4495 = vmatpush3.bf16.msra.mxu1 %v5718_v5 }
 0x179   : > { %4500 = vmatprep.subr.bf16.mxu0 %v5515_v2  ;;  %4508 = vmatprep.subr.bf16.mxu1 %v5515_v2 }
 0x23e   : > { %v551_v31 = vpop.f32.mrb[8].mxu0  ;;  %v594_v32 = vpop.f32.mrb[8].mxu1 }
 0x23f   : > { %v558_v35 = vadd.f32 %v4008_v29, %v551_v31  ;;  %v601_v36 = vadd.f32 %v4010_v30, %v594_v32  ;;  %v4458_v37 = vpop.f32.mrb[9].mxu0  ;;  %v4466_v38 = vpop.f32.mrb[9].mxu1 }
 0x240   : > { %v554_v39 = vpop.f32.mrb[10].mxu0  ;;  %v597_v40 = vpop.f32.mrb[10].mxu1 }
 0x241   : > { %v689_v41 = vmul.f32 0.5, %v558_v35  ;;  %v697_v42 = vmul.f32 0.5, %v601_v36  ;;  %v559_v43 = vadd.f32 %v4009_v33, %v554_v39  ;;  %v602_v44 = vadd.f32 %v4011_v34, %v597_v40  ;;  %v4459_v45 = vpop.f32.mrb[11].mxu0  ;;  %v4467_v46 = vpop.f32.mrb[11].mxu1 }
 0x243   : > { %5042 = vtanh.f32 %v689_v41  ;;  %v690_v47 = vmul.f32 0.5, %v559_v43  ;;  %v698_v48 = vmul.f32 0.5, %v602_v44  ;;  %v4022_v43 = vld [vmem:[%s5691_s24 + $0x80] sm:$0xff]  ;;  %v4024_v44 = vld [vmem:[%s5691_s24 + $0x90] sm:$0xff] }
 0x244   : > { %5044 = vtanh.f32 %v697_v42 }
 0x245   : > { %5046 = vtanh.f32 %v690_v47  ;;  %v4023_v47 = vld [vmem:[%s5691_s24 + $0x88] sm:$0xff] }
 0x246   : > { %5048 = vtanh.f32 %v698_v48  ;;  %v637_v51 = vpop.f32.mrb[12].mxu0  ;;  %v680_v52 = vpop.f32.mrb[12].mxu1  ;;  %v4025_v48 = vld [vmem:[%s5691_s24 + $0x98] sm:$0xff] }
 0x247   : > { %v644_v54 = vadd.f32 %v4012_v49, %v637_v51  ;;  %v4474_v55 = vpop.f32.mrb[13].mxu0  ;;  %v4482_v56 = vpop.f32.mrb[13].mxu1  ;;  %v687_v57 = vadd.f32 %v4014_v50, %v680_v52 }
 0x248   : > { %v640_v58 = vpop.f32.mrb[14].mxu0  ;;  %v683_v60 = vpop.f32.mrb[14].mxu1 }
 0x249   : > { %5050 = vtanh.f32 %v644_v54  ;;  %v645_v61 = vadd.f32 %v4013_v53, %v640_v58  ;;  %v4475_v62 = vpop.f32.mrb[15].mxu0  ;;  %v4483_v63 = vpop.f32.mrb[15].mxu1  ;;  %v688_v0 = vadd.f32 %v4015_v59, %v683_v60  ;;  %v707_v6 = vmul.f32 0.5, %v687_v57 }
 0x24a   : > { %v4026_v63 = vld [vmem:[%s5691_s24 + $0xa0] sm:$0xff] }
 0x24b   : > { %5052 = vtanh.f32 %v645_v61  ;;  %v708_v17 = vmul.f32 0.5, %v688_v0  ;;  %v4028_v0 = vld [vmem:[%s5691_s24 + $0xb0] sm:$0xff] }
 0x24c   : > { %5054 = vtanh.f32 %v707_v6 }
 0x24d   : > { %v5043_v7 = vpop.eup %5042  ;;  %5056 = vtanh.f32 %v708_v17 }
 0x24e   : > { %v5045_v8 = vpop.eup %5044  ;;  %v693_v13 = vadd.f32 1.0, %v5043_v7 }
 0x24f   : > { %v5047_v14 = vpop.eup %5046  ;;  %v701_v16 = vadd.f32 1.0, %v5045_v8  ;;  %v4027_v8 = vld [vmem:[%s5691_s24 + $0xa8] sm:$0xff] }
 0x250   : > { %v5049_v19 = vpop.eup %5048  ;;  %v694_v21 = vadd.f32 1.0, %v5047_v14  ;;  %v695_v23 = vmul.f32 0.5, %v693_v13 }
 0x251   : > { %v703_v20 = vmul.f32 0.5, %v701_v16  ;;  %v702_v22 = vadd.f32 1.0, %v5049_v19 }
 0x252   : > { %v696_v28 = vmul.f32 0.5, %v694_v21 }
 0x253   : > { %v5051_v24 = vpop.eup %5050  ;;  %v704_v25 = vmul.f32 0.5, %v702_v22  ;;  %v715_v26 = vmul.f32 %v703_v20, %v5771_v15  ;;  %v4029_v20 = vld [vmem:[%s5691_s24 + $0xb8] sm:$0xff] }
 0x254   : > { %v717_v27 = vmul.f32 %v5051_v24, %v695_v23 }
 0x255   : > { %v5053_v29 = vpop.eup %5052  ;;  %v716_v31 = vmul.f32 %v704_v25, %v5774_v18 }
 0x256   : > { %v5818_v30 = vadd.f32 %v717_v27, %v715_v26  ;;  %v718_v32 = vmul.f32 %v5053_v29, %v696_v28  ;;  %v5055_v34 = vpop.eup %5054 }
 0x257   : > { %v5057_v35 = vpop.eup %5056  ;;  %v711_v36 = vadd.f32 1.0, %v5055_v34 }
 0x258   : > { %5058 = vtanh.f32 %v5818_v30  ;;  %v5822_v33 = vadd.f32 %v718_v32, %v716_v31  ;;  %v712_v15 = vadd.f32 1.0, %v5057_v35 }
 0x259   : > { %v713_v37 = vmul.f32 0.5, %v711_v36 }
 0x25a   : > { %5060 = vtanh.f32 %v5822_v33  ;;  %v714_v40 = vmul.f32 0.5, %v712_v15 }
 0x262   : > { %v5059_v38 = vpop.eup %5058 }
 0x263   : > { %v723_v39 = vmul.f32 %v5059_v38, %v713_v37 }
 0x264   : > { %v5061_v41 = vpop.eup %5060 }
 0x265   : > { %4020 = vst.msk [vmem:[%s5702_s4 + $0x10] sm:$0xff] %vm254_vm2, %v723_v39  ;;  %v724_v18 = vmul.f32 %v5061_v41, %v714_v40 }
 0x267   : > { %4021 = vst.msk [vmem:[%s5702_s4 + $0x18] sm:$0xff] %vm254_vm2, %v724_v18  ;;  %v737_v42 = vpack.c.bf16 %v724_v18, %v723_v39 }
 0x269   : > { %4489 = vmatmul.mubr.msk.bf16.vlgmr.msra.gmra.mrb[16].mxu0 %vm254_vm2, %v737_v42  ;;  %4497 = vmatmul.mubr.msk.bf16.vlgmr.msra.gmra.mrb[16].mxu1 %vm254_vm2, %v737_v42 }
 0x26a   : > { %4501 = vmatpush3.bf16.msra.mxu0 %v5724_v9  ;;  %4509 = vmatpush3.bf16.msra.mxu1 %v5729_v10 }
 0x26b   : > { %4502 = vmatprep.subr.bf16.mxu0 %v5515_v2  ;;  %4510 = vmatprep.subr.bf16.mxu1 %v5515_v2 }
 0x26c   : > { %4504 = vmatprep.mubr.msk.bf16.mxu0 %vm5516_vm1, %v5515_v2  ;;  %4512 = vmatprep.mubr.msk.bf16.mxu1 %vm5516_vm1, %v5515_v2 }
 0x26e   : > { %4503 = vmatpush3.bf16.msra.mxu0 %v5734_v11  ;;  %4511 = vmatpush3.bf16.msra.mxu1 %v5740_v12 }
 0x26f   : > { %4516 = vmatprep.subr.bf16.mxu0 %v5515_v2  ;;  %4524 = vmatprep.subr.bf16.mxu1 %v5515_v2 }
 0x271   : > { %4505 = vmatmul.mubr.msk.bf16.vlgmr.msra.gmra.mrb[20].mxu0 %vm254_vm2, %v737_v42  ;;  %4513 = vmatmul.mubr.msk.bf16.vlgmr.msra.gmra.mrb[20].mxu1 %vm254_vm2, %v737_v42 }
 0x272   : > { %4517 = vmatpush3.bf16.msra.mxu0 %v5705_v1  ;;  %4525 = vmatpush3.bf16.msra.mxu1 %v5709_v3 }
 0x273   : > { %4518 = vmatprep.subr.bf16.mxu0 %v5515_v2  ;;  %4526 = vmatprep.subr.bf16.mxu1 %v5515_v2 }
 0x274   : > { %4520 = vmatprep.mubr.msk.bf16.mxu0 %vm5516_vm1, %v5515_v2  ;;  %4528 = vmatprep.mubr.msk.bf16.mxu1 %vm5516_vm1, %v5515_v2 }
 0x276   : > { %4519 = vmatpush3.bf16.msra.mxu0 %v5712_v4  ;;  %4527 = vmatpush3.bf16.msra.mxu1 %v5718_v5 }
 0x277   : > { %4532 = vmatprep.subr.bf16.mxu0 %v5515_v2  ;;  %4540 = vmatprep.subr.bf16.mxu1 %v5515_v2 }
 0x33c   : > { %v775_v45 = vpop.f32.mrb[16].mxu0  ;;  %v818_v46 = vpop.f32.mrb[16].mxu1 }
 0x33d   : > { %v782_v49 = vadd.f32 %v4022_v43, %v775_v45  ;;  %v825_v50 = vadd.f32 %v4024_v44, %v818_v46  ;;  %v4490_v51 = vpop.f32.mrb[17].mxu0  ;;  %v4498_v52 = vpop.f32.mrb[17].mxu1 }
 0x33e   : > { %v778_v53 = vpop.f32.mrb[18].mxu0  ;;  %v821_v54 = vpop.f32.mrb[18].mxu1 }
 0x33f   : > { %v913_v55 = vmul.f32 0.5, %v782_v49  ;;  %v921_v56 = vmul.f32 0.5, %v825_v50  ;;  %v783_v57 = vadd.f32 %v4023_v47, %v778_v53  ;;  %v826_v58 = vadd.f32 %v4025_v48, %v821_v54  ;;  %v4491_v59 = vpop.f32.mrb[19].mxu0  ;;  %v4499_v60 = vpop.f32.mrb[19].mxu1 }
 0x341   : > { %5062 = vtanh.f32 %v913_v55  ;;  %v914_v61 = vmul.f32 0.5, %v783_v57  ;;  %v922_v62 = vmul.f32 0.5, %v826_v58  ;;  %v4036_v57 = vld [vmem:[%s5691_s24 + $0xc0] sm:$0xff]  ;;  %v4038_v58 = vld [vmem:[%s5691_s24 + $0xd0] sm:$0xff] }
 0x342   : > { %5064 = vtanh.f32 %v921_v56 }
 0x343   : > { %5066 = vtanh.f32 %v914_v61  ;;  %v4037_v61 = vld [vmem:[%s5691_s24 + $0xc8] sm:$0xff] }
 0x344   : > { %5068 = vtanh.f32 %v922_v62  ;;  %v861_v6 = vpop.f32.mrb[20].mxu0  ;;  %v904_v7 = vpop.f32.mrb[20].mxu1  ;;  %v4039_v62 = vld [vmem:[%s5691_s24 + $0xd8] sm:$0xff] }
 0x345   : > { %v868_v13 = vadd.f32 %v4026_v63, %v861_v6  ;;  %v4506_v14 = vpop.f32.mrb[21].mxu0  ;;  %v4514_v16 = vpop.f32.mrb[21].mxu1  ;;  %v911_v17 = vadd.f32 %v4028_v0, %v904_v7 }
 0x346   : > { %v864_v19 = vpop.f32.mrb[22].mxu0  ;;  %v907_v21 = vpop.f32.mrb[22].mxu1 }
 0x347   : > { %5070 = vtanh.f32 %v868_v13  ;;  %v869_v22 = vadd.f32 %v4027_v8, %v864_v19  ;;  %v4507_v23 = vpop.f32.mrb[23].mxu0  ;;  %v4515_v24 = vpop.f32.mrb[23].mxu1  ;;  %v912_v25 = vadd.f32 %v4029_v20, %v907_v21  ;;  %v931_v26 = vmul.f32 0.5, %v911_v17 }
 0x348   : > { %v4040_v24 = vld [vmem:[%s5691_s24 + $0xe0] sm:$0xff] }
 0x349   : > { %5072 = vtanh.f32 %v869_v22  ;;  %v932_v34 = vmul.f32 0.5, %v912_v25  ;;  %v4042_v25 = vld [vmem:[%s5691_s24 + $0xf0] sm:$0xff] }
 0x34a   : > { %5074 = vtanh.f32 %v931_v26 }
 0x34b   : > { %v5063_v27 = vpop.eup %5062  ;;  %5076 = vtanh.f32 %v932_v34 }
 0x34c   : > { %v5065_v28 = vpop.eup %5064  ;;  %v917_v29 = vadd.f32 1.0, %v5063_v27 }
 0x34d   : > { %v5067_v31 = vpop.eup %5066  ;;  %v925_v32 = vadd.f32 1.0, %v5065_v28  ;;  %v4041_v28 = vld [vmem:[%s5691_s24 + $0xe8] sm:$0xff] }
 0x34e   : > { %v5069_v35 = vpop.eup %5068  ;;  %v918_v15 = vadd.f32 1.0, %v5067_v31  ;;  %v919_v38 = vmul.f32 0.5, %v917_v29 }
 0x34f   : > { %v927_v36 = vmul.f32 0.5, %v925_v32  ;;  %v926_v37 = vadd.f32 1.0, %v5069_v35 }
 0x350   : > { %v920_v42 = vmul.f32 0.5, %v918_v15 }
 0x351   : > { %v5071_v39 = vpop.eup %5070  ;;  %v928_v40 = vmul.f32 0.5, %v926_v37  ;;  %v939_v41 = vmul.f32 %v927_v36, %v5818_v30  ;;  %v4043_v36 = vld [vmem:[%s5691_s24 + $0xf8] sm:$0xff] }
 0x352   : > { %v941_v18 = vmul.f32 %v5071_v39, %v919_v38 }
 0x353   : > { %v5073_v43 = vpop.eup %5072  ;;  %v940_v45 = vmul.f32 %v928_v40, %v5822_v33 }
 0x354   : > { %v5866_v44 = vadd.f32 %v941_v18, %v939_v41  ;;  %v942_v46 = vmul.f32 %v5073_v43, %v920_v42  ;;  %v5075_v48 = vpop.eup %5074 }
 0x355   : > { %v5077_v49 = vpop.eup %5076  ;;  %v935_v50 = vadd.f32 1.0, %v5075_v48 }
 0x356   : > { %5078 = vtanh.f32 %v5866_v44  ;;  %v5870_v47 = vadd.f32 %v942_v46, %v940_v45  ;;  %v936_v30 = vadd.f32 1.0, %v5077_v49 }
 0x357   : > { %v937_v51 = vmul.f32 0.5, %v935_v50 }
 0x358   : > { %5080 = vtanh.f32 %v5870_v47  ;;  %v938_v54 = vmul.f32 0.5, %v936_v30 }
 0x360   : > { %v5079_v52 = vpop.eup %5078 }
 0x361   : > { %v947_v53 = vmul.f32 %v5079_v52, %v937_v51 }
 0x362   : > { %v5081_v55 = vpop.eup %5080 }
 0x363   : > { %4034 = vst.msk [vmem:[%s5702_s4 + $0x20] sm:$0xff] %vm254_vm2, %v947_v53  ;;  %v948_v33 = vmul.f32 %v5081_v55, %v938_v54 }
 0x365   : > { %4035 = vst.msk [vmem:[%s5702_s4 + $0x28] sm:$0xff] %vm254_vm2, %v948_v33  ;;  %v961_v56 = vpack.c.bf16 %v948_v33, %v947_v53 }
 0x367   : > { %4521 = vmatmul.mubr.msk.bf16.vlgmr.msra.gmra.mrb[24].mxu0 %vm254_vm2, %v961_v56  ;;  %4529 = vmatmul.mubr.msk.bf16.vlgmr.msra.gmra.mrb[24].mxu1 %vm254_vm2, %v961_v56 }
 0x368   : > { %4533 = vmatpush3.bf16.msra.mxu0 %v5724_v9  ;;  %4541 = vmatpush3.bf16.msra.mxu1 %v5729_v10 }
 0x369   : > { %4534 = vmatprep.subr.bf16.mxu0 %v5515_v2  ;;  %4542 = vmatprep.subr.bf16.mxu1 %v5515_v2 }
 0x36a   : > { %4536 = vmatprep.mubr.msk.bf16.mxu0 %vm5516_vm1, %v5515_v2  ;;  %4544 = vmatprep.mubr.msk.bf16.mxu1 %vm5516_vm1, %v5515_v2 }
 0x36c   : > { %4535 = vmatpush3.bf16.msra.mxu0 %v5734_v11  ;;  %4543 = vmatpush3.bf16.msra.mxu1 %v5740_v12 }
 0x36d   : > { %4548 = vmatprep.subr.bf16.mxu0 %v5515_v2  ;;  %4556 = vmatprep.subr.bf16.mxu1 %v5515_v2 }
 0x36f   : > { %4537 = vmatmul.mubr.msk.bf16.vlgmr.msra.gmra.mrb[28].mxu0 %vm254_vm2, %v961_v56  ;;  %4545 = vmatmul.mubr.msk.bf16.vlgmr.msra.gmra.mrb[28].mxu1 %vm254_vm2, %v961_v56 }
 0x370   : > { %4549 = vmatpush3.bf16.msra.mxu0 %v5705_v1  ;;  %4557 = vmatpush3.bf16.msra.mxu1 %v5709_v3 }
 0x371   : > { %4550 = vmatprep.subr.bf16.mxu0 %v5515_v2  ;;  %4558 = vmatprep.subr.bf16.mxu1 %v5515_v2 }
 0x372   : > { %4552 = vmatprep.mubr.msk.bf16.mxu0 %vm5516_vm1, %v5515_v2  ;;  %4560 = vmatprep.mubr.msk.bf16.mxu1 %vm5516_vm1, %v5515_v2 }
 0x374   : > { %4551 = vmatpush3.bf16.msra.mxu0 %v5712_v4  ;;  %4559 = vmatpush3.bf16.msra.mxu1 %v5718_v5 }
 0x375   : > { %4564 = vmatprep.subr.bf16.mxu0 %v5515_v2  ;;  %4572 = vmatprep.subr.bf16.mxu1 %v5515_v2 }
 0x43a   : > { %v999_v59 = vpop.f32.mrb[24].mxu0  ;;  %v1042_v60 = vpop.f32.mrb[24].mxu1 }
 0x43b   : > { %v1006_v63 = vadd.f32 %v4036_v57, %v999_v59  ;;  %v1049_v0 = vadd.f32 %v4038_v58, %v1042_v60  ;;  %v4522_v6 = vpop.f32.mrb[25].mxu0  ;;  %v4530_v7 = vpop.f32.mrb[25].mxu1 }
 0x43c   : > { %v1002_v8 = vpop.f32.mrb[26].mxu0  ;;  %v1045_v13 = vpop.f32.mrb[26].mxu1 }
 0x43d   : > { %v1137_v14 = vmul.f32 0.5, %v1006_v63  ;;  %v1145_v16 = vmul.f32 0.5, %v1049_v0  ;;  %v1007_v17 = vadd.f32 %v4037_v61, %v1002_v8  ;;  %v1050_v19 = vadd.f32 %v4039_v62, %v1045_v13  ;;  %v4523_v20 = vpop.f32.mrb[27].mxu0  ;;  %v4531_v21 = vpop.f32.mrb[27].mxu1 }
 0x43f   : > { %5082 = vtanh.f32 %v1137_v14  ;;  %v1138_v22 = vmul.f32 0.5, %v1007_v17  ;;  %v1146_v23 = vmul.f32 0.5, %v1050_v19 }
 0x440   : > { %5084 = vtanh.f32 %v1145_v16 }
 0x441   : > { %5086 = vtanh.f32 %v1138_v22 }
 0x442   : > { %5088 = vtanh.f32 %v1146_v23  ;;  %v1085_v26 = vpop.f32.mrb[28].mxu0  ;;  %v1128_v27 = vpop.f32.mrb[28].mxu1 }
 0x443   : > { %v1092_v29 = vadd.f32 %v4040_v24, %v1085_v26  ;;  %v4538_v31 = vpop.f32.mrb[29].mxu0  ;;  %v4546_v32 = vpop.f32.mrb[29].mxu1  ;;  %v1135_v34 = vadd.f32 %v4042_v25, %v1128_v27 }
 0x444   : > { %v1088_v35 = vpop.f32.mrb[30].mxu0  ;;  %v1131_v15 = vpop.f32.mrb[30].mxu1  ;;  %v4054_v31 = vld [vmem:[%s5691_s24 + $0x120] sm:$0xff]  ;;  %v4056_v32 = vld [vmem:[%s5691_s24 + $0x130] sm:$0xff] }
 0x445   : > { %5090 = vtanh.f32 %v1092_v29  ;;  %v1093_v37 = vadd.f32 %v4041_v28, %v1088_v35  ;;  %v4539_v38 = vpop.f32.mrb[31].mxu0  ;;  %v4547_v39 = vpop.f32.mrb[31].mxu1  ;;  %v1136_v40 = vadd.f32 %v4043_v36, %v1131_v15  ;;  %v1155_v41 = vmul.f32 0.5, %v1135_v34  ;;  %v4055_v36 = vld [vmem:[%s5691_s24 + $0x128] sm:$0xff] }
 0x447   : > { %5092 = vtanh.f32 %v1093_v37  ;;  %v1156_v48 = vmul.f32 0.5, %v1136_v40 }
 0x448   : > { %5094 = vtanh.f32 %v1155_v41  ;;  %v4057_v41 = vld [vmem:[%s5691_s24 + $0x138] sm:$0xff] }
 0x449   : > { %v5083_v18 = vpop.eup %5082  ;;  %5096 = vtanh.f32 %v1156_v48 }
 0x44a   : > { %v5085_v42 = vpop.eup %5084  ;;  %v1141_v43 = vadd.f32 1.0, %v5083_v18 }
 0x44b   : > { %v5087_v45 = vpop.eup %5086  ;;  %v1149_v46 = vadd.f32 1.0, %v5085_v42 }
 0x44c   : > { %v5089_v49 = vpop.eup %5088  ;;  %v1142_v30 = vadd.f32 1.0, %v5087_v45  ;;  %v1143_v52 = vmul.f32 0.5, %v1141_v43 }
 0x44d   : > { %v1151_v50 = vmul.f32 0.5, %v1149_v46  ;;  %v1150_v51 = vadd.f32 1.0, %v5089_v49 }
 0x44e   : > { %v1144_v56 = vmul.f32 0.5, %v1142_v30 }
 0x44f   : > { %v5091_v53 = vpop.eup %5090  ;;  %v1152_v54 = vmul.f32 0.5, %v1150_v51  ;;  %v1163_v55 = vmul.f32 %v1151_v50, %v5866_v44 }
 0x450   : > { %v1165_v33 = vmul.f32 %v5091_v53, %v1143_v52 }
 0x451   : > { %v5093_v57 = vpop.eup %5092  ;;  %v1164_v59 = vmul.f32 %v1152_v54, %v5870_v47 }
 0x452   : > { %v5914_v58 = vadd.f32 %v1165_v33, %v1163_v55  ;;  %v1166_v60 = vmul.f32 %v5093_v57, %v1144_v56  ;;  %v5095_v62 = vpop.eup %5094 }
 0x453   : > { %v5097_v63 = vpop.eup %5096  ;;  %v1159_v0 = vadd.f32 1.0, %v5095_v62 }
 0x454   : > { %5098 = vtanh.f32 %v5914_v58  ;;  %v5918_v61 = vadd.f32 %v1166_v60, %v1164_v59  ;;  %v1160_v44 = vadd.f32 1.0, %v5097_v63 }
 0x455   : > { %v1161_v6 = vmul.f32 0.5, %v1159_v0 }
 0x456   : > { %5100 = vtanh.f32 %v5918_v61  ;;  %v1162_v13 = vmul.f32 0.5, %v1160_v44 }
 0x45e   : > { %v5099_v7 = vpop.eup %5098 }
 0x45f   : > { %v1171_v8 = vmul.f32 %v5099_v7, %v1161_v6 }
 0x460   : > { %v5101_v14 = vpop.eup %5100 }
 0x461   : > { %4048 = vst.msk [vmem:[%s5702_s4 + $0x30] sm:$0xff] %vm254_vm2, %v1171_v8  ;;  %v1172_v47 = vmul.f32 %v5101_v14, %v1162_v13 }
 0x463   : > { %4049 = vst.msk [vmem:[%s5702_s4 + $0x38] sm:$0xff] %vm254_vm2, %v1172_v47  ;;  %v1185_v16 = vpack.c.bf16 %v1172_v47, %v1171_v8 }
 0x465   : > { %4553 = vmatmul.mubr.msk.bf16.vlgmr.msra.gmra.mrb[32].mxu0 %vm254_vm2, %v1185_v16  ;;  %4561 = vmatmul.mubr.msk.bf16.vlgmr.msra.gmra.mrb[32].mxu1 %vm254_vm2, %v1185_v16 }
 0x466   : > { %4565 = vmatpush3.bf16.msra.mxu0 %v5724_v9  ;;  %4573 = vmatpush3.bf16.msra.mxu1 %v5729_v10 }
 0x467   : > { %4566 = vmatprep.subr.bf16.mxu0 %v5515_v2  ;;  %4574 = vmatprep.subr.bf16.mxu1 %v5515_v2 }
 0x468   : > { %4568 = vmatprep.mubr.msk.bf16.mxu0 %vm5516_vm1, %v5515_v2  ;;  %4576 = vmatprep.mubr.msk.bf16.mxu1 %vm5516_vm1, %v5515_v2 }
 0x46a   : > { %4567 = vmatpush3.bf16.msra.mxu0 %v5734_v11  ;;  %4575 = vmatpush3.bf16.msra.mxu1 %v5740_v12  ;;  %v4051_v11 = vld [vmem:[%s5691_s24 + $0x108] sm:$0xff]  ;;  %v4053_v12 = vld [vmem:[%s5691_s24 + $0x118] sm:$0xff] }
 0x46b   : > { %4580 = vmatprep.subr.bf16.mxu0 %v5515_v2  ;;  %4588 = vmatprep.subr.bf16.mxu1 %v5515_v2 }
 0x46d   : > { %4569 = vmatmul.mubr.msk.bf16.vlgmr.msra.gmra.mrb[36].mxu0 %vm254_vm2, %v1185_v16  ;;  %4577 = vmatmul.mubr.msk.bf16.vlgmr.msra.gmra.mrb[36].mxu1 %vm254_vm2, %v1185_v16 }
 0x46e   : > { %4581 = vmatpush3.bf16.msra.mxu0 %v5705_v1  ;;  %4589 = vmatpush3.bf16.msra.mxu1 %v5709_v3  ;;  %v4050_v1 = vld [vmem:[%s5691_s24 + $0x100] sm:$0xff]  ;;  %v4052_v3 = vld [vmem:[%s5691_s24 + $0x110] sm:$0xff] }
 0x46f   : > { %4582 = vmatprep.subr.bf16.mxu0 %v5515_v2  ;;  %4590 = vmatprep.subr.bf16.mxu1 %v5515_v2 }
 0x470   : > { %4584 = vmatprep.mubr.msk.bf16.mxu0 %vm5516_vm1, %v5515_v2  ;;  %4592 = vmatprep.mubr.msk.bf16.mxu1 %vm5516_vm1, %v5515_v2 }
 0x472   : > { %4583 = vmatpush3.bf16.msra.mxu0 %v5712_v4  ;;  %4591 = vmatpush3.bf16.msra.mxu1 %v5718_v5 }
 0x473   : > { %4596 = vmatprep.subr.bf16.mxu0 %v5515_v2  ;;  %4604 = vmatprep.subr.bf16.mxu1 %v5515_v2 }
 0x538   : > { %v1223_v9 = vpop.f32.mrb[32].mxu0  ;;  %v1266_v10 = vpop.f32.mrb[32].mxu1 }
 0x539   : > { %v1230_v17 = vadd.f32 %v4050_v1, %v1223_v9  ;;  %v1273_v19 = vadd.f32 %v4052_v3, %v1266_v10  ;;  %v4554_v20 = vpop.f32.mrb[33].mxu0  ;;  %v4562_v21 = vpop.f32.mrb[33].mxu1 }
 0x53a   : > { %v1226_v22 = vpop.f32.mrb[34].mxu0  ;;  %v1269_v4 = vpop.f32.mrb[34].mxu1  ;;  %v5987_v20 = vld [vmem:[#allocation7 + $0x28] sm:$0xff]   ;;  %v5990_v21 = vld [vmem:[#allocation7 + $0x38] sm:$0xff]  }
 0x53b   : > { %v1361_v23 = vmul.f32 0.5, %v1230_v17  ;;  %v1369_v5 = vmul.f32 0.5, %v1273_v19  ;;  %v1231_v24 = vadd.f32 %v4051_v11, %v1226_v22  ;;  %v1274_v25 = vadd.f32 %v4053_v12, %v1269_v4  ;;  %v4555_v26 = vpop.f32.mrb[35].mxu0  ;;  %v4563_v27 = vpop.f32.mrb[35].mxu1  ;;  %v5975_v17 = vld [vmem:[#allocation7 + $0x20] sm:$0xff]   ;;  %v5978_v19 = vld [vmem:[#allocation7 + $0x30] sm:$0xff]  }
 0x53c   : > { %v5997_v22 = vld [vmem:[#allocation7] sm:$0xff]   ;;  %v6000_v4 = vld [vmem:[#allocation7 + $0x10] sm:$0xff]  }
 0x53d   : > { %5102 = vtanh.f32 %v1361_v23  ;;  %v1362_v28 = vmul.f32 0.5, %v1231_v24  ;;  %v1370_v29 = vmul.f32 0.5, %v1274_v25  ;;  %v6009_v23 = vld [vmem:[#allocation7 + $0x8] sm:$0xff]   ;;  %v4064_v24 = vld [vmem:[%s5691_s24 + $0x140] sm:$0xff]  ;;  %v4066_v25 = vld [vmem:[%s5691_s24 + $0x150] sm:$0xff] }
 0x53e   : > { %5104 = vtanh.f32 %v1369_v5  ;;  %v6012_v5 = vld [vmem:[#allocation7 + $0x18] sm:$0xff]  }
 0x53f   : > { %5106 = vtanh.f32 %v1362_v28  ;;  %v4065_v28 = vld [vmem:[%s5691_s24 + $0x148] sm:$0xff] }
 0x540   : > { %5108 = vtanh.f32 %v1370_v29  ;;  %v1309_v34 = vpop.f32.mrb[36].mxu0  ;;  %v1352_v35 = vpop.f32.mrb[36].mxu1  ;;  %v4067_v29 = vld [vmem:[%s5691_s24 + $0x158] sm:$0xff] }
 0x541   : > { %v1316_v15 = vadd.f32 %v4054_v31, %v1309_v34  ;;  %v4570_v37 = vpop.f32.mrb[37].mxu0  ;;  %v4578_v38 = vpop.f32.mrb[37].mxu1  ;;  %v1359_v39 = vadd.f32 %v4056_v32, %v1352_v35 }
 0x542   : > { %v1312_v40 = vpop.f32.mrb[38].mxu0  ;;  %v1355_v18 = vpop.f32.mrb[38].mxu1 }
 0x543   : > { %5110 = vtanh.f32 %v1316_v15  ;;  %v1317_v42 = vadd.f32 %v4055_v36, %v1312_v40  ;;  %v4571_v43 = vpop.f32.mrb[39].mxu0  ;;  %v4579_v45 = vpop.f32.mrb[39].mxu1  ;;  %v1360_v46 = vadd.f32 %v4057_v41, %v1355_v18  ;;  %v1379_v48 = vmul.f32 0.5, %v1359_v39 }
 0x544   : > { %v4068_v45 = vld [vmem:[%s5691_s24 + $0x160] sm:$0xff] }
 0x545   : > { %5112 = vtanh.f32 %v1317_v42  ;;  %v1380_v53 = vmul.f32 0.5, %v1360_v46  ;;  %v4070_v46 = vld [vmem:[%s5691_s24 + $0x170] sm:$0xff] }
 0x546   : > { %5114 = vtanh.f32 %v1379_v48 }
 0x547   : > { %v5103_v49 = vpop.eup %5102  ;;  %5116 = vtanh.f32 %v1380_v53 }
 0x548   : > { %v5105_v50 = vpop.eup %5104  ;;  %v1365_v30 = vadd.f32 1.0, %v5103_v49 }
 0x549   : > { %v5107_v51 = vpop.eup %5106  ;;  %v1373_v52 = vadd.f32 1.0, %v5105_v50  ;;  %v4069_v50 = vld [vmem:[%s5691_s24 + $0x168] sm:$0xff] }
 0x54a   : > { %v5109_v54 = vpop.eup %5108  ;;  %v1366_v33 = vadd.f32 1.0, %v5107_v51  ;;  %v1367_v57 = vmul.f32 0.5, %v1365_v30 }
 0x54b   : > { %v1375_v55 = vmul.f32 0.5, %v1373_v52  ;;  %v1374_v56 = vadd.f32 1.0, %v5109_v54 }
 0x54c   : > { %v1368_v0 = vmul.f32 0.5, %v1366_v33 }
 0x54d   : > { %v5111_v59 = vpop.eup %5110  ;;  %v1376_v60 = vmul.f32 0.5, %v1374_v56  ;;  %v1387_v62 = vmul.f32 %v1375_v55, %v5914_v58  ;;  %v4071_v55 = vld [vmem:[%s5691_s24 + $0x178] sm:$0xff] }
 0x54e   : > { %v1389_v63 = vmul.f32 %v5111_v59, %v1367_v57 }
 0x54f   : > { %v5113_v44 = vpop.eup %5112  ;;  %v1388_v7 = vmul.f32 %v1376_v60, %v5918_v61 }
 0x550   : > { %v5962_v6 = vadd.f32 %v1389_v63, %v1387_v62  ;;  %v1390_v8 = vmul.f32 %v5113_v44, %v1368_v0  ;;  %v5115_v14 = vpop.eup %5114 }
 0x551   : > { %v5117_v47 = vpop.eup %5116  ;;  %v1383_v16 = vadd.f32 1.0, %v5115_v14 }
 0x552   : > { %5118 = vtanh.f32 %v5962_v6  ;;  %v5966_v13 = vadd.f32 %v1390_v8, %v1388_v7  ;;  %v1384_v58 = vadd.f32 1.0, %v5117_v47 }
 0x553   : > { %v1385_v1 = vmul.f32 0.5, %v1383_v16 }
 0x554   : > { %5120 = vtanh.f32 %v5966_v13  ;;  %v1386_v10 = vmul.f32 0.5, %v1384_v58 }
 0x55c   : > { %v5119_v3 = vpop.eup %5118 }
 0x55d   : > { %v1395_v9 = vmul.f32 %v5119_v3, %v1385_v1 }
 0x55e   : > { %v5121_v11 = vpop.eup %5120 }
 0x55f   : > { %4062 = vst.msk [vmem:[%s5702_s4 + $0x40] sm:$0xff] %vm254_vm2, %v1395_v9  ;;  %v1396_v61 = vmul.f32 %v5121_v11, %v1386_v10 }
 0x561   : > { %4063 = vst.msk [vmem:[%s5702_s4 + $0x48] sm:$0xff] %vm254_vm2, %v1396_v61  ;;  %v1409_v12 = vpack.c.bf16 %v1396_v61, %v1395_v9 }
 0x563   : > { %4585 = vmatmul.mubr.msk.bf16.vlgmr.msra.gmra.mrb[40].mxu0 %vm254_vm2, %v1409_v12  ;;  %4593 = vmatmul.mubr.msk.bf16.vlgmr.msra.gmra.mrb[40].mxu1 %vm254_vm2, %v1409_v12 }
 0x564   : > { %4597 = vmatpush3.bf16.msra.mxu0 %v5975_v17  ;;  %4605 = vmatpush3.bf16.msra.mxu1 %v5978_v19 }
 0x565   : > { %4598 = vmatprep.subr.bf16.mxu0 %v5515_v2  ;;  %4606 = vmatprep.subr.bf16.mxu1 %v5515_v2 }
 0x566   : > { %4600 = vmatprep.mubr.msk.bf16.mxu0 %vm5516_vm1, %v5515_v2  ;;  %4608 = vmatprep.mubr.msk.bf16.mxu1 %vm5516_vm1, %v5515_v2 }
 0x568   : > { %4599 = vmatpush3.bf16.msra.mxu0 %v5987_v20  ;;  %4607 = vmatpush3.bf16.msra.mxu1 %v5990_v21 }
 0x569   : > { %4612 = vmatprep.subr.bf16.mxu0 %v5515_v2  ;;  %4620 = vmatprep.subr.bf16.mxu1 %v5515_v2 }
 0x56b   : > { %4601 = vmatmul.mubr.msk.bf16.vlgmr.msra.gmra.mrb[44].mxu0 %vm254_vm2, %v1409_v12  ;;  %4609 = vmatmul.mubr.msk.bf16.vlgmr.msra.gmra.mrb[44].mxu1 %vm254_vm2, %v1409_v12 }
 0x56c   : > { %4613 = vmatpush3.bf16.msra.mxu0 %v5997_v22  ;;  %4621 = vmatpush3.bf16.msra.mxu1 %v6000_v4 }
 0x56d   : > { %4614 = vmatprep.subr.bf16.mxu0 %v5515_v2  ;;  %4622 = vmatprep.subr.bf16.mxu1 %v5515_v2 }
 0x56e   : > { %4616 = vmatprep.mubr.msk.bf16.mxu0 %vm5516_vm1, %v5515_v2  ;;  %4624 = vmatprep.mubr.msk.bf16.mxu1 %vm5516_vm1, %v5515_v2 }
 0x570   : > { %4615 = vmatpush3.bf16.msra.mxu0 %v6009_v23  ;;  %4623 = vmatpush3.bf16.msra.mxu1 %v6012_v5 }
 0x571   : > { %4628 = vmatprep.subr.bf16.mxu0 %v5515_v2  ;;  %4636 = vmatprep.subr.bf16.mxu1 %v5515_v2 }
 0x636   : > { %v1447_v26 = vpop.f32.mrb[40].mxu0  ;;  %v1490_v27 = vpop.f32.mrb[40].mxu1 }
 0x637   : > { %v1454_v31 = vadd.f32 %v4064_v24, %v1447_v26  ;;  %v1497_v32 = vadd.f32 %v4066_v25, %v1490_v27  ;;  %v4586_v34 = vpop.f32.mrb[41].mxu0  ;;  %v4594_v35 = vpop.f32.mrb[41].mxu1 }
 0x638   : > { %v1450_v36 = vpop.f32.mrb[42].mxu0  ;;  %v1493_v15 = vpop.f32.mrb[42].mxu1 }
 0x639   : > { %v1585_v37 = vmul.f32 0.5, %v1454_v31  ;;  %v1593_v38 = vmul.f32 0.5, %v1497_v32  ;;  %v1455_v39 = vadd.f32 %v4065_v28, %v1450_v36  ;;  %v1498_v40 = vadd.f32 %v4067_v29, %v1493_v15  ;;  %v4587_v41 = vpop.f32.mrb[43].mxu0  ;;  %v4595_v18 = vpop.f32.mrb[43].mxu1 }
 0x63b   : > { %5122 = vtanh.f32 %v1585_v37  ;;  %v1586_v42 = vmul.f32 0.5, %v1455_v39  ;;  %v1594_v43 = vmul.f32 0.5, %v1498_v40  ;;  %v4078_v39 = vld [vmem:[%s5691_s24 + $0x180] sm:$0xff]  ;;  %v4080_v40 = vld [vmem:[%s5691_s24 + $0x190] sm:$0xff] }
 0x63c   : > { %5124 = vtanh.f32 %v1593_v38 }
 0x63d   : > { %5126 = vtanh.f32 %v1586_v42  ;;  %v4079_v42 = vld [vmem:[%s5691_s24 + $0x188] sm:$0xff] }
 0x63e   : > { %5128 = vtanh.f32 %v1594_v43  ;;  %v1533_v48 = vpop.f32.mrb[44].mxu0  ;;  %v1576_v49 = vpop.f32.mrb[44].mxu1  ;;  %v4081_v43 = vld [vmem:[%s5691_s24 + $0x198] sm:$0xff] }
 0x63f   : > { %v1540_v30 = vadd.f32 %v4068_v45, %v1533_v48  ;;  %v4602_v51 = vpop.f32.mrb[45].mxu0  ;;  %v4610_v52 = vpop.f32.mrb[45].mxu1  ;;  %v1583_v53 = vadd.f32 %v4070_v46, %v1576_v49 }
 0x640   : > { %v1536_v54 = vpop.f32.mrb[46].mxu0  ;;  %v1579_v33 = vpop.f32.mrb[46].mxu1 }
 0x641   : > { %5130 = vtanh.f32 %v1540_v30  ;;  %v1541_v56 = vadd.f32 %v4069_v50, %v1536_v54  ;;  %v4603_v57 = vpop.f32.mrb[47].mxu0  ;;  %v4611_v59 = vpop.f32.mrb[47].mxu1  ;;  %v1584_v60 = vadd.f32 %v4071_v55, %v1579_v33  ;;  %v1603_v62 = vmul.f32 0.5, %v1583_v53 }
 0x642   : > { %v4082_v59 = vld [vmem:[%s5691_s24 + $0x1a0] sm:$0xff] }
 0x643   : > { %5132 = vtanh.f32 %v1541_v56  ;;  %v1604_v14 = vmul.f32 0.5, %v1584_v60  ;;  %v4084_v60 = vld [vmem:[%s5691_s24 + $0x1b0] sm:$0xff] }
 0x644   : > { %5134 = vtanh.f32 %v1603_v62 }
 0x645   : > { %v5123_v63 = vpop.eup %5122  ;;  %5136 = vtanh.f32 %v1604_v14 }
 0x646   : > { %v5125_v0 = vpop.eup %5124  ;;  %v1589_v44 = vadd.f32 1.0, %v5123_v63 }
 0x647   : > { %v5127_v7 = vpop.eup %5126  ;;  %v1597_v8 = vadd.f32 1.0, %v5125_v0  ;;  %v4083_v0 = vld [vmem:[%s5691_s24 + $0x1a8] sm:$0xff] }
 0x648   : > { %v5129_v47 = vpop.eup %5128  ;;  %v1590_v58 = vadd.f32 1.0, %v5127_v7  ;;  %v1591_v3 = vmul.f32 0.5, %v1589_v44 }
 0x649   : > { %v1599_v16 = vmul.f32 0.5, %v1597_v8  ;;  %v1598_v1 = vadd.f32 1.0, %v5129_v47 }
 0x64a   : > { %v1592_v12 = vmul.f32 0.5, %v1590_v58 }
 0x64b   : > { %v5131_v9 = vpop.eup %5130  ;;  %v1600_v10 = vmul.f32 0.5, %v1598_v1  ;;  %v1611_v11 = vmul.f32 %v1599_v16, %v5962_v6  ;;  %v4085_v16 = vld [vmem:[%s5691_s24 + $0x1b8] sm:$0xff] }
 0x64c   : > { %v1613_v61 = vmul.f32 %v5131_v9, %v1591_v3 }
 0x64d   : > { %v5133_v24 = vpop.eup %5132  ;;  %v1612_v26 = vmul.f32 %v1600_v10, %v5966_v13 }
 0x64e   : > { %v6026_v25 = vadd.f32 %v1613_v61, %v1611_v11  ;;  %v1614_v27 = vmul.f32 %v5133_v24, %v1592_v12  ;;  %v5135_v29 = vpop.eup %5134 }
 0x64f   : > { %v5137_v31 = vpop.eup %5136  ;;  %v1607_v32 = vadd.f32 1.0, %v5135_v29 }
 0x650   : > { %5138 = vtanh.f32 %v6026_v25  ;;  %v6030_v28 = vadd.f32 %v1614_v27, %v1612_v26  ;;  %v1608_v6 = vadd.f32 1.0, %v5137_v31 }
 0x651   : > { %v1609_v34 = vmul.f32 0.5, %v1607_v32 }
 0x652   : > { %5140 = vtanh.f32 %v6030_v28  ;;  %v1610_v15 = vmul.f32 0.5, %v1608_v6 }
 0x65a   : > { %v5139_v35 = vpop.eup %5138 }
 0x65b   : > { %v1619_v36 = vmul.f32 %v5139_v35, %v1609_v34 }
 0x65c   : > { %v5141_v37 = vpop.eup %5140 }
 0x65d   : > { %4076 = vst.msk [vmem:[%s5702_s4 + $0x50] sm:$0xff] %vm254_vm2, %v1619_v36  ;;  %v1620_v13 = vmul.f32 %v5141_v37, %v1610_v15 }
 0x65f   : > { %4077 = vst.msk [vmem:[%s5702_s4 + $0x58] sm:$0xff] %vm254_vm2, %v1620_v13  ;;  %v1633_v38 = vpack.c.bf16 %v1620_v13, %v1619_v36 }
 0x661   : > { %4617 = vmatmul.mubr.msk.bf16.vlgmr.msra.gmra.mrb[48].mxu0 %vm254_vm2, %v1633_v38  ;;  %4625 = vmatmul.mubr.msk.bf16.vlgmr.msra.gmra.mrb[48].mxu1 %vm254_vm2, %v1633_v38 }
 0x662   : > { %4629 = vmatpush3.bf16.msra.mxu0 %v5975_v17  ;;  %4637 = vmatpush3.bf16.msra.mxu1 %v5978_v19 }
 0x663   : > { %4630 = vmatprep.subr.bf16.mxu0 %v5515_v2  ;;  %4638 = vmatprep.subr.bf16.mxu1 %v5515_v2 }
 0x664   : > { %4632 = vmatprep.mubr.msk.bf16.mxu0 %vm5516_vm1, %v5515_v2  ;;  %4640 = vmatprep.mubr.msk.bf16.mxu1 %vm5516_vm1, %v5515_v2 }
 0x666   : > { %4631 = vmatpush3.bf16.msra.mxu0 %v5987_v20  ;;  %4639 = vmatpush3.bf16.msra.mxu1 %v5990_v21 }
 0x667   : > { %4644 = vmatprep.subr.bf16.mxu0 %v5515_v2  ;;  %4652 = vmatprep.subr.bf16.mxu1 %v5515_v2 }
 0x669   : > { %4633 = vmatmul.mubr.msk.bf16.vlgmr.msra.gmra.mrb[52].mxu0 %vm254_vm2, %v1633_v38  ;;  %4641 = vmatmul.mubr.msk.bf16.vlgmr.msra.gmra.mrb[52].mxu1 %vm254_vm2, %v1633_v38 }
 0x66a   : > { %4645 = vmatpush3.bf16.msra.mxu0 %v5997_v22  ;;  %4653 = vmatpush3.bf16.msra.mxu1 %v6000_v4 }
 0x66b   : > { %4646 = vmatprep.subr.bf16.mxu0 %v5515_v2  ;;  %4654 = vmatprep.subr.bf16.mxu1 %v5515_v2 }
 0x66c   : > { %4648 = vmatprep.mubr.msk.bf16.mxu0 %vm5516_vm1, %v5515_v2  ;;  %4656 = vmatprep.mubr.msk.bf16.mxu1 %vm5516_vm1, %v5515_v2 }
 0x66e   : > { %4647 = vmatpush3.bf16.msra.mxu0 %v6009_v23  ;;  %4655 = vmatpush3.bf16.msra.mxu1 %v6012_v5 }
 0x66f   : > { %4660 = vmatprep.subr.bf16.mxu0 %v5515_v2  ;;  %4668 = vmatprep.subr.bf16.mxu1 %v5515_v2 }
 0x734   : > { %v1671_v41 = vpop.f32.mrb[48].mxu0  ;;  %v1714_v18 = vpop.f32.mrb[48].mxu1 }
 0x735   : > { %v1678_v45 = vadd.f32 %v4078_v39, %v1671_v41  ;;  %v1721_v46 = vadd.f32 %v4080_v40, %v1714_v18  ;;  %v4618_v48 = vpop.f32.mrb[49].mxu0  ;;  %v4626_v49 = vpop.f32.mrb[49].mxu1 }
 0x736   : > { %v1674_v50 = vpop.f32.mrb[50].mxu0  ;;  %v1717_v30 = vpop.f32.mrb[50].mxu1 }
 0x737   : > { %v1809_v51 = vmul.f32 0.5, %v1678_v45  ;;  %v1817_v52 = vmul.f32 0.5, %v1721_v46  ;;  %v1679_v53 = vadd.f32 %v4079_v42, %v1674_v50  ;;  %v1722_v54 = vadd.f32 %v4081_v43, %v1717_v30  ;;  %v4619_v55 = vpop.f32.mrb[51].mxu0  ;;  %v4627_v33 = vpop.f32.mrb[51].mxu1 }
 0x739   : > { %5142 = vtanh.f32 %v1809_v51  ;;  %v1810_v56 = vmul.f32 0.5, %v1679_v53  ;;  %v1818_v57 = vmul.f32 0.5, %v1722_v54  ;;  %v4092_v53 = vld [vmem:[%s5691_s24 + $0x1c0] sm:$0xff]  ;;  %v4094_v54 = vld [vmem:[%s5691_s24 + $0x1d0] sm:$0xff] }
 0x73a   : > { %5144 = vtanh.f32 %v1817_v52 }
 0x73b   : > { %5146 = vtanh.f32 %v1810_v56  ;;  %v4093_v56 = vld [vmem:[%s5691_s24 + $0x1c8] sm:$0xff] }
 0x73c   : > { %5148 = vtanh.f32 %v1818_v57  ;;  %v1757_v62 = vpop.f32.mrb[52].mxu0  ;;  %v1800_v63 = vpop.f32.mrb[52].mxu1  ;;  %v4095_v57 = vld [vmem:[%s5691_s24 + $0x1d8] sm:$0xff] }
 0x73d   : > { %v1764_v44 = vadd.f32 %v4082_v59, %v1757_v62  ;;  %v4634_v7 = vpop.f32.mrb[53].mxu0  ;;  %v4642_v8 = vpop.f32.mrb[53].mxu1  ;;  %v1807_v14 = vadd.f32 %v4084_v60, %v1800_v63 }
 0x73e   : > { %v1760_v47 = vpop.f32.mrb[54].mxu0  ;;  %v1803_v58 = vpop.f32.mrb[54].mxu1 }
 0x73f   : > { %5150 = vtanh.f32 %v1764_v44  ;;  %v1765_v1 = vadd.f32 %v4083_v0, %v1760_v47  ;;  %v4635_v3 = vpop.f32.mrb[55].mxu0  ;;  %v4643_v9 = vpop.f32.mrb[55].mxu1  ;;  %v1808_v10 = vadd.f32 %v4085_v16, %v1803_v58  ;;  %v1827_v11 = vmul.f32 0.5, %v1807_v14 }
 0x740   : > { %v4096_v9 = vld [vmem:[%s5691_s24 + $0x1e0] sm:$0xff] }
 0x741   : > { %5152 = vtanh.f32 %v1765_v1  ;;  %v1828_v29 = vmul.f32 0.5, %v1808_v10  ;;  %v4098_v10 = vld [vmem:[%s5691_s24 + $0x1f0] sm:$0xff] }
 0x742   : > { %5154 = vtanh.f32 %v1827_v11 }
 0x743   : > { %v5143_v61 = vpop.eup %5142  ;;  %5156 = vtanh.f32 %v1828_v29 }
 0x744   : > { %v5145_v12 = vpop.eup %5144  ;;  %v1813_v24 = vadd.f32 1.0, %v5143_v61 }
 0x745   : > { %v5147_v26 = vpop.eup %5146  ;;  %v1821_v27 = vadd.f32 1.0, %v5145_v12  ;;  %v4097_v12 = vld [vmem:[%s5691_s24 + $0x1e8] sm:$0xff] }
 0x746   : > { %v5149_v31 = vpop.eup %5148  ;;  %v1814_v6 = vadd.f32 1.0, %v5147_v26  ;;  %v1815_v35 = vmul.f32 0.5, %v1813_v24 }
 0x747   : > { %v1823_v32 = vmul.f32 0.5, %v1821_v27  ;;  %v1822_v34 = vadd.f32 1.0, %v5149_v31 }
 0x748   : > { %v1816_v38 = vmul.f32 0.5, %v1814_v6 }
 0x749   : > { %v5151_v36 = vpop.eup %5150  ;;  %v1824_v15 = vmul.f32 0.5, %v1822_v34  ;;  %v1835_v37 = vmul.f32 %v1823_v32, %v6026_v25  ;;  %v4099_v32 = vld [vmem:[%s5691_s24 + $0x1f8] sm:$0xff] }
 0x74a   : > { %v1837_v13 = vmul.f32 %v5151_v36, %v1815_v35 }
 0x74b   : > { %v5153_v39 = vpop.eup %5152  ;;  %v1836_v41 = vmul.f32 %v1824_v15, %v6030_v28 }
 0x74c   : > { %v6074_v40 = vadd.f32 %v1837_v13, %v1835_v37  ;;  %v1838_v18 = vmul.f32 %v5153_v39, %v1816_v38  ;;  %v5155_v43 = vpop.eup %5154 }
 0x74d   : > { %v5157_v45 = vpop.eup %5156  ;;  %v1831_v46 = vadd.f32 1.0, %v5155_v43 }
 0x74e   : > { %5158 = vtanh.f32 %v6074_v40  ;;  %v6078_v42 = vadd.f32 %v1838_v18, %v1836_v41  ;;  %v1832_v25 = vadd.f32 1.0, %v5157_v45 }
 0x74f   : > { %v1833_v48 = vmul.f32 0.5, %v1831_v46 }
 0x750   : > { %5160 = vtanh.f32 %v6078_v42  ;;  %v1834_v30 = vmul.f32 0.5, %v1832_v25 }
 0x758   : > { %v5159_v49 = vpop.eup %5158 }
 0x759   : > { %v1843_v50 = vmul.f32 %v5159_v49, %v1833_v48 }
 0x75a   : > { %v5161_v51 = vpop.eup %5160 }
 0x75b   : > { %4090 = vst.msk [vmem:[%s5702_s4 + $0x60] sm:$0xff] %vm254_vm2, %v1843_v50  ;;  %v1844_v28 = vmul.f32 %v5161_v51, %v1834_v30 }
 0x75d   : > { %4091 = vst.msk [vmem:[%s5702_s4 + $0x68] sm:$0xff] %vm254_vm2, %v1844_v28  ;;  %v1857_v52 = vpack.c.bf16 %v1844_v28, %v1843_v50 }
 0x75f   : > { %4649 = vmatmul.mubr.msk.bf16.vlgmr.msra.gmra.mrb[56].mxu0 %vm254_vm2, %v1857_v52  ;;  %4657 = vmatmul.mubr.msk.bf16.vlgmr.msra.gmra.mrb[56].mxu1 %vm254_vm2, %v1857_v52 }
 0x760   : > { %4661 = vmatpush3.bf16.msra.mxu0 %v5975_v17  ;;  %4669 = vmatpush3.bf16.msra.mxu1 %v5978_v19 }
 0x761   : > { %4662 = vmatprep.subr.bf16.mxu0 %v5515_v2  ;;  %4670 = vmatprep.subr.bf16.mxu1 %v5515_v2 }
 0x762   : > { %4664 = vmatprep.mubr.msk.bf16.mxu0 %vm5516_vm1, %v5515_v2  ;;  %4672 = vmatprep.mubr.msk.bf16.mxu1 %vm5516_vm1, %v5515_v2 }
 0x764   : > { %4663 = vmatpush3.bf16.msra.mxu0 %v5987_v20  ;;  %4671 = vmatpush3.bf16.msra.mxu1 %v5990_v21 }
 0x765   : > { %4676 = vmatprep.subr.bf16.mxu0 %v5515_v2  ;;  %4684 = vmatprep.subr.bf16.mxu1 %v5515_v2 }
 0x767   : > { %4665 = vmatmul.mubr.msk.bf16.vlgmr.msra.gmra.mrb[60].mxu0 %vm254_vm2, %v1857_v52  ;;  %4673 = vmatmul.mubr.msk.bf16.vlgmr.msra.gmra.mrb[60].mxu1 %vm254_vm2, %v1857_v52 }
 0x768   : > { %4677 = vmatpush3.bf16.msra.mxu0 %v5997_v22  ;;  %4685 = vmatpush3.bf16.msra.mxu1 %v6000_v4 }
 0x769   : > { %4678 = vmatprep.subr.bf16.mxu0 %v5515_v2  ;;  %4686 = vmatprep.subr.bf16.mxu1 %v5515_v2 }
 0x76a   : > { %4680 = vmatprep.mubr.msk.bf16.mxu0 %vm5516_vm1, %v5515_v2  ;;  %4688 = vmatprep.mubr.msk.bf16.mxu1 %vm5516_vm1, %v5515_v2 }
 0x76c   : > { %4679 = vmatpush3.bf16.msra.mxu0 %v6009_v23  ;;  %4687 = vmatpush3.bf16.msra.mxu1 %v6012_v5 }
 0x76d   : > { %4692 = vmatprep.subr.bf16.mxu0 %v5515_v2  ;;  %4700 = vmatprep.subr.bf16.mxu1 %v5515_v2 }
 0x832   : > { %v1895_v55 = vpop.f32.mrb[56].mxu0  ;;  %v1938_v33 = vpop.f32.mrb[56].mxu1 }
 0x833   : > { %v1902_v59 = vadd.f32 %v4092_v53, %v1895_v55  ;;  %v1945_v60 = vadd.f32 %v4094_v54, %v1938_v33  ;;  %v4650_v62 = vpop.f32.mrb[57].mxu0  ;;  %v4658_v63 = vpop.f32.mrb[57].mxu1 }
 0x834   : > { %v1898_v0 = vpop.f32.mrb[58].mxu0  ;;  %v1941_v44 = vpop.f32.mrb[58].mxu1 }
 0x835   : > { %v2033_v7 = vmul.f32 0.5, %v1902_v59  ;;  %v2041_v8 = vmul.f32 0.5, %v1945_v60  ;;  %v1903_v14 = vadd.f32 %v4093_v56, %v1898_v0  ;;  %v1946_v47 = vadd.f32 %v4095_v57, %v1941_v44  ;;  %v4651_v16 = vpop.f32.mrb[59].mxu0  ;;  %v4659_v58 = vpop.f32.mrb[59].mxu1 }
 0x837   : > { %5162 = vtanh.f32 %v2033_v7  ;;  %v2034_v1 = vmul.f32 0.5, %v1903_v14  ;;  %v2042_v3 = vmul.f32 0.5, %v1946_v47  ;;  %v4106_v14 = vld [vmem:[%s5691_s24 + $0x200] sm:$0xff]  ;;  %v4108_v47 = vld [vmem:[%s5691_s24 + $0x210] sm:$0xff] }
 0x838   : > { %5164 = vtanh.f32 %v2041_v8 }
 0x839   : > { %5166 = vtanh.f32 %v2034_v1  ;;  %v4107_v1 = vld [vmem:[%s5691_s24 + $0x208] sm:$0xff] }
 0x83a   : > { %5168 = vtanh.f32 %v2042_v3  ;;  %v1981_v11 = vpop.f32.mrb[60].mxu0  ;;  %v2024_v61 = vpop.f32.mrb[60].mxu1  ;;  %v4109_v3 = vld [vmem:[%s5691_s24 + $0x218] sm:$0xff] }
 0x83b   : > { %v1988_v24 = vadd.f32 %v4096_v9, %v1981_v11  ;;  %v4666_v26 = vpop.f32.mrb[61].mxu0  ;;  %v4674_v27 = vpop.f32.mrb[61].mxu1  ;;  %v2031_v29 = vadd.f32 %v4098_v10, %v2024_v61 }
 0x83c   : > { %v1984_v31 = vpop.f32.mrb[62].mxu0  ;;  %v2027_v6 = vpop.f32.mrb[62].mxu1 }
 0x83d   : > { %5170 = vtanh.f32 %v1988_v24  ;;  %v1989_v34 = vadd.f32 %v4097_v12, %v1984_v31  ;;  %v4667_v35 = vpop.f32.mrb[63].mxu0  ;;  %v4675_v36 = vpop.f32.mrb[63].mxu1  ;;  %v2032_v15 = vadd.f32 %v4099_v32, %v2027_v6  ;;  %v2051_v37 = vmul.f32 0.5, %v2031_v29 }
 0x83e   : > { %v4110_v36 = vld [vmem:[%s5691_s24 + $0x220] sm:$0xff] }
 0x83f   : > { %5172 = vtanh.f32 %v1989_v34  ;;  %v2052_v43 = vmul.f32 0.5, %v2032_v15  ;;  %v4112_v15 = vld [vmem:[%s5691_s24 + $0x230] sm:$0xff] }
 0x840   : > { %5174 = vtanh.f32 %v2051_v37 }
 0x841   : > { %v5163_v13 = vpop.eup %5162  ;;  %5176 = vtanh.f32 %v2052_v43 }
 0x842   : > { %v5165_v38 = vpop.eup %5164  ;;  %v2037_v39 = vadd.f32 1.0, %v5163_v13 }
 0x843   : > { %v5167_v41 = vpop.eup %5166  ;;  %v2045_v18 = vadd.f32 1.0, %v5165_v38  ;;  %v4111_v38 = vld [vmem:[%s5691_s24 + $0x228] sm:$0xff] }
 0x844   : > { %v5169_v45 = vpop.eup %5168  ;;  %v2038_v25 = vadd.f32 1.0, %v5167_v41  ;;  %v2039_v49 = vmul.f32 0.5, %v2037_v39 }
 0x845   : > { %v2047_v46 = vmul.f32 0.5, %v2045_v18  ;;  %v2046_v48 = vadd.f32 1.0, %v5169_v45 }
 0x846   : > { %v2040_v52 = vmul.f32 0.5, %v2038_v25 }
 0x847   : > { %v5171_v50 = vpop.eup %5170  ;;  %v2048_v30 = vmul.f32 0.5, %v2046_v48  ;;  %v2059_v51 = vmul.f32 %v2047_v46, %v6074_v40  ;;  %v4113_v46 = vld [vmem:[%s5691_s24 + $0x238] sm:$0xff] }
 0x848   : > { %v2061_v28 = vmul.f32 %v5171_v50, %v2039_v49 }
 0x849   : > { %v5173_v53 = vpop.eup %5172  ;;  %v2060_v55 = vmul.f32 %v2048_v30, %v6078_v42 }
 0x84a   : > { %v6122_v54 = vadd.f32 %v2061_v28, %v2059_v51  ;;  %v2062_v33 = vmul.f32 %v5173_v53, %v2040_v52  ;;  %v5175_v57 = vpop.eup %5174 }
 0x84b   : > { %v5177_v59 = vpop.eup %5176  ;;  %v2055_v60 = vadd.f32 1.0, %v5175_v57 }
 0x84c   : > { %5178 = vtanh.f32 %v6122_v54  ;;  %v6126_v56 = vadd.f32 %v2062_v33, %v2060_v55  ;;  %v2056_v40 = vadd.f32 1.0, %v5177_v59 }
 0x84d   : > { %v2057_v62 = vmul.f32 0.5, %v2055_v60 }
 0x84e   : > { %5180 = vtanh.f32 %v6126_v56  ;;  %v2058_v44 = vmul.f32 0.5, %v2056_v40 }
 0x856   : > { %v5179_v63 = vpop.eup %5178 }
 0x857   : > { %v2067_v0 = vmul.f32 %v5179_v63, %v2057_v62 }
 0x858   : > { %v5181_v7 = vpop.eup %5180 }
 0x859   : > { %4104 = vst.msk [vmem:[%s5702_s4 + $0x70] sm:$0xff] %vm254_vm2, %v2067_v0  ;;  %v2068_v42 = vmul.f32 %v5181_v7, %v2058_v44 }
 0x85b   : > { %4105 = vst.msk [vmem:[%s5702_s4 + $0x78] sm:$0xff] %vm254_vm2, %v2068_v42  ;;  %v2081_v8 = vpack.c.bf16 %v2068_v42, %v2067_v0 }
 0x85d   : > { %4681 = vmatmul.mubr.msk.bf16.vlgmr.msra.gmra.mrb[64].mxu0 %vm254_vm2, %v2081_v8  ;;  %4689 = vmatmul.mubr.msk.bf16.vlgmr.msra.gmra.mrb[64].mxu1 %vm254_vm2, %v2081_v8 }
 0x85e   : > { %4693 = vmatpush3.bf16.msra.mxu0 %v5975_v17  ;;  %4701 = vmatpush3.bf16.msra.mxu1 %v5978_v19 }
 0x85f   : > { %4694 = vmatprep.subr.bf16.mxu0 %v5515_v2  ;;  %4702 = vmatprep.subr.bf16.mxu1 %v5515_v2 }
 0x860   : > { %4696 = vmatprep.mubr.msk.bf16.mxu0 %vm5516_vm1, %v5515_v2  ;;  %4704 = vmatprep.mubr.msk.bf16.mxu1 %vm5516_vm1, %v5515_v2 }
 0x862   : > { %4695 = vmatpush3.bf16.msra.mxu0 %v5987_v20  ;;  %4703 = vmatpush3.bf16.msra.mxu1 %v5990_v21 }
 0x863   : > { %4708 = vmatprep.subr.bf16.mxu0 %v5515_v2  ;;  %4716 = vmatprep.subr.bf16.mxu1 %v5515_v2 }
 0x865   : > { %4697 = vmatmul.mubr.msk.bf16.vlgmr.msra.gmra.mrb[68].mxu0 %vm254_vm2, %v2081_v8  ;;  %4705 = vmatmul.mubr.msk.bf16.vlgmr.msra.gmra.mrb[68].mxu1 %vm254_vm2, %v2081_v8 }
 0x866   : > { %4709 = vmatpush3.bf16.msra.mxu0 %v5997_v22  ;;  %4717 = vmatpush3.bf16.msra.mxu1 %v6000_v4 }
 0x867   : > { %4710 = vmatprep.subr.bf16.mxu0 %v5515_v2  ;;  %4718 = vmatprep.subr.bf16.mxu1 %v5515_v2 }
 0x868   : > { %4712 = vmatprep.mubr.msk.bf16.mxu0 %vm5516_vm1, %v5515_v2  ;;  %4720 = vmatprep.mubr.msk.bf16.mxu1 %vm5516_vm1, %v5515_v2 }
 0x86a   : > { %4711 = vmatpush3.bf16.msra.mxu0 %v6009_v23  ;;  %4719 = vmatpush3.bf16.msra.mxu1 %v6012_v5 }
 0x86b   : > { %4724 = vmatprep.subr.bf16.mxu0 %v5515_v2  ;;  %4732 = vmatprep.subr.bf16.mxu1 %v5515_v2 }
 0x930   : > { %v2119_v16 = vpop.f32.mrb[64].mxu0  ;;  %v2162_v58 = vpop.f32.mrb[64].mxu1 }
 0x931   : > { %v2126_v9 = vadd.f32 %v4106_v14, %v2119_v16  ;;  %v2169_v10 = vadd.f32 %v4108_v47, %v2162_v58  ;;  %v4682_v11 = vpop.f32.mrb[65].mxu0  ;;  %v4690_v61 = vpop.f32.mrb[65].mxu1 }
 0x932   : > { %v2122_v12 = vpop.f32.mrb[66].mxu0  ;;  %v2165_v24 = vpop.f32.mrb[66].mxu1 }
 0x933   : > { %v2257_v26 = vmul.f32 0.5, %v2126_v9  ;;  %v2265_v27 = vmul.f32 0.5, %v2169_v10  ;;  %v2127_v29 = vadd.f32 %v4107_v1, %v2122_v12  ;;  %v2170_v31 = vadd.f32 %v4109_v3, %v2165_v24  ;;  %v4683_v32 = vpop.f32.mrb[67].mxu0  ;;  %v4691_v6 = vpop.f32.mrb[67].mxu1 }
 0x935   : > { %5182 = vtanh.f32 %v2257_v26  ;;  %v2258_v34 = vmul.f32 0.5, %v2127_v29  ;;  %v2266_v35 = vmul.f32 0.5, %v2170_v31 }
 0x936   : > { %5184 = vtanh.f32 %v2265_v27 }
 0x937   : > { %5186 = vtanh.f32 %v2258_v34 }
 0x938   : > { %5188 = vtanh.f32 %v2266_v35  ;;  %v2205_v37 = vpop.f32.mrb[68].mxu0  ;;  %v2248_v13 = vpop.f32.mrb[68].mxu1 }
 0x939   : > { %v2212_v39 = vadd.f32 %v4110_v36, %v2205_v37  ;;  %v4698_v41 = vpop.f32.mrb[69].mxu0  ;;  %v4706_v18 = vpop.f32.mrb[69].mxu1  ;;  %v2255_v43 = vadd.f32 %v4112_v15, %v2248_v13 }
 0x93a   : > { %v2208_v45 = vpop.f32.mrb[70].mxu0  ;;  %v2251_v25 = vpop.f32.mrb[70].mxu1  ;;  %v4124_v41 = vld [vmem:[%s5691_s24 + $0x260] sm:$0xff]  ;;  %v4126_v18 = vld [vmem:[%s5691_s24 + $0x270] sm:$0xff] }
 0x93b   : > { %5190 = vtanh.f32 %v2212_v39  ;;  %v2213_v48 = vadd.f32 %v4111_v38, %v2208_v45  ;;  %v4699_v49 = vpop.f32.mrb[71].mxu0  ;;  %v4707_v50 = vpop.f32.mrb[71].mxu1  ;;  %v2256_v30 = vadd.f32 %v4113_v46, %v2251_v25  ;;  %v2275_v51 = vmul.f32 0.5, %v2255_v43  ;;  %v4125_v46 = vld [vmem:[%s5691_s24 + $0x268] sm:$0xff] }
 0x93d   : > { %5192 = vtanh.f32 %v2213_v48  ;;  %v2276_v57 = vmul.f32 0.5, %v2256_v30 }
 0x93e   : > { %5194 = vtanh.f32 %v2275_v51  ;;  %v4127_v51 = vld [vmem:[%s5691_s24 + $0x278] sm:$0xff] }
 0x93f   : > { %v5183_v28 = vpop.eup %5182  ;;  %5196 = vtanh.f32 %v2276_v57 }
 0x940   : > { %v5185_v52 = vpop.eup %5184  ;;  %v2261_v53 = vadd.f32 1.0, %v5183_v28 }
 0x941   : > { %v5187_v55 = vpop.eup %5186  ;;  %v2269_v33 = vadd.f32 1.0, %v5185_v52 }
 0x942   : > { %v5189_v59 = vpop.eup %5188  ;;  %v2262_v40 = vadd.f32 1.0, %v5187_v55  ;;  %v2263_v63 = vmul.f32 0.5, %v2261_v53 }
 0x943   : > { %v2271_v60 = vmul.f32 0.5, %v2269_v33  ;;  %v2270_v62 = vadd.f32 1.0, %v5189_v59 }
 0x944   : > { %v2264_v8 = vmul.f32 0.5, %v2262_v40 }
 0x945   : > { %v5191_v0 = vpop.eup %5190  ;;  %v2272_v44 = vmul.f32 0.5, %v2270_v62  ;;  %v2283_v7 = vmul.f32 %v2271_v60, %v6122_v54 }
 0x946   : > { %v2285_v42 = vmul.f32 %v5191_v0, %v2263_v63 }
 0x947   : > { %v5193_v14 = vpop.eup %5192  ;;  %v2284_v16 = vmul.f32 %v2272_v44, %v6126_v56 }
 0x948   : > { %v6170_v47 = vadd.f32 %v2285_v42, %v2283_v7  ;;  %v2286_v58 = vmul.f32 %v5193_v14, %v2264_v8  ;;  %v5195_v3 = vpop.eup %5194 }
 0x949   : > { %v5197_v9 = vpop.eup %5196  ;;  %v2279_v10 = vadd.f32 1.0, %v5195_v3 }
 0x94a   : > { %5198 = vtanh.f32 %v6170_v47  ;;  %v6174_v1 = vadd.f32 %v2286_v58, %v2284_v16  ;;  %v2280_v54 = vadd.f32 1.0, %v5197_v9 }
 0x94b   : > { %v2281_v11 = vmul.f32 0.5, %v2279_v10 }
 0x94c   : > { %5200 = vtanh.f32 %v6174_v1  ;;  %v2282_v24 = vmul.f32 0.5, %v2280_v54 }
 0x954   : > { %v5199_v61 = vpop.eup %5198 }
 0x955   : > { %v2291_v12 = vmul.f32 %v5199_v61, %v2281_v11 }
 0x956   : > { %v5201_v26 = vpop.eup %5200 }
 0x957   : > { %4118 = vst.msk [vmem:[%s5702_s4 + $0x80] sm:$0xff] %vm254_vm2, %v2291_v12  ;;  %v2292_v56 = vmul.f32 %v5201_v26, %v2282_v24 }
 0x959   : > { %4119 = vst.msk [vmem:[%s5702_s4 + $0x88] sm:$0xff] %vm254_vm2, %v2292_v56  ;;  %v2305_v27 = vpack.c.bf16 %v2292_v56, %v2291_v12 }
 0x95b   : > { %4713 = vmatmul.mubr.msk.bf16.vlgmr.msra.gmra.mrb[72].mxu0 %vm254_vm2, %v2305_v27  ;;  %4721 = vmatmul.mubr.msk.bf16.vlgmr.msra.gmra.mrb[72].mxu1 %vm254_vm2, %v2305_v27 }
 0x95c   : > { %4725 = vmatpush3.bf16.msra.mxu0 %v5975_v17  ;;  %4733 = vmatpush3.bf16.msra.mxu1 %v5978_v19  ;;  %v4120_v17 = vld [vmem:[%s5691_s24 + $0x240] sm:$0xff]  ;;  %v4122_v19 = vld [vmem:[%s5691_s24 + $0x250] sm:$0xff] }
 0x95d   : > { %4726 = vmatprep.subr.bf16.mxu0 %v5515_v2  ;;  %4734 = vmatprep.subr.bf16.mxu1 %v5515_v2 }
 0x95e   : > { %4728 = vmatprep.mubr.msk.bf16.mxu0 %vm5516_vm1, %v5515_v2  ;;  %4736 = vmatprep.mubr.msk.bf16.mxu1 %vm5516_vm1, %v5515_v2 }
 0x960   : > { %4727 = vmatpush3.bf16.msra.mxu0 %v5987_v20  ;;  %4735 = vmatpush3.bf16.msra.mxu1 %v5990_v21 }
 0x961   : > { %4740 = vmatprep.subr.bf16.mxu0 %v5515_v2  ;;  %4748 = vmatprep.subr.bf16.mxu1 %v5515_v2 }
 0x963   : > { %4729 = vmatmul.mubr.msk.bf16.vlgmr.msra.gmra.mrb[76].mxu0 %vm254_vm2, %v2305_v27  ;;  %4737 = vmatmul.mubr.msk.bf16.vlgmr.msra.gmra.mrb[76].mxu1 %vm254_vm2, %v2305_v27 }
 0x964   : > { %4741 = vmatpush3.bf16.msra.mxu0 %v5997_v22  ;;  %4749 = vmatpush3.bf16.msra.mxu1 %v6000_v4  ;;  %v4121_v22 = vld [vmem:[%s5691_s24 + $0x248] sm:$0xff]  ;;  %v4123_v4 = vld [vmem:[%s5691_s24 + $0x258] sm:$0xff] }
 0x965   : > { %4742 = vmatprep.subr.bf16.mxu0 %v5515_v2  ;;  %4750 = vmatprep.subr.bf16.mxu1 %v5515_v2 }
 0x966   : > { %4744 = vmatprep.mubr.msk.bf16.mxu0 %vm5516_vm1, %v5515_v2  ;;  %4752 = vmatprep.mubr.msk.bf16.mxu1 %vm5516_vm1, %v5515_v2 }
 0x968   : > { %4743 = vmatpush3.bf16.msra.mxu0 %v6009_v23  ;;  %4751 = vmatpush3.bf16.msra.mxu1 %v6012_v5 }
 0x969   : > { %4756 = vmatprep.subr.bf16.mxu0 %v5515_v2  ;;  %4764 = vmatprep.subr.bf16.mxu1 %v5515_v2 }
 0xa2e   : > { %v2343_v20 = vpop.f32.mrb[72].mxu0  ;;  %v2386_v21 = vpop.f32.mrb[72].mxu1 }
 0xa2f   : > { %v2350_v29 = vadd.f32 %v4120_v17, %v2343_v20  ;;  %v2393_v31 = vadd.f32 %v4122_v19, %v2386_v21  ;;  %v4714_v32 = vpop.f32.mrb[73].mxu0  ;;  %v4722_v6 = vpop.f32.mrb[73].mxu1 }
 0xa30   : > { %v2346_v34 = vpop.f32.mrb[74].mxu0  ;;  %v2389_v23 = vpop.f32.mrb[74].mxu1  ;;  %v6243_v32 = vld [vmem:[#allocation7 + $0x28] sm:$0xff]   ;;  %v6246_v6 = vld [vmem:[#allocation7 + $0x38] sm:$0xff]  }
 0xa31   : > { %v2481_v35 = vmul.f32 0.5, %v2350_v29  ;;  %v2489_v5 = vmul.f32 0.5, %v2393_v31  ;;  %v2351_v36 = vadd.f32 %v4121_v22, %v2346_v34  ;;  %v2394_v15 = vadd.f32 %v4123_v4, %v2389_v23  ;;  %v4715_v37 = vpop.f32.mrb[75].mxu0  ;;  %v4723_v13 = vpop.f32.mrb[75].mxu1  ;;  %v6231_v29 = vld [vmem:[#allocation7 + $0x20] sm:$0xff]   ;;  %v6234_v31 = vld [vmem:[#allocation7 + $0x30] sm:$0xff]  }
 0xa32   : > { %v6253_v34 = vld [vmem:[#allocation7] sm:$0xff]   ;;  %v6256_v23 = vld [vmem:[#allocation7 + $0x10] sm:$0xff]  }
 0xa33   : > { %5202 = vtanh.f32 %v2481_v35  ;;  %v2482_v38 = vmul.f32 0.5, %v2351_v36  ;;  %v2490_v39 = vmul.f32 0.5, %v2394_v15  ;;  %v6265_v35 = vld [vmem:[#allocation7 + $0x8] sm:$0xff]   ;;  %v4134_v36 = vld [vmem:[%s5691_s24 + $0x280] sm:$0xff]  ;;  %v4136_v15 = vld [vmem:[%s5691_s24 + $0x290] sm:$0xff] }
 0xa34   : > { %5204 = vtanh.f32 %v2489_v5  ;;  %v6268_v5 = vld [vmem:[#allocation7 + $0x18] sm:$0xff]  }
 0xa35   : > { %5206 = vtanh.f32 %v2482_v38  ;;  %v4135_v38 = vld [vmem:[%s5691_s24 + $0x288] sm:$0xff] }
 0xa36   : > { %5208 = vtanh.f32 %v2490_v39  ;;  %v2429_v43 = vpop.f32.mrb[76].mxu0  ;;  %v2472_v45 = vpop.f32.mrb[76].mxu1  ;;  %v4137_v39 = vld [vmem:[%s5691_s24 + $0x298] sm:$0xff] }
 0xa37   : > { %v2436_v25 = vadd.f32 %v4124_v41, %v2429_v43  ;;  %v4730_v48 = vpop.f32.mrb[77].mxu0  ;;  %v4738_v49 = vpop.f32.mrb[77].mxu1  ;;  %v2479_v50 = vadd.f32 %v4126_v18, %v2472_v45 }
 0xa38   : > { %v2432_v30 = vpop.f32.mrb[78].mxu0  ;;  %v2475_v28 = vpop.f32.mrb[78].mxu1 }
 0xa39   : > { %5210 = vtanh.f32 %v2436_v25  ;;  %v2437_v52 = vadd.f32 %v4125_v46, %v2432_v30  ;;  %v4731_v53 = vpop.f32.mrb[79].mxu0  ;;  %v4739_v55 = vpop.f32.mrb[79].mxu1  ;;  %v2480_v33 = vadd.f32 %v4127_v51, %v2475_v28  ;;  %v2499_v57 = vmul.f32 0.5, %v2479_v50 }
 0xa3a   : > { %v4138_v55 = vld [vmem:[%s5691_s24 + $0x2a0] sm:$0xff] }
 0xa3b   : > { %5212 = vtanh.f32 %v2437_v52  ;;  %v2500_v0 = vmul.f32 0.5, %v2480_v33  ;;  %v4140_v33 = vld [vmem:[%s5691_s24 + $0x2b0] sm:$0xff] }
 0xa3c   : > { %5214 = vtanh.f32 %v2499_v57 }
 0xa3d   : > { %v5203_v59 = vpop.eup %5202  ;;  %5216 = vtanh.f32 %v2500_v0 }
 0xa3e   : > { %v5205_v60 = vpop.eup %5204  ;;  %v2485_v40 = vadd.f32 1.0, %v5203_v59 }
 0xa3f   : > { %v5207_v62 = vpop.eup %5206  ;;  %v2493_v63 = vadd.f32 1.0, %v5205_v60  ;;  %v4139_v60 = vld [vmem:[%s5691_s24 + $0x2a8] sm:$0xff] }
 0xa40   : > { %v5209_v44 = vpop.eup %5208  ;;  %v2486_v42 = vadd.f32 1.0, %v5207_v62  ;;  %v2487_v14 = vmul.f32 0.5, %v2485_v40 }
 0xa41   : > { %v2495_v7 = vmul.f32 0.5, %v2493_v63  ;;  %v2494_v8 = vadd.f32 1.0, %v5209_v44 }
 0xa42   : > { %v2488_v10 = vmul.f32 0.5, %v2486_v42 }
 0xa43   : > { %v5211_v16 = vpop.eup %5210  ;;  %v2496_v58 = vmul.f32 0.5, %v2494_v8  ;;  %v2507_v3 = vmul.f32 %v2495_v7, %v6170_v47  ;;  %v4141_v7 = vld [vmem:[%s5691_s24 + $0x2b8] sm:$0xff] }
 0xa44   : > { %v2509_v9 = vmul.f32 %v5211_v16, %v2487_v14 }
 0xa45   : > { %v5213_v54 = vpop.eup %5212  ;;  %v2508_v61 = vmul.f32 %v2496_v58, %v6174_v1 }
 0xa46   : > { %v6218_v11 = vadd.f32 %v2509_v9, %v2507_v3  ;;  %v2510_v12 = vmul.f32 %v5213_v54, %v2488_v10  ;;  %v5215_v26 = vpop.eup %5214 }
 0xa47   : > { %v5217_v56 = vpop.eup %5216  ;;  %v2503_v27 = vadd.f32 1.0, %v5215_v26 }
 0xa48   : > { %5218 = vtanh.f32 %v6218_v11  ;;  %v6222_v24 = vadd.f32 %v2510_v12, %v2508_v61  ;;  %v2504_v47 = vadd.f32 1.0, %v5217_v56 }
 0xa49   : > { %v2505_v17 = vmul.f32 0.5, %v2503_v27 }
 0xa4a   : > { %5220 = vtanh.f32 %v6222_v24  ;;  %v2506_v21 = vmul.f32 0.5, %v2504_v47 }
 0xa52   : > { %v5219_v19 = vpop.eup %5218 }
 0xa53   : > { %v2515_v20 = vmul.f32 %v5219_v19, %v2505_v17 }
 0xa54   : > { %v5221_v22 = vpop.eup %5220 }
 0xa55   : > { %4132 = vst.msk [vmem:[%s5702_s4 + $0x90] sm:$0xff] %vm254_vm2, %v2515_v20  ;;  %v2516_v1 = vmul.f32 %v5221_v22, %v2506_v21 }
 0xa57   : > { %4133 = vst.msk [vmem:[%s5702_s4 + $0x98] sm:$0xff] %vm254_vm2, %v2516_v1  ;;  %v2529_v4 = vpack.c.bf16 %v2516_v1, %v2515_v20 }
 0xa59   : > { %4745 = vmatmul.mubr.msk.bf16.vlgmr.msra.gmra.mrb[80].mxu0 %vm254_vm2, %v2529_v4  ;;  %4753 = vmatmul.mubr.msk.bf16.vlgmr.msra.gmra.mrb[80].mxu1 %vm254_vm2, %v2529_v4 }
 0xa5a   : > { %4757 = vmatpush3.bf16.msra.mxu0 %v6231_v29  ;;  %4765 = vmatpush3.bf16.msra.mxu1 %v6234_v31 }
 0xa5b   : > { %4758 = vmatprep.subr.bf16.mxu0 %v5515_v2  ;;  %4766 = vmatprep.subr.bf16.mxu1 %v5515_v2 }
 0xa5c   : > { %4760 = vmatprep.mubr.msk.bf16.mxu0 %vm5516_vm1, %v5515_v2  ;;  %4768 = vmatprep.mubr.msk.bf16.mxu1 %vm5516_vm1, %v5515_v2 }
 0xa5e   : > { %4759 = vmatpush3.bf16.msra.mxu0 %v6243_v32  ;;  %4767 = vmatpush3.bf16.msra.mxu1 %v6246_v6 }
 0xa5f   : > { %4772 = vmatprep.subr.bf16.mxu0 %v5515_v2  ;;  %4780 = vmatprep.subr.bf16.mxu1 %v5515_v2 }
 0xa61   : > { %4761 = vmatmul.mubr.msk.bf16.vlgmr.msra.gmra.mrb[84].mxu0 %vm254_vm2, %v2529_v4  ;;  %4769 = vmatmul.mubr.msk.bf16.vlgmr.msra.gmra.mrb[84].mxu1 %vm254_vm2, %v2529_v4 }
 0xa62   : > { %4773 = vmatpush3.bf16.msra.mxu0 %v6253_v34  ;;  %4781 = vmatpush3.bf16.msra.mxu1 %v6256_v23 }
 0xa63   : > { %4774 = vmatprep.subr.bf16.mxu0 %v5515_v2  ;;  %4782 = vmatprep.subr.bf16.mxu1 %v5515_v2 }
 0xa64   : > { %4776 = vmatprep.mubr.msk.bf16.mxu0 %vm5516_vm1, %v5515_v2  ;;  %4784 = vmatprep.mubr.msk.bf16.mxu1 %vm5516_vm1, %v5515_v2 }
 0xa66   : > { %4775 = vmatpush3.bf16.msra.mxu0 %v6265_v35  ;;  %4783 = vmatpush3.bf16.msra.mxu1 %v6268_v5 }
 0xa67   : > { %4788 = vmatprep.subr.bf16.mxu0 %v5515_v2  ;;  %4796 = vmatprep.subr.bf16.mxu1 %v5515_v2 }
 0xb2c   : > { %v2567_v37 = vpop.f32.mrb[80].mxu0  ;;  %v2610_v13 = vpop.f32.mrb[80].mxu1 }
 0xb2d   : > { %v2574_v41 = vadd.f32 %v4134_v36, %v2567_v37  ;;  %v2617_v18 = vadd.f32 %v4136_v15, %v2610_v13  ;;  %v4746_v43 = vpop.f32.mrb[81].mxu0  ;;  %v4754_v45 = vpop.f32.mrb[81].mxu1 }
 0xb2e   : > { %v2570_v46 = vpop.f32.mrb[82].mxu0  ;;  %v2613_v25 = vpop.f32.mrb[82].mxu1 }
 0xb2f   : > { %v2705_v48 = vmul.f32 0.5, %v2574_v41  ;;  %v2713_v49 = vmul.f32 0.5, %v2617_v18  ;;  %v2575_v50 = vadd.f32 %v4135_v38, %v2570_v46  ;;  %v2618_v30 = vadd.f32 %v4137_v39, %v2613_v25  ;;  %v4747_v51 = vpop.f32.mrb[83].mxu0  ;;  %v4755_v28 = vpop.f32.mrb[83].mxu1 }
 0xb31   : > { %5222 = vtanh.f32 %v2705_v48  ;;  %v2706_v52 = vmul.f32 0.5, %v2575_v50  ;;  %v2714_v53 = vmul.f32 0.5, %v2618_v30  ;;  %v4148_v50 = vld [vmem:[%s5691_s24 + $0x2c0] sm:$0xff]  ;;  %v4150_v30 = vld [vmem:[%s5691_s24 + $0x2d0] sm:$0xff] }
 0xb32   : > { %5224 = vtanh.f32 %v2713_v49 }
 0xb33   : > { %5226 = vtanh.f32 %v2706_v52  ;;  %v4149_v52 = vld [vmem:[%s5691_s24 + $0x2c8] sm:$0xff] }
 0xb34   : > { %5228 = vtanh.f32 %v2714_v53  ;;  %v2653_v57 = vpop.f32.mrb[84].mxu0  ;;  %v2696_v59 = vpop.f32.mrb[84].mxu1  ;;  %v4151_v53 = vld [vmem:[%s5691_s24 + $0x2d8] sm:$0xff] }
 0xb35   : > { %v2660_v40 = vadd.f32 %v4138_v55, %v2653_v57  ;;  %v4762_v62 = vpop.f32.mrb[85].mxu0  ;;  %v4770_v63 = vpop.f32.mrb[85].mxu1  ;;  %v2703_v0 = vadd.f32 %v4140_v33, %v2696_v59 }
 0xb36   : > { %v2656_v44 = vpop.f32.mrb[86].mxu0  ;;  %v2699_v42 = vpop.f32.mrb[86].mxu1 }
 0xb37   : > { %5230 = vtanh.f32 %v2660_v40  ;;  %v2661_v8 = vadd.f32 %v4139_v60, %v2656_v44  ;;  %v4763_v14 = vpop.f32.mrb[87].mxu0  ;;  %v4771_v16 = vpop.f32.mrb[87].mxu1  ;;  %v2704_v58 = vadd.f32 %v4141_v7, %v2699_v42  ;;  %v2723_v3 = vmul.f32 0.5, %v2703_v0 }
 0xb38   : > { %v4152_v16 = vld [vmem:[%s5691_s24 + $0x2e0] sm:$0xff] }
 0xb39   : > { %5232 = vtanh.f32 %v2661_v8  ;;  %v2724_v26 = vmul.f32 0.5, %v2704_v58  ;;  %v4154_v58 = vld [vmem:[%s5691_s24 + $0x2f0] sm:$0xff] }
 0xb3a   : > { %5234 = vtanh.f32 %v2723_v3 }
 0xb3b   : > { %v5223_v9 = vpop.eup %5222  ;;  %5236 = vtanh.f32 %v2724_v26 }
 0xb3c   : > { %v5225_v10 = vpop.eup %5224  ;;  %v2709_v54 = vadd.f32 1.0, %v5223_v9 }
 0xb3d   : > { %v5227_v61 = vpop.eup %5226  ;;  %v2717_v12 = vadd.f32 1.0, %v5225_v10  ;;  %v4153_v10 = vld [vmem:[%s5691_s24 + $0x2e8] sm:$0xff] }
 0xb3e   : > { %v5229_v56 = vpop.eup %5228  ;;  %v2710_v47 = vadd.f32 1.0, %v5227_v61  ;;  %v2711_v19 = vmul.f32 0.5, %v2709_v54 }
 0xb3f   : > { %v2719_v27 = vmul.f32 0.5, %v2717_v12  ;;  %v2718_v17 = vadd.f32 1.0, %v5229_v56 }
 0xb40   : > { %v2712_v4 = vmul.f32 0.5, %v2710_v47 }
 0xb41   : > { %v5231_v20 = vpop.eup %5230  ;;  %v2720_v21 = vmul.f32 0.5, %v2718_v17  ;;  %v2731_v22 = vmul.f32 %v2719_v27, %v6218_v11  ;;  %v4155_v27 = vld [vmem:[%s5691_s24 + $0x2f8] sm:$0xff] }
 0xb42   : > { %v2733_v1 = vmul.f32 %v5231_v20, %v2711_v19 }
 0xb43   : > { %v5233_v36 = vpop.eup %5232  ;;  %v2732_v37 = vmul.f32 %v2720_v21, %v6222_v24 }
 0xb44   : > { %v6282_v15 = vadd.f32 %v2733_v1, %v2731_v22  ;;  %v2734_v13 = vmul.f32 %v5233_v36, %v2712_v4  ;;  %v5235_v39 = vpop.eup %5234 }
 0xb45   : > { %v5237_v41 = vpop.eup %5236  ;;  %v2727_v18 = vadd.f32 1.0, %v5235_v39 }
 0xb46   : > { %5238 = vtanh.f32 %v6282_v15  ;;  %v6286_v38 = vadd.f32 %v2734_v13, %v2732_v37  ;;  %v2728_v11 = vadd.f32 1.0, %v5237_v41 }
 0xb47   : > { %v2729_v43 = vmul.f32 0.5, %v2727_v18 }
 0xb48   : > { %5240 = vtanh.f32 %v6286_v38  ;;  %v2730_v25 = vmul.f32 0.5, %v2728_v11 }
 0xb50   : > { %v5239_v45 = vpop.eup %5238 }
 0xb51   : > { %v2739_v46 = vmul.f32 %v5239_v45, %v2729_v43 }
 0xb52   : > { %v5241_v48 = vpop.eup %5240 }
 0xb53   : > { %4146 = vst.msk [vmem:[%s5702_s4 + $0xa0] sm:$0xff] %vm254_vm2, %v2739_v46  ;;  %v2740_v24 = vmul.f32 %v5241_v48, %v2730_v25 }
 0xb55   : > { %4147 = vst.msk [vmem:[%s5702_s4 + $0xa8] sm:$0xff] %vm254_vm2, %v2740_v24  ;;  %v2753_v49 = vpack.c.bf16 %v2740_v24, %v2739_v46 }
 0xb57   : > { %4777 = vmatmul.mubr.msk.bf16.vlgmr.msra.gmra.mrb[88].mxu0 %vm254_vm2, %v2753_v49  ;;  %4785 = vmatmul.mubr.msk.bf16.vlgmr.msra.gmra.mrb[88].mxu1 %vm254_vm2, %v2753_v49 }
 0xb58   : > { %4789 = vmatpush3.bf16.msra.mxu0 %v6231_v29  ;;  %4797 = vmatpush3.bf16.msra.mxu1 %v6234_v31 }
 0xb59   : > { %4790 = vmatprep.subr.bf16.mxu0 %v5515_v2  ;;  %4798 = vmatprep.subr.bf16.mxu1 %v5515_v2 }
 0xb5a   : > { %4792 = vmatprep.mubr.msk.bf16.mxu0 %vm5516_vm1, %v5515_v2  ;;  %4800 = vmatprep.mubr.msk.bf16.mxu1 %vm5516_vm1, %v5515_v2 }
 0xb5c   : > { %4791 = vmatpush3.bf16.msra.mxu0 %v6243_v32  ;;  %4799 = vmatpush3.bf16.msra.mxu1 %v6246_v6 }
 0xb5d   : > { %4804 = vmatprep.subr.bf16.mxu0 %v5515_v2  ;;  %4812 = vmatprep.subr.bf16.mxu1 %v5515_v2 }
 0xb5f   : > { %4793 = vmatmul.mubr.msk.bf16.vlgmr.msra.gmra.mrb[92].mxu0 %vm254_vm2, %v2753_v49  ;;  %4801 = vmatmul.mubr.msk.bf16.vlgmr.msra.gmra.mrb[92].mxu1 %vm254_vm2, %v2753_v49 }
 0xb60   : > { %4805 = vmatpush3.bf16.msra.mxu0 %v6253_v34  ;;  %4813 = vmatpush3.bf16.msra.mxu1 %v6256_v23 }
 0xb61   : > { %4806 = vmatprep.subr.bf16.mxu0 %v5515_v2  ;;  %4814 = vmatprep.subr.bf16.mxu1 %v5515_v2 }
 0xb62   : > { %4808 = vmatprep.mubr.msk.bf16.mxu0 %vm5516_vm1, %v5515_v2  ;;  %4816 = vmatprep.mubr.msk.bf16.mxu1 %vm5516_vm1, %v5515_v2 }
 0xb64   : > { %4807 = vmatpush3.bf16.msra.mxu0 %v6265_v35  ;;  %4815 = vmatpush3.bf16.msra.mxu1 %v6268_v5 }
 0xb65   : > { %4820 = vmatprep.subr.bf16.mxu0 %v5515_v2  ;;  %4828 = vmatprep.subr.bf16.mxu1 %v5515_v2 }
 0xc2a   : > { %v2791_v51 = vpop.f32.mrb[88].mxu0  ;;  %v2834_v28 = vpop.f32.mrb[88].mxu1 }
 0xc2b   : > { %v2798_v55 = vadd.f32 %v4148_v50, %v2791_v51  ;;  %v2841_v33 = vadd.f32 %v4150_v30, %v2834_v28  ;;  %v4778_v57 = vpop.f32.mrb[89].mxu0  ;;  %v4786_v59 = vpop.f32.mrb[89].mxu1 }
 0xc2c   : > { %v2794_v60 = vpop.f32.mrb[90].mxu0  ;;  %v2837_v40 = vpop.f32.mrb[90].mxu1 }
 0xc2d   : > { %v2929_v62 = vmul.f32 0.5, %v2798_v55  ;;  %v2937_v63 = vmul.f32 0.5, %v2841_v33  ;;  %v2799_v0 = vadd.f32 %v4149_v52, %v2794_v60  ;;  %v2842_v44 = vadd.f32 %v4151_v53, %v2837_v40  ;;  %v4779_v7 = vpop.f32.mrb[91].mxu0  ;;  %v4787_v42 = vpop.f32.mrb[91].mxu1 }
 0xc2f   : > { %5242 = vtanh.f32 %v2929_v62  ;;  %v2930_v8 = vmul.f32 0.5, %v2799_v0  ;;  %v2938_v14 = vmul.f32 0.5, %v2842_v44  ;;  %v4162_v0 = vld [vmem:[%s5691_s24 + $0x300] sm:$0xff]  ;;  %v4164_v44 = vld [vmem:[%s5691_s24 + $0x310] sm:$0xff] }
 0xc30   : > { %5244 = vtanh.f32 %v2937_v63 }
 0xc31   : > { %5246 = vtanh.f32 %v2930_v8  ;;  %v4163_v8 = vld [vmem:[%s5691_s24 + $0x308] sm:$0xff] }
 0xc32   : > { %5248 = vtanh.f32 %v2938_v14  ;;  %v2877_v3 = vpop.f32.mrb[92].mxu0  ;;  %v2920_v9 = vpop.f32.mrb[92].mxu1  ;;  %v4165_v14 = vld [vmem:[%s5691_s24 + $0x318] sm:$0xff] }
 0xc33   : > { %v2884_v54 = vadd.f32 %v4152_v16, %v2877_v3  ;;  %v4794_v61 = vpop.f32.mrb[93].mxu0  ;;  %v4802_v12 = vpop.f32.mrb[93].mxu1  ;;  %v2927_v26 = vadd.f32 %v4154_v58, %v2920_v9 }
 0xc34   : > { %v2880_v56 = vpop.f32.mrb[94].mxu0  ;;  %v2923_v47 = vpop.f32.mrb[94].mxu1 }
 0xc35   : > { %5250 = vtanh.f32 %v2884_v54  ;;  %v2885_v17 = vadd.f32 %v4153_v10, %v2880_v56  ;;  %v4795_v19 = vpop.f32.mrb[95].mxu0  ;;  %v4803_v20 = vpop.f32.mrb[95].mxu1  ;;  %v2928_v21 = vadd.f32 %v4155_v27, %v2923_v47  ;;  %v2947_v22 = vmul.f32 0.5, %v2927_v26 }
 0xc36   : > { %v4166_v20 = vld [vmem:[%s5691_s24 + $0x320] sm:$0xff] }
 0xc37   : > { %5252 = vtanh.f32 %v2885_v17  ;;  %v2948_v39 = vmul.f32 0.5, %v2928_v21  ;;  %v4168_v21 = vld [vmem:[%s5691_s24 + $0x330] sm:$0xff] }
 0xc38   : > { %5254 = vtanh.f32 %v2947_v22 }
 0xc39   : > { %v5243_v1 = vpop.eup %5242  ;;  %5256 = vtanh.f32 %v2948_v39 }
 0xc3a   : > { %v5245_v4 = vpop.eup %5244  ;;  %v2933_v36 = vadd.f32 1.0, %v5243_v1 }
 0xc3b   : > { %v5247_v37 = vpop.eup %5246  ;;  %v2941_v13 = vadd.f32 1.0, %v5245_v4  ;;  %v4167_v4 = vld [vmem:[%s5691_s24 + $0x328] sm:$0xff] }
 0xc3c   : > { %v5249_v41 = vpop.eup %5248  ;;  %v2934_v11 = vadd.f32 1.0, %v5247_v37  ;;  %v2935_v45 = vmul.f32 0.5, %v2933_v36 }
 0xc3d   : > { %v2943_v18 = vmul.f32 0.5, %v2941_v13  ;;  %v2942_v43 = vadd.f32 1.0, %v5249_v41 }
 0xc3e   : > { %v2936_v49 = vmul.f32 0.5, %v2934_v11 }
 0xc3f   : > { %v5251_v46 = vpop.eup %5250  ;;  %v2944_v25 = vmul.f32 0.5, %v2942_v43  ;;  %v2955_v48 = vmul.f32 %v2943_v18, %v6282_v15  ;;  %v4169_v18 = vld [vmem:[%s5691_s24 + $0x338] sm:$0xff] }
 0xc40   : > { %v2957_v24 = vmul.f32 %v5251_v46, %v2935_v45 }
 0xc41   : > { %v5253_v50 = vpop.eup %5252  ;;  %v2956_v51 = vmul.f32 %v2944_v25, %v6286_v38 }
 0xc42   : > { %v6330_v30 = vadd.f32 %v2957_v24, %v2955_v48  ;;  %v2958_v28 = vmul.f32 %v5253_v50, %v2936_v49  ;;  %v5255_v53 = vpop.eup %5254 }
 0xc43   : > { %v5257_v55 = vpop.eup %5256  ;;  %v2951_v33 = vadd.f32 1.0, %v5255_v53 }
 0xc44   : > { %5258 = vtanh.f32 %v6330_v30  ;;  %v6334_v52 = vadd.f32 %v2958_v28, %v2956_v51  ;;  %v2952_v15 = vadd.f32 1.0, %v5257_v55 }
 0xc45   : > { %v2953_v57 = vmul.f32 0.5, %v2951_v33 }
 0xc46   : > { %5260 = vtanh.f32 %v6334_v52  ;;  %v2954_v40 = vmul.f32 0.5, %v2952_v15 }
 0xc4e   : > { %v5259_v59 = vpop.eup %5258 }
 0xc4f   : > { %v2963_v60 = vmul.f32 %v5259_v59, %v2953_v57 }
 0xc50   : > { %v5261_v62 = vpop.eup %5260 }
 0xc51   : > { %4160 = vst.msk [vmem:[%s5702_s4 + $0xb0] sm:$0xff] %vm254_vm2, %v2963_v60  ;;  %v2964_v38 = vmul.f32 %v5261_v62, %v2954_v40 }
 0xc53   : > { %4161 = vst.msk [vmem:[%s5702_s4 + $0xb8] sm:$0xff] %vm254_vm2, %v2964_v38  ;;  %v2977_v63 = vpack.c.bf16 %v2964_v38, %v2963_v60 }
 0xc55   : > { %4809 = vmatmul.mubr.msk.bf16.vlgmr.msra.gmra.mrb[96].mxu0 %vm254_vm2, %v2977_v63  ;;  %4817 = vmatmul.mubr.msk.bf16.vlgmr.msra.gmra.mrb[96].mxu1 %vm254_vm2, %v2977_v63 }
 0xc56   : > { %4821 = vmatpush3.bf16.msra.mxu0 %v6231_v29  ;;  %4829 = vmatpush3.bf16.msra.mxu1 %v6234_v31 }
 0xc57   : > { %4822 = vmatprep.subr.bf16.mxu0 %v5515_v2  ;;  %4830 = vmatprep.subr.bf16.mxu1 %v5515_v2 }
 0xc58   : > { %4824 = vmatprep.mubr.msk.bf16.mxu0 %vm5516_vm1, %v5515_v2  ;;  %4832 = vmatprep.mubr.msk.bf16.mxu1 %vm5516_vm1, %v5515_v2 }
 0xc5a   : > { %4823 = vmatpush3.bf16.msra.mxu0 %v6243_v32  ;;  %4831 = vmatpush3.bf16.msra.mxu1 %v6246_v6 }
 0xc5b   : > { %4836 = vmatprep.subr.bf16.mxu0 %v5515_v2  ;;  %4844 = vmatprep.subr.bf16.mxu1 %v5515_v2 }
 0xc5d   : > { %4825 = vmatmul.mubr.msk.bf16.vlgmr.msra.gmra.mrb[100].mxu0 %vm254_vm2, %v2977_v63  ;;  %4833 = vmatmul.mubr.msk.bf16.vlgmr.msra.gmra.mrb[100].mxu1 %vm254_vm2, %v2977_v63 }
 0xc5e   : > { %4837 = vmatpush3.bf16.msra.mxu0 %v6253_v34  ;;  %4845 = vmatpush3.bf16.msra.mxu1 %v6256_v23 }
 0xc5f   : > { %4838 = vmatprep.subr.bf16.mxu0 %v5515_v2  ;;  %4846 = vmatprep.subr.bf16.mxu1 %v5515_v2 }
 0xc60   : > { %4840 = vmatprep.mubr.msk.bf16.mxu0 %vm5516_vm1, %v5515_v2  ;;  %4848 = vmatprep.mubr.msk.bf16.mxu1 %vm5516_vm1, %v5515_v2 }
 0xc62   : > { %4839 = vmatpush3.bf16.msra.mxu0 %v6265_v35  ;;  %4847 = vmatpush3.bf16.msra.mxu1 %v6268_v5 }
 0xc63   : > { %4852 = vmatprep.subr.bf16.mxu0 %v5515_v2  ;;  %4860 = vmatprep.subr.bf16.mxu1 %v5515_v2 }
 0xd28   : > { %v3015_v7 = vpop.f32.mrb[96].mxu0  ;;  %v3058_v42 = vpop.f32.mrb[96].mxu1 }
 0xd29   : > { %v3022_v16 = vadd.f32 %v4162_v0, %v3015_v7  ;;  %v3065_v58 = vadd.f32 %v4164_v44, %v3058_v42  ;;  %v4810_v3 = vpop.f32.mrb[97].mxu0  ;;  %v4818_v9 = vpop.f32.mrb[97].mxu1 }
 0xd2a   : > { %v3018_v10 = vpop.f32.mrb[98].mxu0  ;;  %v3061_v54 = vpop.f32.mrb[98].mxu1 }
 0xd2b   : > { %v3153_v61 = vmul.f32 0.5, %v3022_v16  ;;  %v3161_v12 = vmul.f32 0.5, %v3065_v58  ;;  %v3023_v26 = vadd.f32 %v4163_v8, %v3018_v10  ;;  %v3066_v56 = vadd.f32 %v4165_v14, %v3061_v54  ;;  %v4811_v27 = vpop.f32.mrb[99].mxu0  ;;  %v4819_v47 = vpop.f32.mrb[99].mxu1 }
 0xd2d   : > { %5262 = vtanh.f32 %v3153_v61  ;;  %v3154_v17 = vmul.f32 0.5, %v3023_v26  ;;  %v3162_v19 = vmul.f32 0.5, %v3066_v56  ;;  %v4176_v26 = vld [vmem:[%s5691_s24 + $0x340] sm:$0xff]  ;;  %v4178_v56 = vld [vmem:[%s5691_s24 + $0x350] sm:$0xff] }
 0xd2e   : > { %5264 = vtanh.f32 %v3161_v12 }
 0xd2f   : > { %5266 = vtanh.f32 %v3154_v17  ;;  %v4177_v17 = vld [vmem:[%s5691_s24 + $0x348] sm:$0xff] }
 0xd30   : > { %5268 = vtanh.f32 %v3162_v19  ;;  %v3101_v22 = vpop.f32.mrb[100].mxu0  ;;  %v3144_v1 = vpop.f32.mrb[100].mxu1  ;;  %v4179_v19 = vld [vmem:[%s5691_s24 + $0x358] sm:$0xff] }
 0xd31   : > { %v3108_v36 = vadd.f32 %v4166_v20, %v3101_v22  ;;  %v4826_v37 = vpop.f32.mrb[101].mxu0  ;;  %v4834_v13 = vpop.f32.mrb[101].mxu1  ;;  %v3151_v39 = vadd.f32 %v4168_v21, %v3144_v1 }
 0xd32   : > { %v3104_v41 = vpop.f32.mrb[102].mxu0  ;;  %v3147_v11 = vpop.f32.mrb[102].mxu1 }
 0xd33   : > { %5270 = vtanh.f32 %v3108_v36  ;;  %v3109_v43 = vadd.f32 %v4167_v4, %v3104_v41  ;;  %v4827_v45 = vpop.f32.mrb[103].mxu0  ;;  %v4835_v46 = vpop.f32.mrb[103].mxu1  ;;  %v3152_v25 = vadd.f32 %v4169_v18, %v3147_v11  ;;  %v3171_v48 = vmul.f32 0.5, %v3151_v39 }
 0xd34   : > { %v4180_v46 = vld [vmem:[%s5691_s24 + $0x360] sm:$0xff] }
 0xd35   : > { %5272 = vtanh.f32 %v3109_v43  ;;  %v3172_v53 = vmul.f32 0.5, %v3152_v25  ;;  %v4182_v25 = vld [vmem:[%s5691_s24 + $0x370] sm:$0xff] }
 0xd36   : > { %5274 = vtanh.f32 %v3171_v48 }
 0xd37   : > { %v5263_v24 = vpop.eup %5262  ;;  %5276 = vtanh.f32 %v3172_v53 }
 0xd38   : > { %v5265_v49 = vpop.eup %5264  ;;  %v3157_v50 = vadd.f32 1.0, %v5263_v24 }
 0xd39   : > { %v5267_v51 = vpop.eup %5266  ;;  %v3165_v28 = vadd.f32 1.0, %v5265_v49  ;;  %v4181_v49 = vld [vmem:[%s5691_s24 + $0x368] sm:$0xff] }
 0xd3a   : > { %v5269_v55 = vpop.eup %5268  ;;  %v3158_v15 = vadd.f32 1.0, %v5267_v51  ;;  %v3159_v59 = vmul.f32 0.5, %v3157_v50 }
 0xd3b   : > { %v3167_v33 = vmul.f32 0.5, %v3165_v28  ;;  %v3166_v57 = vadd.f32 1.0, %v5269_v55 }
 0xd3c   : > { %v3160_v63 = vmul.f32 0.5, %v3158_v15 }
 0xd3d   : > { %v5271_v60 = vpop.eup %5270  ;;  %v3168_v40 = vmul.f32 0.5, %v3166_v57  ;;  %v3179_v62 = vmul.f32 %v3167_v33, %v6330_v30  ;;  %v4183_v33 = vld [vmem:[%s5691_s24 + $0x378] sm:$0xff] }
 0xd3e   : > { %v3181_v38 = vmul.f32 %v5271_v60, %v3159_v59 }
 0xd3f   : > { %v5273_v0 = vpop.eup %5272  ;;  %v3180_v7 = vmul.f32 %v3168_v40, %v6334_v52 }
 0xd40   : > { %v6378_v44 = vadd.f32 %v3181_v38, %v3179_v62  ;;  %v3182_v42 = vmul.f32 %v5273_v0, %v3160_v63  ;;  %v5275_v14 = vpop.eup %5274 }
 0xd41   : > { %v5277_v16 = vpop.eup %5276  ;;  %v3175_v58 = vadd.f32 1.0, %v5275_v14 }
 0xd42   : > { %5278 = vtanh.f32 %v6378_v44  ;;  %v6382_v8 = vadd.f32 %v3182_v42, %v3180_v7  ;;  %v3176_v30 = vadd.f32 1.0, %v5277_v16 }
 0xd43   : > { %v3177_v3 = vmul.f32 0.5, %v3175_v58 }
 0xd44   : > { %5280 = vtanh.f32 %v6382_v8  ;;  %v3178_v54 = vmul.f32 0.5, %v3176_v30 }
 0xd4c   : > { %v5279_v9 = vpop.eup %5278 }
 0xd4d   : > { %v3187_v10 = vmul.f32 %v5279_v9, %v3177_v3 }
 0xd4e   : > { %v5281_v61 = vpop.eup %5280 }
 0xd4f   : > { %4174 = vst.msk [vmem:[%s5702_s4 + $0xc0] sm:$0xff] %vm254_vm2, %v3187_v10  ;;  %v3188_v52 = vmul.f32 %v5281_v61, %v3178_v54 }
 0xd51   : > { %4175 = vst.msk [vmem:[%s5702_s4 + $0xc8] sm:$0xff] %vm254_vm2, %v3188_v52  ;;  %v3201_v12 = vpack.c.bf16 %v3188_v52, %v3187_v10 }
 0xd53   : > { %4841 = vmatmul.mubr.msk.bf16.vlgmr.msra.gmra.mrb[104].mxu0 %vm254_vm2, %v3201_v12  ;;  %4849 = vmatmul.mubr.msk.bf16.vlgmr.msra.gmra.mrb[104].mxu1 %vm254_vm2, %v3201_v12 }
 0xd54   : > { %4853 = vmatpush3.bf16.msra.mxu0 %v6231_v29  ;;  %4861 = vmatpush3.bf16.msra.mxu1 %v6234_v31 }
 0xd55   : > { %4854 = vmatprep.subr.bf16.mxu0 %v5515_v2  ;;  %4862 = vmatprep.subr.bf16.mxu1 %v5515_v2 }
 0xd56   : > { %4856 = vmatprep.mubr.msk.bf16.mxu0 %vm5516_vm1, %v5515_v2  ;;  %4864 = vmatprep.mubr.msk.bf16.mxu1 %vm5516_vm1, %v5515_v2 }
 0xd58   : > { %4855 = vmatpush3.bf16.msra.mxu0 %v6243_v32  ;;  %4863 = vmatpush3.bf16.msra.mxu1 %v6246_v6 }
 0xd59   : > { %4868 = vmatprep.subr.bf16.mxu0 %v5515_v2  ;;  %4876 = vmatprep.subr.bf16.mxu1 %v5515_v2 }
 0xd5b   : > { %4857 = vmatmul.mubr.msk.bf16.vlgmr.msra.gmra.mrb[108].mxu0 %vm254_vm2, %v3201_v12  ;;  %4865 = vmatmul.mubr.msk.bf16.vlgmr.msra.gmra.mrb[108].mxu1 %vm254_vm2, %v3201_v12 }
 0xd5c   : > { %4869 = vmatpush3.bf16.msra.mxu0 %v6253_v34  ;;  %4877 = vmatpush3.bf16.msra.mxu1 %v6256_v23 }
 0xd5d   : > { %4870 = vmatprep.subr.bf16.mxu0 %v5515_v2  ;;  %4878 = vmatprep.subr.bf16.mxu1 %v5515_v2 }
 0xd5e   : > { %4872 = vmatprep.mubr.msk.bf16.mxu0 %vm5516_vm1, %v5515_v2  ;;  %4880 = vmatprep.mubr.msk.bf16.mxu1 %vm5516_vm1, %v5515_v2 }
 0xd60   : > { %4871 = vmatpush3.bf16.msra.mxu0 %v6265_v35  ;;  %4879 = vmatpush3.bf16.msra.mxu1 %v6268_v5 }
 0xd61   : > { %4884 = vmatprep.subr.bf16.mxu0 %v5515_v2  ;;  %4892 = vmatprep.subr.bf16.mxu1 %v5515_v2 }
 0xe26   : > { %v3239_v27 = vpop.f32.mrb[104].mxu0  ;;  %v3282_v47 = vpop.f32.mrb[104].mxu1 }
 0xe27   : > { %v3246_v20 = vadd.f32 %v4176_v26, %v3239_v27  ;;  %v3289_v21 = vadd.f32 %v4178_v56, %v3282_v47  ;;  %v4842_v22 = vpop.f32.mrb[105].mxu0  ;;  %v4850_v1 = vpop.f32.mrb[105].mxu1 }
 0xe28   : > { %v3242_v4 = vpop.f32.mrb[106].mxu0  ;;  %v3285_v36 = vpop.f32.mrb[106].mxu1 }
 0xe29   : > { %v3377_v37 = vmul.f32 0.5, %v3246_v20  ;;  %v3385_v13 = vmul.f32 0.5, %v3289_v21  ;;  %v3247_v39 = vadd.f32 %v4177_v17, %v3242_v4  ;;  %v3290_v41 = vadd.f32 %v4179_v19, %v3285_v36  ;;  %v4843_v18 = vpop.f32.mrb[107].mxu0  ;;  %v4851_v11 = vpop.f32.mrb[107].mxu1 }
 0xe2b   : > { %5282 = vtanh.f32 %v3377_v37  ;;  %v3378_v43 = vmul.f32 0.5, %v3247_v39  ;;  %v3386_v45 = vmul.f32 0.5, %v3290_v41 }
 0xe2c   : > { %5284 = vtanh.f32 %v3385_v13 }
 0xe2d   : > { %5286 = vtanh.f32 %v3378_v43 }
 0xe2e   : > { %5288 = vtanh.f32 %v3386_v45  ;;  %v3325_v48 = vpop.f32.mrb[108].mxu0  ;;  %v3368_v24 = vpop.f32.mrb[108].mxu1 }
 0xe2f   : > { %v3332_v50 = vadd.f32 %v4180_v46, %v3325_v48  ;;  %v4858_v51 = vpop.f32.mrb[109].mxu0  ;;  %v4866_v28 = vpop.f32.mrb[109].mxu1  ;;  %v3375_v53 = vadd.f32 %v4182_v25, %v3368_v24 }
 0xe30   : > { %v3328_v55 = vpop.f32.mrb[110].mxu0  ;;  %v3371_v15 = vpop.f32.mrb[110].mxu1  ;;  %v4194_v51 = vld [vmem:[%s5691_s24 + $0x3a0] sm:$0xff]  ;;  %v4196_v28 = vld [vmem:[%s5691_s24 + $0x3b0] sm:$0xff] }
 0xe31   : > { %5290 = vtanh.f32 %v3332_v50  ;;  %v3333_v57 = vadd.f32 %v4181_v49, %v3328_v55  ;;  %v4859_v59 = vpop.f32.mrb[111].mxu0  ;;  %v4867_v60 = vpop.f32.mrb[111].mxu1  ;;  %v3376_v40 = vadd.f32 %v4183_v33, %v3371_v15  ;;  %v3395_v62 = vmul.f32 0.5, %v3375_v53  ;;  %v4195_v33 = vld [vmem:[%s5691_s24 + $0x3a8] sm:$0xff] }
 0xe33   : > { %5292 = vtanh.f32 %v3333_v57  ;;  %v3396_v14 = vmul.f32 0.5, %v3376_v40 }
 0xe34   : > { %5294 = vtanh.f32 %v3395_v62  ;;  %v4197_v62 = vld [vmem:[%s5691_s24 + $0x3b8] sm:$0xff] }
 0xe35   : > { %v5283_v38 = vpop.eup %5282  ;;  %5296 = vtanh.f32 %v3396_v14 }
 0xe36   : > { %v5285_v63 = vpop.eup %5284  ;;  %v3381_v0 = vadd.f32 1.0, %v5283_v38 }
 0xe37   : > { %v5287_v7 = vpop.eup %5286  ;;  %v3389_v42 = vadd.f32 1.0, %v5285_v63 }
 0xe38   : > { %v5289_v16 = vpop.eup %5288  ;;  %v3382_v30 = vadd.f32 1.0, %v5287_v7  ;;  %v3383_v9 = vmul.f32 0.5, %v3381_v0 }
 0xe39   : > { %v3391_v58 = vmul.f32 0.5, %v3389_v42  ;;  %v3390_v3 = vadd.f32 1.0, %v5289_v16 }
 0xe3a   : > { %v3384_v12 = vmul.f32 0.5, %v3382_v30 }
 0xe3b   : > { %v5291_v10 = vpop.eup %5290  ;;  %v3392_v54 = vmul.f32 0.5, %v3390_v3  ;;  %v3403_v61 = vmul.f32 %v3391_v58, %v6378_v44 }
 0xe3c   : > { %v3405_v52 = vmul.f32 %v5291_v10, %v3383_v9 }
 0xe3d   : > { %v5293_v26 = vpop.eup %5292  ;;  %v3404_v27 = vmul.f32 %v3392_v54, %v6382_v8 }
 0xe3e   : > { %v6426_v56 = vadd.f32 %v3405_v52, %v3403_v61  ;;  %v3406_v47 = vmul.f32 %v5293_v26, %v3384_v12  ;;  %v5295_v19 = vpop.eup %5294 }
 0xe3f   : > { %v5297_v20 = vpop.eup %5296  ;;  %v3399_v21 = vadd.f32 1.0, %v5295_v19 }
 0xe40   : > { %5298 = vtanh.f32 %v6426_v56  ;;  %v6430_v17 = vadd.f32 %v3406_v47, %v3404_v27  ;;  %v3400_v44 = vadd.f32 1.0, %v5297_v20 }
 0xe41   : > { %v3401_v22 = vmul.f32 0.5, %v3399_v21 }
 0xe42   : > { %5300 = vtanh.f32 %v6430_v17  ;;  %v3402_v36 = vmul.f32 0.5, %v3400_v44 }
 0xe4a   : > { %v5299_v1 = vpop.eup %5298 }
 0xe4b   : > { %v3411_v4 = vmul.f32 %v5299_v1, %v3401_v22 }
 0xe4c   : > { %v5301_v37 = vpop.eup %5300 }
 0xe4d   : > { %4188 = vst.msk [vmem:[%s5702_s4 + $0xd0] sm:$0xff] %vm254_vm2, %v3411_v4  ;;  %v3412_v8 = vmul.f32 %v5301_v37, %v3402_v36 }
 0xe4f   : > { %4189 = vst.msk [vmem:[%s5702_s4 + $0xd8] sm:$0xff] %vm254_vm2, %v3412_v8  ;;  %v3425_v13 = vpack.c.bf16 %v3412_v8, %v3411_v4 }
 0xe51   : > { %4873 = vmatmul.mubr.msk.bf16.vlgmr.msra.gmra.mrb[112].mxu0 %vm254_vm2, %v3425_v13  ;;  %4881 = vmatmul.mubr.msk.bf16.vlgmr.msra.gmra.mrb[112].mxu1 %vm254_vm2, %v3425_v13 }
 0xe52   : > { %4885 = vmatpush3.bf16.msra.mxu0 %v6231_v29  ;;  %4893 = vmatpush3.bf16.msra.mxu1 %v6234_v31  ;;  %v4190_v29 = vld [vmem:[%s5691_s24 + $0x380] sm:$0xff]  ;;  %v4192_v31 = vld [vmem:[%s5691_s24 + $0x390] sm:$0xff] }
 0xe53   : > { %4886 = vmatprep.subr.bf16.mxu0 %v5515_v2  ;;  %4894 = vmatprep.subr.bf16.mxu1 %v5515_v2 }
 0xe54   : > { %4888 = vmatprep.mubr.msk.bf16.mxu0 %vm5516_vm1, %v5515_v2  ;;  %4896 = vmatprep.mubr.msk.bf16.mxu1 %vm5516_vm1, %v5515_v2 }
 0xe56   : > { %4887 = vmatpush3.bf16.msra.mxu0 %v6243_v32  ;;  %4895 = vmatpush3.bf16.msra.mxu1 %v6246_v6 }
 0xe57   : > { %4900 = vmatprep.subr.bf16.mxu0 %v5515_v2  ;;  %4908 = vmatprep.subr.bf16.mxu1 %v5515_v2 }
 0xe59   : > { %4889 = vmatmul.mubr.msk.bf16.vlgmr.msra.gmra.mrb[116].mxu0 %vm254_vm2, %v3425_v13  ;;  %4897 = vmatmul.mubr.msk.bf16.vlgmr.msra.gmra.mrb[116].mxu1 %vm254_vm2, %v3425_v13 }
 0xe5a   : > { %4901 = vmatpush3.bf16.msra.mxu0 %v6253_v34  ;;  %4909 = vmatpush3.bf16.msra.mxu1 %v6256_v23  ;;  %v4191_v34 = vld [vmem:[%s5691_s24 + $0x388] sm:$0xff]  ;;  %v4193_v23 = vld [vmem:[%s5691_s24 + $0x398] sm:$0xff] }
 0xe5b   : > { %4902 = vmatprep.subr.bf16.mxu0 %v5515_v2  ;;  %4910 = vmatprep.subr.bf16.mxu1 %v5515_v2 }
 0xe5c   : > { %4904 = vmatprep.mubr.msk.bf16.mxu0 %vm5516_vm1, %v5515_v2  ;;  %4912 = vmatprep.mubr.msk.bf16.mxu1 %vm5516_vm1, %v5515_v2 }
 0xe5e   : > { %4903 = vmatpush3.bf16.msra.mxu0 %v6265_v35  ;;  %4911 = vmatpush3.bf16.msra.mxu1 %v6268_v5 }
 0xe5f   : > { %4916 = vmatprep.subr.bf16.mxu0 %v5515_v2  ;;  %4924 = vmatprep.subr.bf16.mxu1 %v5515_v2 }
 0xf24   : > { %v3463_v32 = vpop.f32.mrb[112].mxu0  ;;  %v3506_v6 = vpop.f32.mrb[112].mxu1 }
 0xf25   : > { %v3470_v39 = vadd.f32 %v4190_v29, %v3463_v32  ;;  %v3513_v41 = vadd.f32 %v4192_v31, %v3506_v6  ;;  %v4874_v18 = vpop.f32.mrb[113].mxu0  ;;  %v4882_v11 = vpop.f32.mrb[113].mxu1 }
 0xf26   : > { %v3466_v43 = vpop.f32.mrb[114].mxu0  ;;  %v3509_v35 = vpop.f32.mrb[114].mxu1  ;;  %v5360_v18 = vld [vmem:[#allocation7 + $0x28] sm:$0xff]   ;;  %v5361_v11 = vld [vmem:[#allocation7 + $0x38] sm:$0xff]  }
 0xf27   : > { %v3601_v45 = vmul.f32 0.5, %v3470_v39  ;;  %v3609_v5 = vmul.f32 0.5, %v3513_v41  ;;  %v3471_v46 = vadd.f32 %v4191_v34, %v3466_v43  ;;  %v3514_v25 = vadd.f32 %v4193_v23, %v3509_v35  ;;  %v4875_v48 = vpop.f32.mrb[115].mxu0  ;;  %v4883_v24 = vpop.f32.mrb[115].mxu1  ;;  %v5358_v39 = vld [vmem:[#allocation7 + $0x20] sm:$0xff]   ;;  %v5359_v41 = vld [vmem:[#allocation7 + $0x30] sm:$0xff]  }
 0xf28   : > { %v4204_v43 = vld [vmem:[%s5691_s24 + $0x3c0] sm:$0xff]  ;;  %v4206_v35 = vld [vmem:[%s5691_s24 + $0x3d0] sm:$0xff] }
 0xf29   : > { %5302 = vtanh.f32 %v3601_v45  ;;  %v3602_v49 = vmul.f32 0.5, %v3471_v46  ;;  %v3610_v50 = vmul.f32 0.5, %v3514_v25  ;;  %v4205_v46 = vld [vmem:[%s5691_s24 + $0x3c8] sm:$0xff]  ;;  %v4207_v25 = vld [vmem:[%s5691_s24 + $0x3d8] sm:$0xff] }
 0xf2a   : > { %5304 = vtanh.f32 %v3609_v5 }
 0xf2b   : > { %5306 = vtanh.f32 %v3602_v49 }
 0xf2c   : > { %5308 = vtanh.f32 %v3610_v50  ;;  %v3549_v53 = vpop.f32.mrb[116].mxu0  ;;  %v3592_v55 = vpop.f32.mrb[116].mxu1 }
 0xf2d   : > { %v3556_v15 = vadd.f32 %v4194_v51, %v3549_v53  ;;  %v4890_v57 = vpop.f32.mrb[117].mxu0  ;;  %v4898_v59 = vpop.f32.mrb[117].mxu1  ;;  %v3599_v60 = vadd.f32 %v4196_v28, %v3592_v55 }
 0xf2e   : > { %v3552_v40 = vpop.f32.mrb[118].mxu0  ;;  %v3595_v38 = vpop.f32.mrb[118].mxu1 }
 0xf2f   : > { %5310 = vtanh.f32 %v3556_v15  ;;  %v3557_v63 = vadd.f32 %v4195_v33, %v3552_v40  ;;  %v4891_v0 = vpop.f32.mrb[119].mxu0  ;;  %v4899_v7 = vpop.f32.mrb[119].mxu1  ;;  %v3600_v42 = vadd.f32 %v4197_v62, %v3595_v38  ;;  %v3619_v14 = vmul.f32 0.5, %v3599_v60  ;;  %v4208_v40 = vld [vmem:[%s5691_s24 + $0x3e0] sm:$0xff]  ;;  %v4210_v62 = vld [vmem:[%s5691_s24 + $0x3f0] sm:$0xff] }
 0xf30   : > { %v4209_v0 = vld [vmem:[%s5691_s24 + $0x3e8] sm:$0xff] }
 0xf31   : > { %5312 = vtanh.f32 %v3557_v63  ;;  %v3620_v10 = vmul.f32 0.5, %v3600_v42 }
 0xf32   : > { %5314 = vtanh.f32 %v3619_v14 }
 0xf33   : > { %v5303_v16 = vpop.eup %5302  ;;  %5316 = vtanh.f32 %v3620_v10 }
 0xf34   : > { %v5305_v58 = vpop.eup %5304  ;;  %v3605_v30 = vadd.f32 1.0, %v5303_v16 }
 0xf35   : > { %v5307_v3 = vpop.eup %5306  ;;  %v3613_v9 = vadd.f32 1.0, %v5305_v58 }
 0xf36   : > { %v5309_v54 = vpop.eup %5308  ;;  %v3606_v52 = vadd.f32 1.0, %v5307_v3  ;;  %v3607_v26 = vmul.f32 0.5, %v3605_v30  ;;  %v4211_v30 = vld [vmem:[%s5691_s24 + $0x3f8] sm:$0xff] }
 0xf37   : > { %v3615_v61 = vmul.f32 0.5, %v3613_v9  ;;  %v3614_v12 = vadd.f32 1.0, %v5309_v54 }
 0xf38   : > { %v3608_v21 = vmul.f32 0.5, %v3606_v52 }
 0xf39   : > { %v5311_v27 = vpop.eup %5310  ;;  %v3616_v47 = vmul.f32 0.5, %v3614_v12  ;;  %v3627_v19 = vmul.f32 %v3615_v61, %v6426_v56 }
 0xf3a   : > { %v3629_v20 = vmul.f32 %v5311_v27, %v3607_v26 }
 0xf3b   : > { %v5313_v44 = vpop.eup %5312  ;;  %v3628_v1 = vmul.f32 %v3616_v47, %v6430_v17 }
 0xf3c   : > { %v6474_v22 = vadd.f32 %v3629_v20, %v3627_v19  ;;  %v3630_v4 = vmul.f32 %v5313_v44, %v3608_v21  ;;  %v5315_v37 = vpop.eup %5314 }
 0xf3d   : > { %v5317_v8 = vpop.eup %5316  ;;  %v3623_v13 = vadd.f32 1.0, %v5315_v37 }
 0xf3e   : > { %5318 = vtanh.f32 %v6474_v22  ;;  %v6478_v36 = vadd.f32 %v3630_v4, %v3628_v1  ;;  %v3624_v56 = vadd.f32 1.0, %v5317_v8 }
 0xf3f   : > { %v3625_v29 = vmul.f32 0.5, %v3623_v13 }
 0xf40   : > { %5320 = vtanh.f32 %v6478_v36  ;;  %v3626_v6 = vmul.f32 0.5, %v3624_v56 }
 0xf48   : > { %v5319_v31 = vpop.eup %5318 }
 0xf49   : > { %v3635_v32 = vmul.f32 %v5319_v31, %v3625_v29 }
 0xf4a   : > { %v5321_v34 = vpop.eup %5320 }
 0xf4b   : > { %4202 = vst.msk [vmem:[%s5702_s4 + $0xe0] sm:$0xff] %vm254_vm2, %v3635_v32  ;;  %v3636_v17 = vmul.f32 %v5321_v34, %v3626_v6 }
 0xf4d   : > { %4203 = vst.msk [vmem:[%s5702_s4 + $0xe8] sm:$0xff] %vm254_vm2, %v3636_v17  ;;  %v3649_v23 = vpack.c.bf16 %v3636_v17, %v3635_v32 }
 0xf4f   : > { %4905 = vmatmul.mubr.msk.bf16.vlgmr.msra.gmra.mrb[120].mxu0 %vm254_vm2, %v3649_v23  ;;  %4913 = vmatmul.mubr.msk.bf16.vlgmr.msra.gmra.mrb[120].mxu1 %vm254_vm2, %v3649_v23 }
 0xf50   : > { %4917 = vmatpush3.bf16.msra.mxu0 %v5358_v39  ;;  %4925 = vmatpush3.bf16.msra.mxu1 %v5359_v41 }
 0xf51   : > { %4918 = vmatprep.subr.bf16.mxu0 %v5515_v2  ;;  %4926 = vmatprep.subr.bf16.mxu1 %v5515_v2 }
 0xf52   : > { %4920 = vmatprep.mubr.msk.bf16.mxu0 %vm5516_vm1, %v5515_v2  ;;  %4928 = vmatprep.mubr.msk.bf16.mxu1 %vm5516_vm1, %v5515_v2 }
 0xf54   : > { %4919 = vmatpush3.bf16.msra.mxu0 %v5360_v18  ;;  %4927 = vmatpush3.bf16.msra.mxu1 %v5361_v11 }
 0xf57   : > { %4921 = vmatmul.mubr.msk.bf16.vlgmr.msra.gmra.mrb[124].mxu0 %vm254_vm2, %v3649_v23  ;;  %4929 = vmatmul.mubr.msk.bf16.vlgmr.msra.gmra.mrb[124].mxu1 %vm254_vm2, %v3649_v23 }
0x1022   : > { %v3687_v45 = vpop.f32.mrb[120].mxu0  ;;  %v3730_v5 = vpop.f32.mrb[120].mxu1 }
0x1023   : > { %v3694_v48 = vadd.f32 %v4204_v43, %v3687_v45  ;;  %v3737_v24 = vadd.f32 %v4206_v35, %v3730_v5  ;;  %v4906_v49 = vpop.f32.mrb[121].mxu0  ;;  %v4914_v2 = vpop.f32.mrb[121].mxu1 }
0x1024   : > { %v3690_v50 = vpop.f32.mrb[122].mxu0  ;;  %v3733_v51 = vpop.f32.mrb[122].mxu1 }
0x1025   : > { %v3825_v28 = vmul.f32 0.5, %v3694_v48  ;;  %v3833_v53 = vmul.f32 0.5, %v3737_v24  ;;  %v3695_v55 = vadd.f32 %v4205_v46, %v3690_v50  ;;  %v3738_v33 = vadd.f32 %v4207_v25, %v3733_v51  ;;  %v4907_v15 = vpop.f32.mrb[123].mxu0  ;;  %v4915_v57 = vpop.f32.mrb[123].mxu1 }
0x1027   : > { %5322 = vtanh.f32 %v3825_v28  ;;  %v3826_v59 = vmul.f32 0.5, %v3695_v55  ;;  %v3834_v60 = vmul.f32 0.5, %v3738_v33 }
0x1028   : > { %5324 = vtanh.f32 %v3833_v53 }
0x1029   : > { %5326 = vtanh.f32 %v3826_v59 }
0x102a   : > { %5328 = vtanh.f32 %v3834_v60  ;;  %v3773_v38 = vpop.f32.mrb[124].mxu0  ;;  %v3816_v63 = vpop.f32.mrb[124].mxu1 }
0x102b   : > { %v3780_v7 = vadd.f32 %v4208_v40, %v3773_v38  ;;  %v4922_v42 = vpop.f32.mrb[125].mxu0  ;;  %v4930_v14 = vpop.f32.mrb[125].mxu1  ;;  %v3823_v16 = vadd.f32 %v4210_v62, %v3816_v63 }
0x102c   : > { %v3776_v58 = vpop.f32.mrb[126].mxu0  ;;  %v3819_v3 = vpop.f32.mrb[126].mxu1 }
0x102d   : > { %5330 = vtanh.f32 %v3780_v7  ;;  %v3781_v9 = vadd.f32 %v4209_v0, %v3776_v58  ;;  %v4923_v10 = vpop.f32.mrb[127].mxu0  ;;  %v4931_v54 = vpop.f32.mrb[127].mxu1  ;;  %v3824_v61 = vadd.f32 %v4211_v30, %v3819_v3  ;;  %v3843_v52 = vmul.f32 0.5, %v3823_v16 }
0x102f   : > { %5332 = vtanh.f32 %v3781_v9  ;;  %v3844_v20 = vmul.f32 0.5, %v3824_v61 }
0x1030   : > { %5334 = vtanh.f32 %v3843_v52 }
0x1031   : > { %v5323_v12 = vpop.eup %5322  ;;  %5336 = vtanh.f32 %v3844_v20 }
0x1032   : > { %v5325_v26 = vpop.eup %5324  ;;  %v3829_v27 = vadd.f32 1.0, %v5323_v12 }
0x1033   : > { %v5327_v47 = vpop.eup %5326  ;;  %v3837_v19 = vadd.f32 1.0, %v5325_v26 }
0x1034   : > { %v5329_v21 = vpop.eup %5328  ;;  %v3830_v1 = vadd.f32 1.0, %v5327_v47  ;;  %v3831_v37 = vmul.f32 0.5, %v3829_v27 }
0x1035   : > { %v3839_v44 = vmul.f32 0.5, %v3837_v19  ;;  %v3838_v4 = vadd.f32 1.0, %v5329_v21 }
0x1036   : > { %v3832_v31 = vmul.f32 0.5, %v3830_v1 }
0x1037   : > { %v5331_v8 = vpop.eup %5330  ;;  %v3840_v13 = vmul.f32 0.5, %v3838_v4  ;;  %v3851_v56 = vmul.f32 %v3839_v44, %v6474_v22 }
0x1038   : > { %v3853_v29 = vmul.f32 %v5331_v8, %v3831_v37 }
0x1039   : > { %v5333_v32 = vpop.eup %5332  ;;  %v3852_v34 = vmul.f32 %v3840_v13, %v6478_v36 }
0x103a   : > { %v3855_v6 = vadd.f32 %v3853_v29, %v3851_v56  ;;  %v3854_v17 = vmul.f32 %v5333_v32, %v3832_v31  ;;  %v5335_v39 = vpop.eup %5334 }
0x103b   : > { %v5337_v22 = vpop.eup %5336  ;;  %v3847_v41 = vadd.f32 1.0, %v5335_v39 }
0x103c   : > { %5338 = vtanh.f32 %v3855_v6  ;;  %3866 = vst.msk [vmem:[#allocation3] sm:$0xff] %vm254_vm2, %v3855_v6  ;;  %v3856_v23 = vadd.f32 %v3854_v17, %v3852_v34  ;;  %v3848_v18 = vadd.f32 1.0, %v5337_v22 }
0x103d   : > { %v3849_v11 = vmul.f32 0.5, %v3847_v41 }
0x103e   : > { %5340 = vtanh.f32 %v3856_v23  ;;  %3867 = vst.msk [vmem:[#allocation3 + $0x8] sm:$0xff] %vm254_vm2, %v3856_v23  ;;  %v3850_v35 = vmul.f32 0.5, %v3848_v18 }
0x1046   : > { %v5339_v43 = vpop.eup %5338 }
0x1047   : > { %v3859_v36 = vmul.f32 %v5339_v43, %v3849_v11 }
0x1048   : > { %v5341_v45 = vpop.eup %5340 }
0x1049   : > { %4216 = vst.msk [vmem:[%s5702_s4 + $0xf0] sm:$0xff] %vm254_vm2, %v3859_v36  ;;  %3864 = vst.msk [vmem:[#allocation2] sm:$0xff] %vm254_vm2, %v3859_v36  ;;  %v3860_v5 = vmul.f32 %v5341_v45, %v3850_v35 }
0x104b   : > { %4217 = vst.msk [vmem:[%s5702_s4 + $0xf8] sm:$0xff] %vm254_vm2, %v3860_v5  ;;  %3865 = vst.msk [vmem:[#allocation2 + $0x8] sm:$0xff] %vm254_vm2, %v3860_v5 }
0x104c   : > { %5433 = shalt.err (!%p5430_p9)
}
0x104d   : > { %s5434_s3 = scalar_lea.hbm %s6515_s7, 4096  ;;  %s5438_s16 = scalar_lea.hbm %s6571_s2, 8192 }
0x104e   : > { %p5435_p1 = scmp.ne.s32.totalorder %s6515_s7, %s5434_s3  ;;  %p5439_p7 = scmp.lt.u32.totalorder %s6515_s7, %s6571_s2 }
0x104f   : > { %p5440_p13 = scmp.lt.u32.totalorder %s5438_s16, %s5434_s3  ;;  %p5442_p6 = scmp.lt.u32.totalorder %s5434_s3, %s6515_s7 }
0x1050   : > { %p5436_p2 = pnand %p5435_p1, %p5631_p10 }
0x1051   : > { %p5441_p4 = por %p5440_p13, %p5439_p7 }
0x1052   : > { %p5437_p3 = pneg %p5436_p2 }
0x1053   : > { %p5443_p8 = por %p5442_p6, %p5441_p4 }
0x1055   : > { %p5444_p12 = pnand %p5443_p8, %p5437_p3 }
0x1057   : > { %5447 = shalt.err (!%p5444_p12)
}
0x1058   : > { %s5518_s21 = smov 128   ;;  %s5519_s4 = smov 8  }
0x1059   : > { %4938 = dma.vmem_to_hbm [thread:$0]  (%p5631_p10), %s6517_s19, 4096, %s6515_s7, %s3869_s12, %s5518_s21, %s5518_s21, %s5519_s4  }
0x105a PF: > { %s3900_s17 = sand.u32 1, %s5486_s9   ;;  %p6589_p11 = scmp.ne.s32.totalorder %s6579_s20, 0 }
0x105b   : > { %p6590_p0 = scmp.ge.s32.totalorder %s5506_s14, 2  ;;  %s3901_s5 = scalar_lea.sflag [#allocation6], %s3900_s17 }
0x105d   : > { %p4949_p5 = pnand %p6590_p0, %p6589_p11 }
0x105f   : > { %5481 = dma.done.wait (!%p4949_p5), %s3901_s5, 4096  }
0x1060   : > { %5483 = vsyncadd (!%p4949_p5), %s3901_s5, 4294963200  ;;  %s19_s14 = sadd.s32 1, %s5506_s14   ;;  %s6591_s9 = smov %s5490_s10 }
0x1061   : > { %p16_p9 = scmp.ge.s32.totalorder %s19_s14, 4   ;;  %s6592_s10 = smov %s5494_s11 }
0x1062   : > { %s6593_s11 = smov %s5640_s28  ;;  %s6594_s12 = smov %s5502_s13 }
0x1063   : > { %s6595_s13 = smov %s6597_s25  ;;  %18 = sbr.rel (!%p16_p9) target bundleno = 7 (0x7), region = 114 }
0x106a   :  { %3906 = vsyncpa [#allocation5], 1 }
0x106b   :  { %3908 = vsyncpa [#allocation5 + $0x1], 1 }
0x106c   :  { %3909 = vsyncpa [#allocation8], 1 }
0x106d   :  { %3910 = vsyncpa [#allocation6], 1 }
0x106e   :  { %3912 = vsyncpa [#allocation6 + $0x1], 1 }

</bundles_post_ra>
